<compile_context>
chip_gen: v7x
topology: tpu7x:2x2x1
jax: 0.10.0
libtpu: 0.0.40
codegen_flags: <defaults>
</compile_context>

<pallas_src>
import functools
import math

import jax
import jax.numpy as jnp
from jax.experimental import pallas as pl
from jax.experimental.pallas import tpu as pltpu


_VMEM_LIMIT = 32 * 1024 * 1024  # safe on v5e/v6e/v7x (v7x physical is 64 MiB)


# --------------------------------------------------------------------------
# Kernel A: 1x1 conv (matmul) + BN affine + optional residual + ReLU, fused.
# Tiled over rows so the pipeline double-buffers HBM<->VMEM.
# --------------------------------------------------------------------------
def _conv1x1_bn_kernel(x_ref, w_ref, scale_ref, shift_ref, o_ref, *, relu):
    acc = jnp.dot(x_ref[...].astype(jnp.bfloat16), w_ref[...],
                  preferred_element_type=jnp.float32)
    acc = acc * scale_ref[...] + shift_ref[...]
    if relu:
        acc = jnp.maximum(acc, 0.0)
    o_ref[...] = acc.astype(o_ref.dtype)


def _conv1x1_bn_res_kernel(x_ref, w_ref, scale_ref, shift_ref, res_ref, o_ref,
                           *, relu):
    acc = jnp.dot(x_ref[...].astype(jnp.bfloat16), w_ref[...],
                  preferred_element_type=jnp.float32)
    acc = acc * scale_ref[...] + shift_ref[...]
    acc = acc + res_ref[...].astype(jnp.float32)
    if relu:
        acc = jnp.maximum(acc, 0.0)
    o_ref[...] = acc.astype(o_ref.dtype)


def conv1x1_bn_act(x2d, w_bf16, scale, shift, residual, relu):
    R, Cin = x2d.shape
    Cout = w_bf16.shape[1]
    # Row tile: full array when small, else 512 rows (multiple of 8).
    TM = R if R <= 512 else 512
    grid = (pl.cdiv(R, TM),)
    in_specs = [
        pl.BlockSpec((TM, Cin), lambda i: (i, 0)),
        pl.BlockSpec((Cin, Cout), lambda i: (0, 0)),
        pl.BlockSpec((1, Cout), lambda i: (0, 0)),
        pl.BlockSpec((1, Cout), lambda i: (0, 0)),
    ]
    args = [x2d, w_bf16, scale, shift]
    if residual is not None:
        in_specs.append(pl.BlockSpec((TM, Cout), lambda i: (i, 0)))
        args.append(residual)
        kern = functools.partial(_conv1x1_bn_res_kernel, relu=relu)
    else:
        kern = functools.partial(_conv1x1_bn_kernel, relu=relu)
    # TODO(synk): pad Cout to a multiple of 128 (lane-dense stores) when the
    # channel count is small.
    return pl.pallas_call(
        kern,
        out_shape=jax.ShapeDtypeStruct((R, Cout), x2d.dtype),
        grid=grid,
        in_specs=in_specs,
        out_specs=pl.BlockSpec((TM, Cout), lambda i: (i, 0)),
        compiler_params=pltpu.CompilerParams(
            dimension_semantics=("parallel",),
            vmem_limit_bytes=_VMEM_LIMIT),
    )(*args)


# --------------------------------------------------------------------------
# Kernel B: 3x3 conv (pad=1, stride=1) + BN affine + optional ReLU, fused.
# Grid over batch; padding is done into a VMEM scratch in-kernel (no wrapper
# jnp.pad HBM round trip); the 9 taps accumulate via bf16 MXU matmuls.
# --------------------------------------------------------------------------
def _conv3x3_bn_kernel(x_ref, w_ref, scale_ref, shift_ref, o_ref, xp_scr, *,
                       relu, H, W, Cin, Cout):
    # Zero the padded scratch every step (safe under megacore sharding) and
    # copy the interior.
    xp_scr[...] = jnp.zeros_like(xp_scr)
    xp_scr[1:H + 1, 1:W + 1, :] = x_ref[0]
    acc = jnp.zeros((H * W, Cout), jnp.float32)
    for kh in range(3):
        for kw in range(3):
            patch = xp_scr[kh:kh + H, kw:kw + W, :].reshape(H * W, Cin)
            acc = acc + jnp.dot(patch.astype(jnp.bfloat16), w_ref[kh * 3 + kw],
                                preferred_element_type=jnp.float32)
    acc = acc * scale_ref[...] + shift_ref[...]
    if relu:
        acc = jnp.maximum(acc, 0.0)
    o_ref[0] = acc.reshape(H, W, Cout).astype(o_ref.dtype)
    # TODO(synk): replace per-tap sublane-offset slices with pltpu.roll-based
    # shifts / an im2col staging matmul for better MXU depth at large Cin.


def conv3x3_bn_act(x_nhwc, w9_bf16, scale, shift, relu):
    N, H, W, Cin = x_nhwc.shape
    Cout = w9_bf16.shape[-1]
    kern = functools.partial(_conv3x3_bn_kernel, relu=relu,
                             H=H, W=W, Cin=Cin, Cout=Cout)
    return pl.pallas_call(
        kern,
        out_shape=jax.ShapeDtypeStruct((N, H, W, Cout), x_nhwc.dtype),
        grid=(N,),
        in_specs=[
            pl.BlockSpec((1, H, W, Cin), lambda n: (n, 0, 0, 0)),
            pl.BlockSpec((9, Cin, Cout), lambda n: (0, 0, 0)),
            pl.BlockSpec((1, Cout), lambda n: (0, 0)),
            pl.BlockSpec((1, Cout), lambda n: (0, 0)),
        ],
        out_specs=pl.BlockSpec((1, H, W, Cout), lambda n: (n, 0, 0, 0)),
        scratch_shapes=[pltpu.VMEM((H + 2, W + 2, Cin), jnp.float32)],
        compiler_params=pltpu.CompilerParams(
            dimension_semantics=("parallel",),
            vmem_limit_bytes=_VMEM_LIMIT),
    )(x_nhwc, w9_bf16, scale, shift)


# --------------------------------------------------------------------------
# Kernel C: deformable bilinear sampling (ConvOffset2D's th_batch_map_offsets).
# Separable formulation: per output pixel p, a one-hot-over-H row weight and a
# one-hot-over-W column weight reproduce the 4-corner bilinear gather:
#   out[c,p] = sum_h sum_w Wrow[c,h,p] * Wcol[c,w,p] * x[c,h,w]
#            = sum_w Wcol[c,w,p] * (sum_h x[c,h,w] * Wrow[c,h,p])
# The inner sum is a batched MXU matmul; memory is O(HW*(H+W)) per channel
# instead of O(HW^2). Batched over CB channels per grid step.
# --------------------------------------------------------------------------
def _deform_sample_kernel(x_ref, ch_ref, cw_ref, o_ref, *, H, W):
    x = x_ref[...]                                        # (CB, H, W) f32
    ch = jnp.clip(ch_ref[...], 0.0, float(H - 1))         # (CB, 1, HW)
    cw = jnp.clip(cw_ref[...], 0.0, float(W - 1))         # (CB, 1, HW)
    fh = jnp.floor(ch)
    rh = jnp.ceil(ch)
    fw = jnp.floor(cw)
    rw = jnp.ceil(cw)
    dh = ch - fh
    dw = cw - fw
    fh_i = fh.astype(jnp.int32)
    rh_i = rh.astype(jnp.int32)
    fw_i = fw.astype(jnp.int32)
    rw_i = rw.astype(jnp.int32)

    CB = x.shape[0]
    HW = H * W
    h_iota = jax.lax.broadcasted_iota(jnp.int32, (CB, H, HW), 1)
    w_iota = jax.lax.broadcasted_iota(jnp.int32, (CB, W, HW), 1)
    # Row (height) and column (width) bilinear weights, one-hot over H / W.
    w_row = (jnp.where(h_iota == fh_i, 1.0 - dh, 0.0)
             + jnp.where(h_iota == rh_i, dh, 0.0))        # (CB, H, HW)
    w_col = (jnp.where(w_iota == fw_i, 1.0 - dw, 0.0)
             + jnp.where(w_iota == rw_i, dw, 0.0))        # (CB, W, HW)

    u = jnp.einsum("chw,chp->cwp", x, w_row,
                   preferred_element_type=jnp.float32)    # (CB, W, HW)
    out = jnp.sum(u * w_col, axis=1, keepdims=True)       # (CB, 1, HW)
    o_ref[...] = out.astype(o_ref.dtype)


def deform_sample(x_bc, ch_all, cw_all, H, W):
    # x_bc: (B*C, H, W); ch_all/cw_all: (B*C, 1, H*W) absolute coords.
    BC = x_bc.shape[0]
    HW = H * W
    # Channels per grid step: amortizes per-step overhead and fills sublanes.
    CB = next(c for c in (8, 4, 2, 1) if BC % c == 0)
    kern = functools.partial(_deform_sample_kernel, H=H, W=W)
    out = pl.pallas_call(
        kern,
        out_shape=jax.ShapeDtypeStruct((BC, 1, HW), x_bc.dtype),
        grid=(BC // CB,),
        in_specs=[
            pl.BlockSpec((CB, H, W), lambda g: (g, 0, 0)),
            pl.BlockSpec((CB, 1, HW), lambda g: (g, 0, 0)),
            pl.BlockSpec((CB, 1, HW), lambda g: (g, 0, 0)),
        ],
        out_specs=pl.BlockSpec((CB, 1, HW), lambda g: (g, 0, 0)),
        compiler_params=pltpu.CompilerParams(
            dimension_semantics=("parallel",),
            vmem_limit_bytes=_VMEM_LIMIT),
    )(x_bc, ch_all, cw_all)
    return out.reshape(BC, H, W)


# --------------------------------------------------------------------------
# Parameters (deterministic, synthetic) and glue.
# --------------------------------------------------------------------------
def init_params(key, inplanes, planes):
    expansion = 4
    ks = jax.random.split(key, 4)
    # PyTorch conv weight layout (Cout, Cin, kh, kw); converted later.
    w1 = jax.random.normal(ks[0], (planes, inplanes, 1, 1), jnp.float32) * (
        1.0 / math.sqrt(inplanes))
    w_off = jax.random.normal(ks[1], (2 * planes, planes, 3, 3), jnp.float32) * 0.01
    w2 = jax.random.normal(ks[2], (planes, planes, 3, 3), jnp.float32) * (
        1.0 / math.sqrt(planes * 9))
    w3 = jax.random.normal(ks[3], (planes * expansion, planes, 1, 1), jnp.float32) * (
        1.0 / math.sqrt(planes))

    def bn(c):
        return (jnp.ones((c,), jnp.float32), jnp.zeros((c,), jnp.float32),
                jnp.zeros((c,), jnp.float32), jnp.ones((c,), jnp.float32))

    return dict(w1=w1, w_off=w_off, w2=w2, w3=w3,
                bn1=bn(planes), bn2=bn(planes), bn3=bn(planes * expansion))


def _bn_scale_shift(bn, eps=1e-5):
    gamma, beta, mean, var = bn
    scale = gamma / jnp.sqrt(var + eps)
    shift = beta - mean * scale
    return scale[None, :], shift[None, :]


def deform_resnet_bottleneck(x_nchw, params, stride=1):
    # TODO(synk): BatchNorm is applied in eval mode (running stats = PyTorch
    # defaults mean=0/var=1); fresh-module train-mode batch statistics are not
    # reproduced. downsample=None (identity residual).
    N, Cin, H, W = x_nchw.shape
    x = jnp.transpose(x_nchw, (0, 2, 3, 1)).astype(jnp.float32)   # NHWC
    x_s = x[:, ::stride, ::stride, :] if stride > 1 else x
    Hs, Ws = x_s.shape[1], x_s.shape[2]
    HW = Hs * Ws
    planes = params["w1"].shape[0]
    exp_out = params["w3"].shape[0]
    assert Cin == exp_out, "identity residual requires inplanes == planes*4"

    # conv1 (1x1, stride) + bn1 + relu   (no residual stream)
    w1 = params["w1"][:, :, 0, 0].T.astype(jnp.bfloat16)          # (Cin, planes)
    s1, b1 = _bn_scale_shift(params["bn1"])
    x2d = x_s.reshape(N * HW, Cin)
    out1 = conv1x1_bn_act(x2d, w1, s1, b1, residual=None, relu=True)
    out1_nhwc = out1.reshape(N, Hs, Ws, planes)

    # ConvOffset2D: 3x3 conv planes -> 2*planes (no BN/act), then sampling.
    w_off9 = jnp.transpose(params["w_off"], (2, 3, 1, 0)).reshape(
        9, planes, 2 * planes).astype(jnp.bfloat16)
    ones = jnp.ones((1, 2 * planes), jnp.float32)
    zeros = jnp.zeros((1, 2 * planes), jnp.float32)
    offsets_nhwc = conv3x3_bn_act(out1_nhwc, w_off9, ones, zeros, relu=False)
    # torch: (b, 2c, h, w).view(b*c, h, w, 2) -> row-major reshape of NCHW data.
    # TODO(synk): fold these layout transposes into the kernels via index_maps.
    offsets_nchw = jnp.transpose(offsets_nhwc, (0, 3, 1, 2))
    offsets_bc = offsets_nchw.reshape(N * planes, HW, 2)
    out1_nchw = jnp.transpose(out1_nhwc, (0, 3, 1, 2))
    x_bc = out1_nchw.reshape(N * planes, Hs, Ws)
    gh, gw = jnp.meshgrid(jnp.arange(Hs, dtype=jnp.float32),
                          jnp.arange(Ws, dtype=jnp.float32), indexing="ij")
    grid = jnp.stack([gh, gw], axis=-1).reshape(HW, 2)
    coords = offsets_bc + grid[None]                              # (BC, HW, 2)
    ch_all = coords[:, :, 0].reshape(N * planes, 1, HW)
    cw_all = coords[:, :, 1].reshape(N * planes, 1, HW)
    x_def_bc = deform_sample(x_bc, ch_all, cw_all, Hs, Ws)        # (BC, H, W)
    x_def = jnp.transpose(x_def_bc.reshape(N, planes, Hs, Ws), (0, 2, 3, 1))

    # conv2 (3x3) + bn2 + relu
    w2_9 = jnp.transpose(params["w2"], (2, 3, 1, 0)).reshape(
        9, planes, planes).astype(jnp.bfloat16)
    s2, b2 = _bn_scale_shift(params["bn2"])
    out2 = conv3x3_bn_act(x_def, w2_9, s2, b2, relu=True)

    # conv3 (1x1) + bn3 + residual add + relu (residual = x, downsample=None)
    w3 = params["w3"][:, :, 0, 0].T.astype(jnp.bfloat16)
    s3, b3 = _bn_scale_shift(params["bn3"])
    out2_2d = out2.reshape(N * HW, planes)
    residual = x_s.reshape(N * HW, Cin)
    out3 = conv1x1_bn_act(out2_2d, w3, s3, b3, residual=residual, relu=True)
    out_nhwc = out3.reshape(N, Hs, Ws, exp_out)
    return jnp.transpose(out_nhwc, (0, 3, 1, 2))                  # back to NCHW


if __name__ == "__main__":
    key = jax.random.PRNGKey(0)
    kx, kp = jax.random.split(key)
    N, planes, H, W = 2, 4, 8, 8
    inplanes = planes * 4        # residual add works with downsample=None
    x = jax.random.normal(kx, (N, inplanes, H, W), jnp.float32)
    params = init_params(kp, inplanes, planes)
    fwd = jax.jit(lambda xx: deform_resnet_bottleneck(xx, params, stride=1))
    out = fwd(x)
    jax.block_until_ready(out)
    assert out.shape == (N, planes * 4, H, W), out.shape
    assert bool(jnp.all(jnp.isfinite(out)))
    print("KERNEL_OK")
</pallas_src>

<mosaic_0001>
module attributes {stable_mosaic.version = 11 : i64} {
  func.func @_conv1x1_bn_kernel(%arg0: i32, %arg1: memref<128x16xf32, #tpu.memory_space<vmem>>, %arg2: memref<16x4xbf16, #tpu.memory_space<vmem>>, %arg3: memref<1x4xf32, #tpu.memory_space<vmem>>, %arg4: memref<1x4xf32, #tpu.memory_space<vmem>>, %arg5: memref<128x4xf32, #tpu.memory_space<vmem>>) attributes {dimension_semantics = [#tpu.dimension_semantics<parallel>], iteration_bounds = array<i64: 1>, scalar_prefetch = 0 : i64, scratch_operands = 0 : i64, tpu.core_type = #tpu.core_type<tc>, window_params = [{transform_indices = @transform_0, window_bounds = array<i64: 128, 16>}, {pipeline_mode = #tpu.pipeline_mode<synchronous>, transform_indices = @transform_1, window_bounds = array<i64: 16, 4>}, {pipeline_mode = #tpu.pipeline_mode<synchronous>, transform_indices = @transform_2, window_bounds = array<i64: 1, 4>}, {pipeline_mode = #tpu.pipeline_mode<synchronous>, transform_indices = @transform_3, window_bounds = array<i64: 1, 4>}, {transform_indices = @transform_4, window_bounds = array<i64: 128, 4>}]} {
    %c0 = arith.constant 0 : index
    %c0_0 = arith.constant 0 : index
    %0 = vector.load %arg1[%c0, %c0_0] : memref<128x16xf32, #tpu.memory_space<vmem>>, vector<128x16xf32>
    %1 = arith.truncf %0 : vector<128x16xf32> to vector<128x16xbf16>
    %c0_1 = arith.constant 0 : index
    %c0_2 = arith.constant 0 : index
    %2 = vector.load %arg2[%c0_1, %c0_2] : memref<16x4xbf16, #tpu.memory_space<vmem>>, vector<16x4xbf16>
    %cst = arith.constant dense<0.000000e+00> : vector<128x4xf32>
    %3 = tpu.matmul %1, %2, %cst {dimension_numbers = #tpu.dot_dimension_numbers<[1], [0], [0], [1], [0, 0, 1, 1], [], []>} : vector<128x16xbf16>, vector<16x4xbf16>, vector<128x4xf32> -> vector<128x4xf32>
    %c0_3 = arith.constant 0 : index
    %c0_4 = arith.constant 0 : index
    %4 = vector.load %arg3[%c0_3, %c0_4] : memref<1x4xf32, #tpu.memory_space<vmem>>, vector<1x4xf32>
    %5 = vector.broadcast %4 : vector<1x4xf32> to vector<128x4xf32>
    %6 = arith.mulf %3, %5 : vector<128x4xf32>
    %c0_5 = arith.constant 0 : index
    %c0_6 = arith.constant 0 : index
    %7 = vector.load %arg4[%c0_5, %c0_6] : memref<1x4xf32, #tpu.memory_space<vmem>>, vector<1x4xf32>
    %8 = vector.broadcast %7 : vector<1x4xf32> to vector<128x4xf32>
    %9 = arith.addf %6, %8 : vector<128x4xf32>
    %cst_7 = arith.constant 0.000000e+00 : f32
    %10 = vector.broadcast %cst_7 : f32 to vector<128x4xf32>
    %11 = arith.maximumf %9, %10 : vector<128x4xf32>
    %c0_8 = arith.constant 0 : index
    %c0_9 = arith.constant 0 : index
    %12 = vector.load %arg5[%c0_8, %c0_9] : memref<128x4xf32, #tpu.memory_space<vmem>>, vector<128x4xf32>
    tpu.vector_store %arg5[%c0_8, %c0_9], %11 {strides = array<i32>} : memref<128x4xf32, #tpu.memory_space<vmem>>, vector<128x4xf32>,
    return
  }
  func.func @transform_0(%arg0: i32) -> (i32, i32) {
    %c0_i32 = arith.constant 0 : i32
    %c0_i32_0 = arith.constant 0 : i32
    return %arg0, %c0_i32 : i32, i32
  }
  func.func @transform_1(%arg0: i32) -> (i32, i32) {
    %c0_i32 = arith.constant 0 : i32
    %c0_i32_0 = arith.constant 0 : i32
    %c0_i32_1 = arith.constant 0 : i32
    return %c0_i32, %c0_i32_0 : i32, i32
  }
  func.func @transform_2(%arg0: i32) -> (i32, i32) {
    %c0_i32 = arith.constant 0 : i32
    %c0_i32_0 = arith.constant 0 : i32
    %c0_i32_1 = arith.constant 0 : i32
    return %c0_i32, %c0_i32_0 : i32, i32
  }
  func.func @transform_3(%arg0: i32) -> (i32, i32) {
    %c0_i32 = arith.constant 0 : i32
    %c0_i32_0 = arith.constant 0 : i32
    %c0_i32_1 = arith.constant 0 : i32
    return %c0_i32, %c0_i32_0 : i32, i32
  }
  func.func @transform_4(%arg0: i32) -> (i32, i32) {
    %c0_i32 = arith.constant 0 : i32
    %c0_i32_0 = arith.constant 0 : i32
    return %arg0, %c0_i32 : i32, i32
  }
}

module attributes {stable_mosaic.version = 11 : i64} {
  func.func @_conv3x3_bn_kernel(%arg0: i32, %arg1: memref<1x8x8x4xf32, #tpu.memory_space<vmem>>, %arg2: memref<9x4x8xbf16, #tpu.memory_space<vmem>>, %arg3: memref<1x8xf32, #tpu.memory_space<vmem>>, %arg4: memref<1x8xf32, #tpu.memory_space<vmem>>, %arg5: memref<1x8x8x8xf32, #tpu.memory_space<vmem>>, %arg6: memref<10x10x4xf32, #tpu.memory_space<vmem>>) attributes {dimension_semantics = [#tpu.dimension_semantics<parallel>], iteration_bounds = array<i64: 2>, scalar_prefetch = 0 : i64, scratch_operands = 1 : i64, tpu.core_type = #tpu.core_type<tc>, window_params = [{transform_indices = @transform_0, window_bounds = array<i64: 1, 8, 8, 4>}, {pipeline_mode = #tpu.pipeline_mode<synchronous>, transform_indices = @transform_1, window_bounds = array<i64: 9, 4, 8>}, {pipeline_mode = #tpu.pipeline_mode<synchronous>, transform_indices = @transform_2, window_bounds = array<i64: 1, 8>}, {pipeline_mode = #tpu.pipeline_mode<synchronous>, transform_indices = @transform_3, window_bounds = array<i64: 1, 8>}, {transform_indices = @transform_4, window_bounds = array<i64: 1, 8, 8, 8>}]} {
    %cst = arith.constant 0.000000e+00 : f32
    %0 = vector.broadcast %cst : f32 to vector<10x10x4xf32>
    %c0 = arith.constant 0 : index
    %c0_0 = arith.constant 0 : index
    %c0_1 = arith.constant 0 : index
    %1 = vector.load %arg6[%c0, %c0_0, %c0_1] : memref<10x10x4xf32, #tpu.memory_space<vmem>>, vector<10x10x4xf32>
    tpu.vector_store %arg6[%c0, %c0_0, %c0_1], %0 {strides = array<i32>} : memref<10x10x4xf32, #tpu.memory_space<vmem>>, vector<10x10x4xf32>,
    %c0_2 = arith.constant 0 : index
    %c0_3 = arith.constant 0 : index
    %c0_4 = arith.constant 0 : index
    %c0_5 = arith.constant 0 : index
    %2 = vector.load %arg1[%c0_2, %c0_3, %c0_4, %c0_5] : memref<1x8x8x4xf32, #tpu.memory_space<vmem>>, vector<1x8x8x4xf32>
    %3 = vector.shape_cast %2 : vector<1x8x8x4xf32> to vector<8x8x4xf32>
    %c1 = arith.constant 1 : index
    %c1_6 = arith.constant 1 : index
    %c0_7 = arith.constant 0 : index
    %4 = vector.load %arg6[%c1, %c1_6, %c0_7] : memref<10x10x4xf32, #tpu.memory_space<vmem>>, vector<8x8x4xf32>
    tpu.vector_store %arg6[%c1, %c1_6, %c0_7], %3 {strides = array<i32>} : memref<10x10x4xf32, #tpu.memory_space<vmem>>, vector<8x8x4xf32>,
    %cst_8 = arith.constant 0.000000e+00 : f32
    %5 = vector.broadcast %cst_8 : f32 to vector<64x8xf32>
    %c0_9 = arith.constant 0 : index
    %c0_10 = arith.constant 0 : index
    %c0_11 = arith.constant 0 : index
    %6 = vector.load %arg6[%c0_9, %c0_10, %c0_11] : memref<10x10x4xf32, #tpu.memory_space<vmem>>, vector<8x8x4xf32>
    %7 = vector.shape_cast %6 : vector<8x8x4xf32> to vector<64x4xf32>
    %8 = arith.truncf %7 : vector<64x4xf32> to vector<64x4xbf16>
    %c0_12 = arith.constant 0 : index
    %c0_13 = arith.constant 0 : index
    %c0_14 = arith.constant 0 : index
    %9 = vector.load %arg2[%c0_12, %c0_13, %c0_14] : memref<9x4x8xbf16, #tpu.memory_space<vmem>>, vector<1x4x8xbf16>
    %10 = vector.shape_cast %9 : vector<1x4x8xbf16> to vector<4x8xbf16>
    %cst_15 = arith.constant dense<0.000000e+00> : vector<64x8xf32>
    %11 = tpu.matmul %8, %10, %cst_15 {dimension_numbers = #tpu.dot_dimension_numbers<[1], [0], [0], [1], [0, 0, 1, 1], [], []>} : vector<64x4xbf16>, vector<4x8xbf16>, vector<64x8xf32> -> vector<64x8xf32>
    %12 = arith.addf %5, %11 : vector<64x8xf32>
    %c0_16 = arith.constant 0 : index
    %c1_17 = arith.constant 1 : index
    %c0_18 = arith.constant 0 : index
    %13 = vector.load %arg6[%c0_16, %c1_17, %c0_18] : memref<10x10x4xf32, #tpu.memory_space<vmem>>, vector<8x8x4xf32>
    %14 = vector.shape_cast %13 : vector<8x8x4xf32> to vector<64x4xf32>
    %15 = arith.truncf %14 : vector<64x4xf32> to vector<64x4xbf16>
    %c1_19 = arith.constant 1 : index
    %c0_20 = arith.constant 0 : index
    %c0_21 = arith.constant 0 : index
    %16 = vector.load %arg2[%c1_19, %c0_20, %c0_21] : memref<9x4x8xbf16, #tpu.memory_space<vmem>>, vector<1x4x8xbf16>
    %17 = vector.shape_cast %16 : vector<1x4x8xbf16> to vector<4x8xbf16>
    %cst_22 = arith.constant dense<0.000000e+00> : vector<64x8xf32>
    %18 = tpu.matmul %15, %17, %cst_22 {dimension_numbers = #tpu.dot_dimension_numbers<[1], [0], [0], [1], [0, 0, 1, 1], [], []>} : vector<64x4xbf16>, vector<4x8xbf16>, vector<64x8xf32> -> vector<64x8xf32>
    %19 = arith.addf %12, %18 : vector<64x8xf32>
    %c0_23 = arith.constant 0 : index
    %c2 = arith.constant 2 : index
    %c0_24 = arith.constant 0 : index
    %20 = vector.load %arg6[%c0_23, %c2, %c0_24] : memref<10x10x4xf32, #tpu.memory_space<vmem>>, vector<8x8x4xf32>
    %21 = vector.shape_cast %20 : vector<8x8x4xf32> to vector<64x4xf32>
    %22 = arith.truncf %21 : vector<64x4xf32> to vector<64x4xbf16>
    %c2_25 = arith.constant 2 : index
    %c0_26 = arith.constant 0 : index
    %c0_27 = arith.constant 0 : index
    %23 = vector.load %arg2[%c2_25, %c0_26, %c0_27] : memref<9x4x8xbf16, #tpu.memory_space<vmem>>, vector<1x4x8xbf16>
    %24 = vector.shape_cast %23 : vector<1x4x8xbf16> to vector<4x8xbf16>
    %cst_28 = arith.constant dense<0.000000e+00> : vector<64x8xf32>
    %25 = tpu.matmul %22, %24, %cst_28 {dimension_numbers = #tpu.dot_dimension_numbers<[1], [0], [0], [1], [0, 0, 1, 1], [], []>} : vector<64x4xbf16>, vector<4x8xbf16>, vector<64x8xf32> -> vector<64x8xf32>
    %26 = arith.addf %19, %25 : vector<64x8xf32>
    %c1_29 = arith.constant 1 : index
    %c0_30 = arith.constant 0 : index
    %c0_31 = arith.constant 0 : index
    %27 = vector.load %arg6[%c1_29, %c0_30, %c0_31] : memref<10x10x4xf32, #tpu.memory_space<vmem>>, vector<8x8x4xf32>
    %28 = vector.shape_cast %27 : vector<8x8x4xf32> to vector<64x4xf32>
    %29 = arith.truncf %28 : vector<64x4xf32> to vector<64x4xbf16>
    %c3 = arith.constant 3 : index
    %c0_32 = arith.constant 0 : index
    %c0_33 = arith.constant 0 : index
    %30 = vector.load %arg2[%c3, %c0_32, %c0_33] : memref<9x4x8xbf16, #tpu.memory_space<vmem>>, vector<1x4x8xbf16>
    %31 = vector.shape_cast %30 : vector<1x4x8xbf16> to vector<4x8xbf16>
    %cst_34 = arith.constant dense<0.000000e+00> : vector<64x8xf32>
    %32 = tpu.matmul %29, %31, %cst_34 {dimension_numbers = #tpu.dot_dimension_numbers<[1], [0], [0], [1], [0, 0, 1, 1], [], []>} : vector<64x4xbf16>, vector<4x8xbf16>, vector<64x8xf32> -> vector<64x8xf32>
    %33 = arith.addf %26, %32 : vector<64x8xf32>
    %c1_35 = arith.constant 1 : index
    %c1_36 = arith.constant 1 : index
    %c0_37 = arith.constant 0 : index
    %34 = vector.load %arg6[%c1_35, %c1_36, %c0_37] : memref<10x10x4xf32, #tpu.memory_space<vmem>>, vector<8x8x4xf32>
    %35 = vector.shape_cast %34 : vector<8x8x4xf32> to vector<64x4xf32>
    %36 = arith.truncf %35 : vector<64x4xf32> to vector<64x4xbf16>
    %c4 = arith.constant 4 : index
    %c0_38 = arith.constant 0 : index
    %c0_39 = arith.constant 0 : index
    %37 = vector.load %arg2[%c4, %c0_38, %c0_39] : memref<9x4x8xbf16, #tpu.memory_space<vmem>>, vector<1x4x8xbf16>
    %38 = vector.shape_cast %37 : vector<1x4x8xbf16> to vector<4x8xbf16>
    %cst_40 = arith.constant dense<0.000000e+00> : vector<64x8xf32>
    %39 = tpu.matmul %36, %38, %cst_40 {dimension_numbers = #tpu.dot_dimension_numbers<[1], [0], [0], [1], [0, 0, 1, 1], [], []>} : vector<64x4xbf16>, vector<4x8xbf16>, vector<64x8xf32> -> vector<64x8xf32>
    %40 = arith.addf %33, %39 : vector<64x8xf32>
    %c1_41 = arith.constant 1 : index
    %c2_42 = arith.constant 2 : index
    %c0_43 = arith.constant 0 : index
    %41 = vector.load %arg6[%c1_41, %c2_42, %c0_43] : memref<10x10x4xf32, #tpu.memory_space<vmem>>, vector<8x8x4xf32>
    %42 = vector.shape_cast %41 : vector<8x8x4xf32> to vector<64x4xf32>
    %43 = arith.truncf %42 : vector<64x4xf32> to vector<64x4xbf16>
    %c5 = arith.constant 5 : index
    %c0_44 = arith.constant 0 : index
    %c0_45 = arith.constant 0 : index
    %44 = vector.load %arg2[%c5, %c0_44, %c0_45] : memref<9x4x8xbf16, #tpu.memory_space<vmem>>, vector<1x4x8xbf16>
    %45 = vector.shape_cast %44 : vector<1x4x8xbf16> to vector<4x8xbf16>
    %cst_46 = arith.constant dense<0.000000e+00> : vector<64x8xf32>
    %46 = tpu.matmul %43, %45, %cst_46 {dimension_numbers = #tpu.dot_dimension_numbers<[1], [0], [0], [1], [0, 0, 1, 1], [], []>} : vector<64x4xbf16>, vector<4x8xbf16>, vector<64x8xf32> -> vector<64x8xf32>
    %47 = arith.addf %40, %46 : vector<64x8xf32>
    %c2_47 = arith.constant 2 : index
    %c0_48 = arith.constant 0 : index
    %c0_49 = arith.constant 0 : index
    %48 = vector.load %arg6[%c2_47, %c0_48, %c0_49] : memref<10x10x4xf32, #tpu.memory_space<vmem>>, vector<8x8x4xf32>
    %49 = vector.shape_cast %48 : vector<8x8x4xf32> to vector<64x4xf32>
    %50 = arith.truncf %49 : vector<64x4xf32> to vector<64x4xbf16>
    %c6 = arith.constant 6 : index
    %c0_50 = arith.constant 0 : index
    %c0_51 = arith.constant 0 : index
    %51 = vector.load %arg2[%c6, %c0_50, %c0_51] : memref<9x4x8xbf16, #tpu.memory_space<vmem>>, vector<1x4x8xbf16>
    %52 = vector.shape_cast %51 : vector<1x4x8xbf16> to vector<4x8xbf16>
    %cst_52 = arith.constant dense<0.000000e+00> : vector<64x8xf32>
    %53 = tpu.matmul %50, %52, %cst_52 {dimension_numbers = #tpu.dot_dimension_numbers<[1], [0], [0], [1], [0, 0, 1, 1], [], []>} : vector<64x4xbf16>, vector<4x8xbf16>, vector<64x8xf32> -> vector<64x8xf32>
    %54 = arith.addf %47, %53 : vector<64x8xf32>
    %c2_53 = arith.constant 2 : index
    %c1_54 = arith.constant 1 : index
    %c0_55 = arith.constant 0 : index
    %55 = vector.load %arg6[%c2_53, %c1_54, %c0_55] : memref<10x10x4xf32, #tpu.memory_space<vmem>>, vector<8x8x4xf32>
    %56 = vector.shape_cast %55 : vector<8x8x4xf32> to vector<64x4xf32>
    %57 = arith.truncf %56 : vector<64x4xf32> to vector<64x4xbf16>
    %c7 = arith.constant 7 : index
    %c0_56 = arith.constant 0 : index
    %c0_57 = arith.constant 0 : index
    %58 = vector.load %arg2[%c7, %c0_56, %c0_57] : memref<9x4x8xbf16, #tpu.memory_space<vmem>>, vector<1x4x8xbf16>
    %59 = vector.shape_cast %58 : vector<1x4x8xbf16> to vector<4x8xbf16>
    %cst_58 = arith.constant dense<0.000000e+00> : vector<64x8xf32>
    %60 = tpu.matmul %57, %59, %cst_58 {dimension_numbers = #tpu.dot_dimension_numbers<[1], [0], [0], [1], [0, 0, 1, 1], [], []>} : vector<64x4xbf16>, vector<4x8xbf16>, vector<64x8xf32> -> vector<64x8xf32>
    %61 = arith.addf %54, %60 : vector<64x8xf32>
    %c2_59 = arith.constant 2 : index
    %c2_60 = arith.constant 2 : index
    %c0_61 = arith.constant 0 : index
    %62 = vector.load %arg6[%c2_59, %c2_60, %c0_61] : memref<10x10x4xf32, #tpu.memory_space<vmem>>, vector<8x8x4xf32>
    %63 = vector.shape_cast %62 : vector<8x8x4xf32> to vector<64x4xf32>
    %64 = arith.truncf %63 : vector<64x4xf32> to vector<64x4xbf16>
    %c8 = arith.constant 8 : index
    %c0_62 = arith.constant 0 : index
    %c0_63 = arith.constant 0 : index
    %65 = vector.load %arg2[%c8, %c0_62, %c0_63] : memref<9x4x8xbf16, #tpu.memory_space<vmem>>, vector<1x4x8xbf16>
    %66 = vector.shape_cast %65 : vector<1x4x8xbf16> to vector<4x8xbf16>
    %cst_64 = arith.constant dense<0.000000e+00> : vector<64x8xf32>
    %67 = tpu.matmul %64, %66, %cst_64 {dimension_numbers = #tpu.dot_dimension_numbers<[1], [0], [0], [1], [0, 0, 1, 1], [], []>} : vector<64x4xbf16>, vector<4x8xbf16>, vector<64x8xf32> -> vector<64x8xf32>
    %68 = arith.addf %61, %67 : vector<64x8xf32>
    %c0_65 = arith.constant 0 : index
    %c0_66 = arith.constant 0 : index
    %69 = vector.load %arg3[%c0_65, %c0_66] : memref<1x8xf32, #tpu.memory_space<vmem>>, vector<1x8xf32>
    %70 = vector.broadcast %69 : vector<1x8xf32> to vector<64x8xf32>
    %71 = arith.mulf %68, %70 : vector<64x8xf32>
    %c0_67 = arith.constant 0 : index
    %c0_68 = arith.constant 0 : index
    %72 = vector.load %arg4[%c0_67, %c0_68] : memref<1x8xf32, #tpu.memory_space<vmem>>, vector<1x8xf32>
    %73 = vector.broadcast %72 : vector<1x8xf32> to vector<64x8xf32>
    %74 = arith.addf %71, %73 : vector<64x8xf32>
    %75 = vector.shape_cast %74 : vector<64x8xf32> to vector<8x8x8xf32>
    %c0_69 = arith.constant 0 : index
    %c0_70 = arith.constant 0 : index
    %c0_71 = arith.constant 0 : index
    %c0_72 = arith.constant 0 : index
    %76 = vector.load %arg5[%c0_69, %c0_70, %c0_71, %c0_72] : memref<1x8x8x8xf32, #tpu.memory_space<vmem>>, vector<1x8x8x8xf32>
    %77 = vector.shape_cast %76 : vector<1x8x8x8xf32> to vector<8x8x8xf32>
    %78 = vector.shape_cast %75 : vector<8x8x8xf32> to vector<1x8x8x8xf32>
    tpu.vector_store %arg5[%c0_69, %c0_70, %c0_71, %c0_72], %78 {strides = array<i32>} : memref<1x8x8x8xf32, #tpu.memory_space<vmem>>, vector<1x8x8x8xf32>,
    return
  }
  func.func @transform_0(%arg0: i32) -> (i32, i32, i32, i32) {
    %c0_i32 = arith.constant 0 : i32
    %c0_i32_0 = arith.constant 0 : i32
    %c0_i32_1 = arith.constant 0 : i32
    %c0_i32_2 = arith.constant 0 : i32
    return %arg0, %c0_i32, %c0_i32_0, %c0_i32_1 : i32, i32, i32, i32
  }
  func.func @transform_1(%arg0: i32) -> (i32, i32, i32) {
    %c0_i32 = arith.constant 0 : i32
    %c0_i32_0 = arith.constant 0 : i32
    %c0_i32_1 = arith.constant 0 : i32
    %c0_i32_2 = arith.constant 0 : i32
    return %c0_i32, %c0_i32_0, %c0_i32_1 : i32, i32, i32
  }
  func.func @transform_2(%arg0: i32) -> (i32, i32) {
    %c0_i32 = arith.constant 0 : i32
    %c0_i32_0 = arith.constant 0 : i32
    %c0_i32_1 = arith.constant 0 : i32
    return %c0_i32, %c0_i32_0 : i32, i32
  }
  func.func @transform_3(%arg0: i32) -> (i32, i32) {
    %c0_i32 = arith.constant 0 : i32
    %c0_i32_0 = arith.constant 0 : i32
    %c0_i32_1 = arith.constant 0 : i32
    return %c0_i32, %c0_i32_0 : i32, i32
  }
  func.func @transform_4(%arg0: i32) -> (i32, i32, i32, i32) {
    %c0_i32 = arith.constant 0 : i32
    %c0_i32_0 = arith.constant 0 : i32
    %c0_i32_1 = arith.constant 0 : i32
    %c0_i32_2 = arith.constant 0 : i32
    return %arg0, %c0_i32, %c0_i32_0, %c0_i32_1 : i32, i32, i32, i32
  }
}

module attributes {stable_mosaic.version = 11 : i64} {
  func.func @_deform_sample_kernel(%arg0: i32, %arg1: memref<8x8x8xf32, #tpu.memory_space<vmem>>, %arg2: memref<8x1x64xf32, #tpu.memory_space<vmem>>, %arg3: memref<8x1x64xf32, #tpu.memory_space<vmem>>, %arg4: memref<8x1x64xf32, #tpu.memory_space<vmem>>) attributes {dimension_semantics = [#tpu.dimension_semantics<parallel>], iteration_bounds = array<i64: 1>, scalar_prefetch = 0 : i64, scratch_operands = 0 : i64, tpu.core_type = #tpu.core_type<tc>, window_params = [{transform_indices = @transform_0, window_bounds = array<i64: 8, 8, 8>}, {transform_indices = @transform_1, window_bounds = array<i64: 8, 1, 64>}, {transform_indices = @transform_2, window_bounds = array<i64: 8, 1, 64>}, {transform_indices = @transform_3, window_bounds = array<i64: 8, 1, 64>}]} {
    %c0 = arith.constant 0 : index
    %c0_0 = arith.constant 0 : index
    %c0_1 = arith.constant 0 : index
    %0 = vector.load %arg1[%c0, %c0_0, %c0_1] : memref<8x8x8xf32, #tpu.memory_space<vmem>>, vector<8x8x8xf32>
    %c0_2 = arith.constant 0 : index
    %c0_3 = arith.constant 0 : index
    %c0_4 = arith.constant 0 : index
    %1 = vector.load %arg2[%c0_2, %c0_3, %c0_4] : memref<8x1x64xf32, #tpu.memory_space<vmem>>, vector<8x1x64xf32>
    %cst = arith.constant 0.000000e+00 : f32
    %cst_5 = arith.constant 7.000000e+00 : f32
    %2 = vector.broadcast %cst : f32 to vector<8x1x64xf32>
    %3 = arith.maximumf %2, %1 : vector<8x1x64xf32>
    %4 = vector.broadcast %cst_5 : f32 to vector<8x1x64xf32>
    %5 = arith.minimumf %4, %3 : vector<8x1x64xf32>
    %c0_6 = arith.constant 0 : index
    %c0_7 = arith.constant 0 : index
    %c0_8 = arith.constant 0 : index
    %6 = vector.load %arg3[%c0_6, %c0_7, %c0_8] : memref<8x1x64xf32, #tpu.memory_space<vmem>>, vector<8x1x64xf32>
    %cst_9 = arith.constant 0.000000e+00 : f32
    %cst_10 = arith.constant 7.000000e+00 : f32
    %7 = vector.broadcast %cst_9 : f32 to vector<8x1x64xf32>
    %8 = arith.maximumf %7, %6 : vector<8x1x64xf32>
    %9 = vector.broadcast %cst_10 : f32 to vector<8x1x64xf32>
    %10 = arith.minimumf %9, %8 : vector<8x1x64xf32>
    %11 = math.floor %5 : vector<8x1x64xf32>
    %12 = math.ceil %5 : vector<8x1x64xf32>
    %13 = math.floor %10 : vector<8x1x64xf32>
    %14 = math.ceil %10 : vector<8x1x64xf32>
    %15 = arith.subf %5, %11 : vector<8x1x64xf32>
    %16 = arith.subf %10, %13 : vector<8x1x64xf32>
    %17 = arith.fptosi %11 : vector<8x1x64xf32> to vector<8x1x64xi32>
    %18 = arith.fptosi %12 : vector<8x1x64xf32> to vector<8x1x64xi32>
    %19 = arith.fptosi %13 : vector<8x1x64xf32> to vector<8x1x64xi32>
    %20 = arith.fptosi %14 : vector<8x1x64xf32> to vector<8x1x64xi32>
    %21 = tpu.iota {dimensions = array<i32: 1>} : vector<8x8x64xi32>
    %22 = tpu.iota {dimensions = array<i32: 1>} : vector<8x8x64xi32>
    %23 = vector.broadcast %17 : vector<8x1x64xi32> to vector<8x8x64xi32>
    %24 = arith.cmpi eq, %21, %23 : vector<8x8x64xi32>
    %cst_11 = arith.constant 1.000000e+00 : f32
    %25 = vector.broadcast %cst_11 : f32 to vector<8x1x64xf32>
    %26 = arith.subf %25, %15 : vector<8x1x64xf32>
    %cst_12 = arith.constant 0.000000e+00 : f32
    %27 = vector.shape_cast %26 : vector<8x1x64xf32> to vector<8x1x64xf32>
    %28 = vector.broadcast %27 : vector<8x1x64xf32> to vector<8x8x64xf32>
    %29 = vector.broadcast %cst_12 : f32 to vector<8x8x64xf32>
    %30 = arith.select %24, %28, %29 : vector<8x8x64xi1>, vector<8x8x64xf32>
    %31 = vector.broadcast %18 : vector<8x1x64xi32> to vector<8x8x64xi32>
    %32 = arith.cmpi eq, %21, %31 : vector<8x8x64xi32>
    %cst_13 = arith.constant 0.000000e+00 : f32
    %33 = vector.shape_cast %15 : vector<8x1x64xf32> to vector<8x1x64xf32>
    %34 = vector.broadcast %33 : vector<8x1x64xf32> to vector<8x8x64xf32>
    %35 = vector.broadcast %cst_13 : f32 to vector<8x8x64xf32>
    %36 = arith.select %32, %34, %35 : vector<8x8x64xi1>, vector<8x8x64xf32>
    %37 = arith.addf %30, %36 : vector<8x8x64xf32>
    %38 = vector.broadcast %19 : vector<8x1x64xi32> to vector<8x8x64xi32>
    %39 = arith.cmpi eq, %22, %38 : vector<8x8x64xi32>
    %cst_14 = arith.constant 1.000000e+00 : f32
    %40 = vector.broadcast %cst_14 : f32 to vector<8x1x64xf32>
    %41 = arith.subf %40, %16 : vector<8x1x64xf32>
    %cst_15 = arith.constant 0.000000e+00 : f32
    %42 = vector.shape_cast %41 : vector<8x1x64xf32> to vector<8x1x64xf32>
    %43 = vector.broadcast %42 : vector<8x1x64xf32> to vector<8x8x64xf32>
    %44 = vector.broadcast %cst_15 : f32 to vector<8x8x64xf32>
    %45 = arith.select %39, %43, %44 : vector<8x8x64xi1>, vector<8x8x64xf32>
    %46 = vector.broadcast %20 : vector<8x1x64xi32> to vector<8x8x64xi32>
    %47 = arith.cmpi eq, %22, %46 : vector<8x8x64xi32>
    %cst_16 = arith.constant 0.000000e+00 : f32
    %48 = vector.shape_cast %16 : vector<8x1x64xf32> to vector<8x1x64xf32>
    %49 = vector.broadcast %48 : vector<8x1x64xf32> to vector<8x8x64xf32>
    %50 = vector.broadcast %cst_16 : f32 to vector<8x8x64xf32>
    %51 = arith.select %47, %49, %50 : vector<8x8x64xi1>, vector<8x8x64xf32>
    %52 = arith.addf %45, %51 : vector<8x8x64xf32>
    "tpu.trace_start"() <{level = 10 : i32, message = "chw,chp->cwp"}> : () -> ()
    %cst_17 = arith.constant dense<0.000000e+00> : vector<8x8x64xf32>
    %53 = tpu.matmul %0, %37, %cst_17 {dimension_numbers = #tpu.dot_dimension_numbers<[1], [1], [2], [2], [0, 0, 0, 2, 1, 2], [0], [0]>} : vector<8x8x8xf32>, vector<8x8x64xf32>, vector<8x8x64xf32> -> vector<8x8x64xf32>
    "tpu.trace_stop"() : () -> ()
    %54 = arith.mulf %53, %52 : vector<8x8x64xf32>
    %cst_18 = arith.constant dense<0.000000e+00> : vector<8x64xf32>
    %55 = vector.multi_reduction <add>, %54, %cst_18 [1] : vector<8x8x64xf32> to vector<8x64xf32>
    %56 = vector.shape_cast %55 : vector<8x64xf32> to vector<8x1x64xf32>
    %c0_19 = arith.constant 0 : index
    %c0_20 = arith.constant 0 : index
    %c0_21 = arith.constant 0 : index
    %57 = vector.load %arg4[%c0_19, %c0_20, %c0_21] : memref<8x1x64xf32, #tpu.memory_space<vmem>>, vector<8x1x64xf32>
    tpu.vector_store %arg4[%c0_19, %c0_20, %c0_21], %56 {strides = array<i32>} : memref<8x1x64xf32, #tpu.memory_space<vmem>>, vector<8x1x64xf32>,
    return
  }
  func.func @transform_0(%arg0: i32) -> (i32, i32, i32) {
    %c0_i32 = arith.constant 0 : i32
    %c0_i32_0 = arith.constant 0 : i32
    %c0_i32_1 = arith.constant 0 : i32
    return %arg0, %c0_i32, %c0_i32_0 : i32, i32, i32
  }
  func.func @transform_1(%arg0: i32) -> (i32, i32, i32) {
    %c0_i32 = arith.constant 0 : i32
    %c0_i32_0 = arith.constant 0 : i32
    %c0_i32_1 = arith.constant 0 : i32
    return %arg0, %c0_i32, %c0_i32_0 : i32, i32, i32
  }
  func.func @transform_2(%arg0: i32) -> (i32, i32, i32) {
    %c0_i32 = arith.constant 0 : i32
    %c0_i32_0 = arith.constant 0 : i32
    %c0_i32_1 = arith.constant 0 : i32
    return %arg0, %c0_i32, %c0_i32_0 : i32, i32, i32
  }
  func.func @transform_3(%arg0: i32) -> (i32, i32, i32) {
    %c0_i32 = arith.constant 0 : i32
    %c0_i32_0 = arith.constant 0 : i32
    %c0_i32_1 = arith.constant 0 : i32
    return %arg0, %c0_i32, %c0_i32_0 : i32, i32, i32
  }
}

module attributes {stable_mosaic.version = 11 : i64} {
  func.func @_conv1x1_bn_res_kernel(%arg0: i32, %arg1: memref<128x4xf32, #tpu.memory_space<vmem>>, %arg2: memref<4x16xbf16, #tpu.memory_space<vmem>>, %arg3: memref<1x16xf32, #tpu.memory_space<vmem>>, %arg4: memref<1x16xf32, #tpu.memory_space<vmem>>, %arg5: memref<128x16xf32, #tpu.memory_space<vmem>>, %arg6: memref<128x16xf32, #tpu.memory_space<vmem>>) attributes {dimension_semantics = [#tpu.dimension_semantics<parallel>], iteration_bounds = array<i64: 1>, scalar_prefetch = 0 : i64, scratch_operands = 0 : i64, tpu.core_type = #tpu.core_type<tc>, window_params = [{transform_indices = @transform_0, window_bounds = array<i64: 128, 4>}, {pipeline_mode = #tpu.pipeline_mode<synchronous>, transform_indices = @transform_1, window_bounds = array<i64: 4, 16>}, {pipeline_mode = #tpu.pipeline_mode<synchronous>, transform_indices = @transform_2, window_bounds = array<i64: 1, 16>}, {pipeline_mode = #tpu.pipeline_mode<synchronous>, transform_indices = @transform_3, window_bounds = array<i64: 1, 16>}, {transform_indices = @transform_4, window_bounds = array<i64: 128, 16>}, {transform_indices = @transform_5, window_bounds = array<i64: 128, 16>}]} {
    %c0 = arith.constant 0 : index
    %c0_0 = arith.constant 0 : index
    %0 = vector.load %arg1[%c0, %c0_0] : memref<128x4xf32, #tpu.memory_space<vmem>>, vector<128x4xf32>
    %1 = arith.truncf %0 : vector<128x4xf32> to vector<128x4xbf16>
    %c0_1 = arith.constant 0 : index
    %c0_2 = arith.constant 0 : index
    %2 = vector.load %arg2[%c0_1, %c0_2] : memref<4x16xbf16, #tpu.memory_space<vmem>>, vector<4x16xbf16>
    %cst = arith.constant dense<0.000000e+00> : vector<128x16xf32>
    %3 = tpu.matmul %1, %2, %cst {dimension_numbers = #tpu.dot_dimension_numbers<[1], [0], [0], [1], [0, 0, 1, 1], [], []>} : vector<128x4xbf16>, vector<4x16xbf16>, vector<128x16xf32> -> vector<128x16xf32>
    %c0_3 = arith.constant 0 : index
    %c0_4 = arith.constant 0 : index
    %4 = vector.load %arg3[%c0_3, %c0_4] : memref<1x16xf32, #tpu.memory_space<vmem>>, vector<1x16xf32>
    %5 = vector.broadcast %4 : vector<1x16xf32> to vector<128x16xf32>
    %6 = arith.mulf %3, %5 : vector<128x16xf32>
    %c0_5 = arith.constant 0 : index
    %c0_6 = arith.constant 0 : index
    %7 = vector.load %arg4[%c0_5, %c0_6] : memref<1x16xf32, #tpu.memory_space<vmem>>, vector<1x16xf32>
    %8 = vector.broadcast %7 : vector<1x16xf32> to vector<128x16xf32>
    %9 = arith.addf %6, %8 : vector<128x16xf32>
    %c0_7 = arith.constant 0 : index
    %c0_8 = arith.constant 0 : index
    %10 = vector.load %arg5[%c0_7, %c0_8] : memref<128x16xf32, #tpu.memory_space<vmem>>, vector<128x16xf32>
    %11 = arith.addf %9, %10 : vector<128x16xf32>
    %cst_9 = arith.constant 0.000000e+00 : f32
    %12 = vector.broadcast %cst_9 : f32 to vector<128x16xf32>
    %13 = arith.maximumf %11, %12 : vector<128x16xf32>
    %c0_10 = arith.constant 0 : index
    %c0_11 = arith.constant 0 : index
    %14 = vector.load %arg6[%c0_10, %c0_11] : memref<128x16xf32, #tpu.memory_space<vmem>>, vector<128x16xf32>
    tpu.vector_store %arg6[%c0_10, %c0_11], %13 {strides = array<i32>} : memref<128x16xf32, #tpu.memory_space<vmem>>, vector<128x16xf32>,
    return
  }
  func.func @transform_0(%arg0: i32) -> (i32, i32) {
    %c0_i32 = arith.constant 0 : i32
    %c0_i32_0 = arith.constant 0 : i32
    return %arg0, %c0_i32 : i32, i32
  }
  func.func @transform_1(%arg0: i32) -> (i32, i32) {
    %c0_i32 = arith.constant 0 : i32
    %c0_i32_0 = arith.constant 0 : i32
    %c0_i32_1 = arith.constant 0 : i32
    return %c0_i32, %c0_i32_0 : i32, i32
  }
  func.func @transform_2(%arg0: i32) -> (i32, i32) {
    %c0_i32 = arith.constant 0 : i32
    %c0_i32_0 = arith.constant 0 : i32
    %c0_i32_1 = arith.constant 0 : i32
    return %c0_i32, %c0_i32_0 : i32, i32
  }
  func.func @transform_3(%arg0: i32) -> (i32, i32) {
    %c0_i32 = arith.constant 0 : i32
    %c0_i32_0 = arith.constant 0 : i32
    %c0_i32_1 = arith.constant 0 : i32
    return %c0_i32, %c0_i32_0 : i32, i32
  }
  func.func @transform_4(%arg0: i32) -> (i32, i32) {
    %c0_i32 = arith.constant 0 : i32
    %c0_i32_0 = arith.constant 0 : i32
    return %arg0, %c0_i32 : i32, i32
  }
  func.func @transform_5(%arg0: i32) -> (i32, i32) {
    %c0_i32 = arith.constant 0 : i32
    %c0_i32_0 = arith.constant 0 : i32
    return %arg0, %c0_i32 : i32, i32
  }
}

module attributes {stable_mosaic.version = 11 : i64} {
  func.func @_conv3x3_bn_kernel(%arg0: i32, %arg1: memref<1x8x8x4xf32, #tpu.memory_space<vmem>>, %arg2: memref<9x4x4xbf16, #tpu.memory_space<vmem>>, %arg3: memref<1x4xf32, #tpu.memory_space<vmem>>, %arg4: memref<1x4xf32, #tpu.memory_space<vmem>>, %arg5: memref<1x8x8x4xf32, #tpu.memory_space<vmem>>, %arg6: memref<10x10x4xf32, #tpu.memory_space<vmem>>) attributes {dimension_semantics = [#tpu.dimension_semantics<parallel>], iteration_bounds = array<i64: 2>, scalar_prefetch = 0 : i64, scratch_operands = 1 : i64, tpu.core_type = #tpu.core_type<tc>, window_params = [{transform_indices = @transform_0, window_bounds = array<i64: 1, 8, 8, 4>}, {pipeline_mode = #tpu.pipeline_mode<synchronous>, transform_indices = @transform_1, window_bounds = array<i64: 9, 4, 4>}, {pipeline_mode = #tpu.pipeline_mode<synchronous>, transform_indices = @transform_2, window_bounds = array<i64: 1, 4>}, {pipeline_mode = #tpu.pipeline_mode<synchronous>, transform_indices = @transform_3, window_bounds = array<i64: 1, 4>}, {transform_indices = @transform_4, window_bounds = array<i64: 1, 8, 8, 4>}]} {
    %cst = arith.constant 0.000000e+00 : f32
    %0 = vector.broadcast %cst : f32 to vector<10x10x4xf32>
    %c0 = arith.constant 0 : index
    %c0_0 = arith.constant 0 : index
    %c0_1 = arith.constant 0 : index
    %1 = vector.load %arg6[%c0, %c0_0, %c0_1] : memref<10x10x4xf32, #tpu.memory_space<vmem>>, vector<10x10x4xf32>
    tpu.vector_store %arg6[%c0, %c0_0, %c0_1], %0 {strides = array<i32>} : memref<10x10x4xf32, #tpu.memory_space<vmem>>, vector<10x10x4xf32>,
    %c0_2 = arith.constant 0 : index
    %c0_3 = arith.constant 0 : index
    %c0_4 = arith.constant 0 : index
    %c0_5 = arith.constant 0 : index
    %2 = vector.load %arg1[%c0_2, %c0_3, %c0_4, %c0_5] : memref<1x8x8x4xf32, #tpu.memory_space<vmem>>, vector<1x8x8x4xf32>
    %3 = vector.shape_cast %2 : vector<1x8x8x4xf32> to vector<8x8x4xf32>
    %c1 = arith.constant 1 : index
    %c1_6 = arith.constant 1 : index
    %c0_7 = arith.constant 0 : index
    %4 = vector.load %arg6[%c1, %c1_6, %c0_7] : memref<10x10x4xf32, #tpu.memory_space<vmem>>, vector<8x8x4xf32>
    tpu.vector_store %arg6[%c1, %c1_6, %c0_7], %3 {strides = array<i32>} : memref<10x10x4xf32, #tpu.memory_space<vmem>>, vector<8x8x4xf32>,
    %cst_8 = arith.constant 0.000000e+00 : f32
    %5 = vector.broadcast %cst_8 : f32 to vector<64x4xf32>
    %c0_9 = arith.constant 0 : index
    %c0_10 = arith.constant 0 : index
    %c0_11 = arith.constant 0 : index
    %6 = vector.load %arg6[%c0_9, %c0_10, %c0_11] : memref<10x10x4xf32, #tpu.memory_space<vmem>>, vector<8x8x4xf32>
    %7 = vector.shape_cast %6 : vector<8x8x4xf32> to vector<64x4xf32>
    %8 = arith.truncf %7 : vector<64x4xf32> to vector<64x4xbf16>
    %c0_12 = arith.constant 0 : index
    %c0_13 = arith.constant 0 : index
    %c0_14 = arith.constant 0 : index
    %9 = vector.load %arg2[%c0_12, %c0_13, %c0_14] : memref<9x4x4xbf16, #tpu.memory_space<vmem>>, vector<1x4x4xbf16>
    %10 = vector.shape_cast %9 : vector<1x4x4xbf16> to vector<4x4xbf16>
    %cst_15 = arith.constant dense<0.000000e+00> : vector<64x4xf32>
    %11 = tpu.matmul %8, %10, %cst_15 {dimension_numbers = #tpu.dot_dimension_numbers<[1], [0], [0], [1], [0, 0, 1, 1], [], []>} : vector<64x4xbf16>, vector<4x4xbf16>, vector<64x4xf32> -> vector<64x4xf32>
    %12 = arith.addf %5, %11 : vector<64x4xf32>
    %c0_16 = arith.constant 0 : index
    %c1_17 = arith.constant 1 : index
    %c0_18 = arith.constant 0 : index
    %13 = vector.load %arg6[%c0_16, %c1_17, %c0_18] : memref<10x10x4xf32, #tpu.memory_space<vmem>>, vector<8x8x4xf32>
    %14 = vector.shape_cast %13 : vector<8x8x4xf32> to vector<64x4xf32>
    %15 = arith.truncf %14 : vector<64x4xf32> to vector<64x4xbf16>
    %c1_19 = arith.constant 1 : index
    %c0_20 = arith.constant 0 : index
    %c0_21 = arith.constant 0 : index
    %16 = vector.load %arg2[%c1_19, %c0_20, %c0_21] : memref<9x4x4xbf16, #tpu.memory_space<vmem>>, vector<1x4x4xbf16>
    %17 = vector.shape_cast %16 : vector<1x4x4xbf16> to vector<4x4xbf16>
    %cst_22 = arith.constant dense<0.000000e+00> : vector<64x4xf32>
    %18 = tpu.matmul %15, %17, %cst_22 {dimension_numbers = #tpu.dot_dimension_numbers<[1], [0], [0], [1], [0, 0, 1, 1], [], []>} : vector<64x4xbf16>, vector<4x4xbf16>, vector<64x4xf32> -> vector<64x4xf32>
    %19 = arith.addf %12, %18 : vector<64x4xf32>
    %c0_23 = arith.constant 0 : index
    %c2 = arith.constant 2 : index
    %c0_24 = arith.constant 0 : index
    %20 = vector.load %arg6[%c0_23, %c2, %c0_24] : memref<10x10x4xf32, #tpu.memory_space<vmem>>, vector<8x8x4xf32>
    %21 = vector.shape_cast %20 : vector<8x8x4xf32> to vector<64x4xf32>
    %22 = arith.truncf %21 : vector<64x4xf32> to vector<64x4xbf16>
    %c2_25 = arith.constant 2 : index
    %c0_26 = arith.constant 0 : index
    %c0_27 = arith.constant 0 : index
    %23 = vector.load %arg2[%c2_25, %c0_26, %c0_27] : memref<9x4x4xbf16, #tpu.memory_space<vmem>>, vector<1x4x4xbf16>
    %24 = vector.shape_cast %23 : vector<1x4x4xbf16> to vector<4x4xbf16>
    %cst_28 = arith.constant dense<0.000000e+00> : vector<64x4xf32>
    %25 = tpu.matmul %22, %24, %cst_28 {dimension_numbers = #tpu.dot_dimension_numbers<[1], [0], [0], [1], [0, 0, 1, 1], [], []>} : vector<64x4xbf16>, vector<4x4xbf16>, vector<64x4xf32> -> vector<64x4xf32>
    %26 = arith.addf %19, %25 : vector<64x4xf32>
    %c1_29 = arith.constant 1 : index
    %c0_30 = arith.constant 0 : index
    %c0_31 = arith.constant 0 : index
    %27 = vector.load %arg6[%c1_29, %c0_30, %c0_31] : memref<10x10x4xf32, #tpu.memory_space<vmem>>, vector<8x8x4xf32>
    %28 = vector.shape_cast %27 : vector<8x8x4xf32> to vector<64x4xf32>
    %29 = arith.truncf %28 : vector<64x4xf32> to vector<64x4xbf16>
    %c3 = arith.constant 3 : index
    %c0_32 = arith.constant 0 : index
    %c0_33 = arith.constant 0 : index
    %30 = vector.load %arg2[%c3, %c0_32, %c0_33] : memref<9x4x4xbf16, #tpu.memory_space<vmem>>, vector<1x4x4xbf16>
    %31 = vector.shape_cast %30 : vector<1x4x4xbf16> to vector<4x4xbf16>
    %cst_34 = arith.constant dense<0.000000e+00> : vector<64x4xf32>
    %32 = tpu.matmul %29, %31, %cst_34 {dimension_numbers = #tpu.dot_dimension_numbers<[1], [0], [0], [1], [0, 0, 1, 1], [], []>} : vector<64x4xbf16>, vector<4x4xbf16>, vector<64x4xf32> -> vector<64x4xf32>
    %33 = arith.addf %26, %32 : vector<64x4xf32>
    %c1_35 = arith.constant 1 : index
    %c1_36 = arith.constant 1 : index
    %c0_37 = arith.constant 0 : index
    %34 = vector.load %arg6[%c1_35, %c1_36, %c0_37] : memref<10x10x4xf32, #tpu.memory_space<vmem>>, vector<8x8x4xf32>
    %35 = vector.shape_cast %34 : vector<8x8x4xf32> to vector<64x4xf32>
    %36 = arith.truncf %35 : vector<64x4xf32> to vector<64x4xbf16>
    %c4 = arith.constant 4 : index
    %c0_38 = arith.constant 0 : index
    %c0_39 = arith.constant 0 : index
    %37 = vector.load %arg2[%c4, %c0_38, %c0_39] : memref<9x4x4xbf16, #tpu.memory_space<vmem>>, vector<1x4x4xbf16>
    %38 = vector.shape_cast %37 : vector<1x4x4xbf16> to vector<4x4xbf16>
    %cst_40 = arith.constant dense<0.000000e+00> : vector<64x4xf32>
    %39 = tpu.matmul %36, %38, %cst_40 {dimension_numbers = #tpu.dot_dimension_numbers<[1], [0], [0], [1], [0, 0, 1, 1], [], []>} : vector<64x4xbf16>, vector<4x4xbf16>, vector<64x4xf32> -> vector<64x4xf32>
    %40 = arith.addf %33, %39 : vector<64x4xf32>
    %c1_41 = arith.constant 1 : index
    %c2_42 = arith.constant 2 : index
    %c0_43 = arith.constant 0 : index
    %41 = vector.load %arg6[%c1_41, %c2_42, %c0_43] : memref<10x10x4xf32, #tpu.memory_space<vmem>>, vector<8x8x4xf32>
    %42 = vector.shape_cast %41 : vector<8x8x4xf32> to vector<64x4xf32>
    %43 = arith.truncf %42 : vector<64x4xf32> to vector<64x4xbf16>
    %c5 = arith.constant 5 : index
    %c0_44 = arith.constant 0 : index
    %c0_45 = arith.constant 0 : index
    %44 = vector.load %arg2[%c5, %c0_44, %c0_45] : memref<9x4x4xbf16, #tpu.memory_space<vmem>>, vector<1x4x4xbf16>
    %45 = vector.shape_cast %44 : vector<1x4x4xbf16> to vector<4x4xbf16>
    %cst_46 = arith.constant dense<0.000000e+00> : vector<64x4xf32>
    %46 = tpu.matmul %43, %45, %cst_46 {dimension_numbers = #tpu.dot_dimension_numbers<[1], [0], [0], [1], [0, 0, 1, 1], [], []>} : vector<64x4xbf16>, vector<4x4xbf16>, vector<64x4xf32> -> vector<64x4xf32>
    %47 = arith.addf %40, %46 : vector<64x4xf32>
    %c2_47 = arith.constant 2 : index
    %c0_48 = arith.constant 0 : index
    %c0_49 = arith.constant 0 : index
    %48 = vector.load %arg6[%c2_47, %c0_48, %c0_49] : memref<10x10x4xf32, #tpu.memory_space<vmem>>, vector<8x8x4xf32>
    %49 = vector.shape_cast %48 : vector<8x8x4xf32> to vector<64x4xf32>
    %50 = arith.truncf %49 : vector<64x4xf32> to vector<64x4xbf16>
    %c6 = arith.constant 6 : index
    %c0_50 = arith.constant 0 : index
    %c0_51 = arith.constant 0 : index
    %51 = vector.load %arg2[%c6, %c0_50, %c0_51] : memref<9x4x4xbf16, #tpu.memory_space<vmem>>, vector<1x4x4xbf16>
    %52 = vector.shape_cast %51 : vector<1x4x4xbf16> to vector<4x4xbf16>
    %cst_52 = arith.constant dense<0.000000e+00> : vector<64x4xf32>
    %53 = tpu.matmul %50, %52, %cst_52 {dimension_numbers = #tpu.dot_dimension_numbers<[1], [0], [0], [1], [0, 0, 1, 1], [], []>} : vector<64x4xbf16>, vector<4x4xbf16>, vector<64x4xf32> -> vector<64x4xf32>
    %54 = arith.addf %47, %53 : vector<64x4xf32>
    %c2_53 = arith.constant 2 : index
    %c1_54 = arith.constant 1 : index
    %c0_55 = arith.constant 0 : index
    %55 = vector.load %arg6[%c2_53, %c1_54, %c0_55] : memref<10x10x4xf32, #tpu.memory_space<vmem>>, vector<8x8x4xf32>
    %56 = vector.shape_cast %55 : vector<8x8x4xf32> to vector<64x4xf32>
    %57 = arith.truncf %56 : vector<64x4xf32> to vector<64x4xbf16>
    %c7 = arith.constant 7 : index
    %c0_56 = arith.constant 0 : index
    %c0_57 = arith.constant 0 : index
    %58 = vector.load %arg2[%c7, %c0_56, %c0_57] : memref<9x4x4xbf16, #tpu.memory_space<vmem>>, vector<1x4x4xbf16>
    %59 = vector.shape_cast %58 : vector<1x4x4xbf16> to vector<4x4xbf16>
    %cst_58 = arith.constant dense<0.000000e+00> : vector<64x4xf32>
    %60 = tpu.matmul %57, %59, %cst_58 {dimension_numbers = #tpu.dot_dimension_numbers<[1], [0], [0], [1], [0, 0, 1, 1], [], []>} : vector<64x4xbf16>, vector<4x4xbf16>, vector<64x4xf32> -> vector<64x4xf32>
    %61 = arith.addf %54, %60 : vector<64x4xf32>
    %c2_59 = arith.constant 2 : index
    %c2_60 = arith.constant 2 : index
    %c0_61 = arith.constant 0 : index
    %62 = vector.load %arg6[%c2_59, %c2_60, %c0_61] : memref<10x10x4xf32, #tpu.memory_space<vmem>>, vector<8x8x4xf32>
    %63 = vector.shape_cast %62 : vector<8x8x4xf32> to vector<64x4xf32>
    %64 = arith.truncf %63 : vector<64x4xf32> to vector<64x4xbf16>
    %c8 = arith.constant 8 : index
    %c0_62 = arith.constant 0 : index
    %c0_63 = arith.constant 0 : index
    %65 = vector.load %arg2[%c8, %c0_62, %c0_63] : memref<9x4x4xbf16, #tpu.memory_space<vmem>>, vector<1x4x4xbf16>
    %66 = vector.shape_cast %65 : vector<1x4x4xbf16> to vector<4x4xbf16>
    %cst_64 = arith.constant dense<0.000000e+00> : vector<64x4xf32>
    %67 = tpu.matmul %64, %66, %cst_64 {dimension_numbers = #tpu.dot_dimension_numbers<[1], [0], [0], [1], [0, 0, 1, 1], [], []>} : vector<64x4xbf16>, vector<4x4xbf16>, vector<64x4xf32> -> vector<64x4xf32>
    %68 = arith.addf %61, %67 : vector<64x4xf32>
    %c0_65 = arith.constant 0 : index
    %c0_66 = arith.constant 0 : index
    %69 = vector.load %arg3[%c0_65, %c0_66] : memref<1x4xf32, #tpu.memory_space<vmem>>, vector<1x4xf32>
    %70 = vector.broadcast %69 : vector<1x4xf32> to vector<64x4xf32>
    %71 = arith.mulf %68, %70 : vector<64x4xf32>
    %c0_67 = arith.constant 0 : index
    %c0_68 = arith.constant 0 : index
    %72 = vector.load %arg4[%c0_67, %c0_68] : memref<1x4xf32, #tpu.memory_space<vmem>>, vector<1x4xf32>
    %73 = vector.broadcast %72 : vector<1x4xf32> to vector<64x4xf32>
    %74 = arith.addf %71, %73 : vector<64x4xf32>
    %cst_69 = arith.constant 0.000000e+00 : f32
    %75 = vector.broadcast %cst_69 : f32 to vector<64x4xf32>
    %76 = arith.maximumf %74, %75 : vector<64x4xf32>
    %77 = vector.shape_cast %76 : vector<64x4xf32> to vector<8x8x4xf32>
    %c0_70 = arith.constant 0 : index
    %c0_71 = arith.constant 0 : index
    %c0_72 = arith.constant 0 : index
    %c0_73 = arith.constant 0 : index
    %78 = vector.load %arg5[%c0_70, %c0_71, %c0_72, %c0_73] : memref<1x8x8x4xf32, #tpu.memory_space<vmem>>, vector<1x8x8x4xf32>
    %79 = vector.shape_cast %78 : vector<1x8x8x4xf32> to vector<8x8x4xf32>
    %80 = vector.shape_cast %77 : vector<8x8x4xf32> to vector<1x8x8x4xf32>
    tpu.vector_store %arg5[%c0_70, %c0_71, %c0_72, %c0_73], %80 {strides = array<i32>} : memref<1x8x8x4xf32, #tpu.memory_space<vmem>>, vector<1x8x8x4xf32>,
    return
  }
  func.func @transform_0(%arg0: i32) -> (i32, i32, i32, i32) {
    %c0_i32 = arith.constant 0 : i32
    %c0_i32_0 = arith.constant 0 : i32
    %c0_i32_1 = arith.constant 0 : i32
    %c0_i32_2 = arith.constant 0 : i32
    return %arg0, %c0_i32, %c0_i32_0, %c0_i32_1 : i32, i32, i32, i32
  }
  func.func @transform_1(%arg0: i32) -> (i32, i32, i32) {
    %c0_i32 = arith.constant 0 : i32
    %c0_i32_0 = arith.constant 0 : i32
    %c0_i32_1 = arith.constant 0 : i32
    %c0_i32_2 = arith.constant 0 : i32
    return %c0_i32, %c0_i32_0, %c0_i32_1 : i32, i32, i32
  }
  func.func @transform_2(%arg0: i32) -> (i32, i32) {
    %c0_i32 = arith.constant 0 : i32
    %c0_i32_0 = arith.constant 0 : i32
    %c0_i32_1 = arith.constant 0 : i32
    return %c0_i32, %c0_i32_0 : i32, i32
  }
  func.func @transform_3(%arg0: i32) -> (i32, i32) {
    %c0_i32 = arith.constant 0 : i32
    %c0_i32_0 = arith.constant 0 : i32
    %c0_i32_1 = arith.constant 0 : i32
    return %c0_i32, %c0_i32_0 : i32, i32
  }
  func.func @transform_4(%arg0: i32) -> (i32, i32, i32, i32) {
    %c0_i32 = arith.constant 0 : i32
    %c0_i32_0 = arith.constant 0 : i32
    %c0_i32_1 = arith.constant 0 : i32
    %c0_i32_2 = arith.constant 0 : i32
    return %arg0, %c0_i32, %c0_i32_0, %c0_i32_1 : i32, i32, i32, i32
  }
}

</mosaic_0001>

<bundles_post_ra>
// kernel: _lambda_.5
= control target key start
LH: loop header
LB: loop body
LE: loop exit
PB: predicated region body
PF: predicated region fallthrough
CT: control target
= control target key end

     0   :  { %9 = vsyncpa [#allocation3], 0  ;;  %s338_s15 = smov [#allocation2]   ;;  %s477_s0 = inlined_call_operand.hbm [shape: f32[128,16], index: 0, kind: input, shape index: {}]   ;;  %s478_s1 = inlined_call_operand.vmem [shape: bf16[16,4], index: 1, kind: input, shape index: {}]   ;;  %s479_s2 = inlined_call_operand.vmem [shape: f32[1,4], index: 2, kind: input, shape index: {}]   ;;  %s480_s3 = inlined_call_operand.vmem [shape: f32[1,4], index: 3, kind: input, shape index: {}]   ;;  %s481_s4 = inlined_call_operand.vmem [shape: f32[128,4], index: 4, kind: output, shape index: {}]  }
   0x1   :  { %s15_s16 = sshll.u32 %s338_s15, 4  ;;  %s314_s19 = scalar_lea.hbm %s477_s0, 2048  ;;  %s16_s16 = int_to_ptr.vmem [resolvable:$true] %s15_s16 }
   0x2   :  { %p315_p0 = scmp.ne.s32.totalorder %s477_s0, %s314_s19  ;;  %p318_p1 = scmp.lt.u32.totalorder %s314_s19, %s477_s0 }
   0x4   :  { %p320_p2 = pnand %p318_p1, %p315_p0 }
   0x6   :  { %323 = shalt.err (!%p320_p2)
}
   0x7   :  { %s324_s24 = scalar_lea.vmem %s16_s16, 2048  ;;  %p329_p4 = scmp.lt.s32.totalorder %s16_s16, %s16_s16 }
   0x8   :  { %p325_p3 = scmp.ne.s32.totalorder %s16_s16, %s324_s24  ;;  %p330_p5 = scmp.lt.s32.totalorder %s324_s24, %s324_s24 }
   0xa   :  { %p331_p6 = por %p330_p5, %p329_p4 }
   0xc   :  { %p332_p7 = pnand %p331_p6, %p325_p3 }
   0xe   :  { %335 = shalt.err (!%p332_p7)
}
   0xf   :  { %s339_s25 = smov 128   ;;  %s340_s26 = smov 8  }
  0x10   :  { %21 = dma.hbm_to_vmem [thread:$0]  %s477_s0, 2048, %s16_s16, [#allocation3], %s339_s25, %s339_s25, %s340_s26  }
  0x11   :  { %336 = dma.done.wait [#allocation3], 2048  }
  0x12   :  { %337 = vsyncadd [#allocation3], 4294965248  ;;  %v313_v0 = vld [vmem:[%s478_s1] sm:$0xff]   ;;  %v33_v2 = vld [vmem:[#allocation2 + $0x8] sm:$0xff]  ;;  %vm64_vm0 = vcmask 130048   ;;  %vm248_vm1 = vcmask 31744  }
  0x13   :  { %v32_v1 = vld [vmem:[#allocation2] sm:$0xff]  ;;  %290 = vmatprep.subr.bf16.mxu0 %v313_v0  ;;  %308 = vmatprep.subr.bf16.mxu1 %v313_v0  ;;  %v41_v5 = vld [vmem:[#allocation2 + $0x48] sm:$0xff]  ;;  %v34_v6 = vld [vmem:[#allocation2 + $0x10] sm:$0xff] }
  0x14   :  { %v40_v3 = vld [vmem:[#allocation2 + $0x40] sm:$0xff]  ;;  %v48_v4 = vpack.c.bf16 %v33_v2, %v32_v1  ;;  %v35_v7 = vld [vmem:[#allocation2 + $0x18] sm:$0xff]  ;;  %291 = vmatpush3.bf16.msra.mxu0 %v313_v0  ;;  %309 = vmatpush3.bf16.msra.mxu1 %v313_v0  ;;  %v42_v10 = vld [vmem:[#allocation2 + $0x50] sm:$0xff] }
  0x15   :  { %v52_v8 = vpack.c.bf16 %v41_v5, %v40_v3  ;;  %v49_v9 = vpack.c.bf16 %v35_v7, %v34_v6  ;;  %v43_v11 = vld [vmem:[#allocation2 + $0x58] sm:$0xff]  ;;  %v36_v12 = vld [vmem:[#allocation2 + $0x20] sm:$0xff]  ;;  %v37_v14 = vld [vmem:[#allocation2 + $0x28] sm:$0xff] }
  0x16   :  { %292 = vmatprep.mubr.msk.bf16.mxu0 %vm64_vm0, %v48_v4  ;;  %v53_v13 = vpack.c.bf16 %v43_v11, %v42_v10  ;;  %v44_v15 = vld [vmem:[#allocation2 + $0x60] sm:$0xff]  ;;  %v45_v16 = vld [vmem:[#allocation2 + $0x68] sm:$0xff]  ;;  %v50_v17 = vpack.c.bf16 %v37_v14, %v36_v12  ;;  %v38_v19 = vld [vmem:[#allocation2 + $0x30] sm:$0xff] }
  0x17   :  { %300 = vmatprep.mubr.msk.bf16.mxu1 %vm64_vm0, %v52_v8  ;;  %v54_v18 = vpack.c.bf16 %v45_v16, %v44_v15  ;;  %293 = vmatmul.mubr.msk.bf16.vlgmr.msra.gmra.mrb[0].mxu0 %vm64_vm0, %v49_v9  ;;  %v39_v20 = vld [vmem:[#allocation2 + $0x38] sm:$0xff]  ;;  %v46_v21 = vld [vmem:[#allocation2 + $0x70] sm:$0xff]  ;;  %v279_v25 = vld [vmem:[%s479_s2] ss:$0 sm:$0xff] }
  0x18   :  { %301 = vmatmul.mubr.msk.bf16.vlgmr.msra.gmra.mrb[0].mxu1 %vm64_vm0, %v53_v13  ;;  %296 = vmatprep.mubr.msk.bf16.mxu0 %vm64_vm0, %v50_v17  ;;  %v47_v22 = vld [vmem:[#allocation2 + $0x78] sm:$0xff]  ;;  %v51_v23 = vpack.c.bf16 %v39_v20, %v38_v19  ;;  %v395_v27 = vld [vmem:[%s480_s3] ss:$0 sm:$0xff] }
  0x19   :  { %304 = vmatprep.mubr.msk.bf16.mxu1 %vm64_vm0, %v54_v18  ;;  %v55_v24 = vpack.c.bf16 %v47_v22, %v46_v21 }
  0x1f   :  { %297 = vmatmul.mubr.msk.bf16.gmra.mrb[4].mxu0 %vm64_vm0, %v51_v23 }
  0x20   :  { %305 = vmatmul.mubr.msk.bf16.gmra.mrb[4].mxu1 %vm64_vm0, %v55_v24 }
  0xea   :  { %v294_v26 = vpop.f32.mrb[0].mxu0 }
  0xeb   :  { %v302_v28 = vpop.f32.mrb[0].mxu1  ;;  %v195_v29 = vmul.f32 %v294_v26, %v279_v25  ;;  %v123_v31 = vpop.f32.mrb[1].mxu0 }
  0xec   :  { %v203_v30 = vmul.f32 %v302_v28, %v279_v25  ;;  %v155_v32 = vpop.f32.mrb[1].mxu1  ;;  %v193_v33 = vmul.f32 %v279_v25, %v123_v31  ;;  %v295_v35 = vpop.f32.mrb[2].mxu0 }
  0xed   :  { %v201_v34 = vmul.f32 %v279_v25, %v155_v32  ;;  %v303_v36 = vpop.f32.mrb[2].mxu1  ;;  %v218_v37 = vadd.f32 %v395_v27, %v195_v29  ;;  %v196_v39 = vmul.f32 %v295_v35, %v279_v25  ;;  %v126_v41 = vpop.f32.mrb[3].mxu0 }
  0xee   :  { %v226_v38 = vadd.f32 %v395_v27, %v203_v30  ;;  %v204_v40 = vmul.f32 %v303_v36, %v279_v25  ;;  %v158_v42 = vpop.f32.mrb[3].mxu1  ;;  %v216_v43 = vadd.f32 %v395_v27, %v193_v33  ;;  %v194_v45 = vmul.f32 %v279_v25, %v126_v41 }
  0xef   :  { %v224_v44 = vadd.f32 %v395_v27, %v201_v34  ;;  %v202_v46 = vmul.f32 %v279_v25, %v158_v42  ;;  %v234_v47 = vmax.f32 %v218_v37, 0.0  ;;  %v219_v49 = vadd.f32 %v395_v27, %v196_v39 }
  0xf0   :  { %v242_v48 = vmax.f32 %v226_v38, 0.0  ;;  %v227_v50 = vadd.f32 %v395_v27, %v204_v40  ;;  %v232_v51 = vmax.f32 %v216_v43, 0.0  ;;  %v217_v53 = vadd.f32 %v395_v27, %v194_v45 }
  0xf1   :  { %v240_v52 = vmax.f32 %v224_v44, 0.0  ;;  %v225_v54 = vadd.f32 %v395_v27, %v202_v46  ;;  %251 = vst.msk [vmem:[%s481_s4 + $0x10] sm:$0xff] %vm248_vm1, %v234_v47  ;;  %v235_v55 = vmax.f32 %v219_v49, 0.0 }
  0xf2   :  { %259 = vst.msk [vmem:[%s481_s4 + $0x50] sm:$0xff] %vm248_vm1, %v242_v48  ;;  %v243_v56 = vmax.f32 %v227_v50, 0.0  ;;  %249 = vst.msk [vmem:[%s481_s4] sm:$0xff] %vm248_vm1, %v232_v51  ;;  %v233_v57 = vmax.f32 %v217_v53, 0.0  ;;  %v298_v59 = vpop.f32.mrb[4].mxu0 }
  0xf3   :  { %257 = vst.msk [vmem:[%s481_s4 + $0x40] sm:$0xff] %vm248_vm1, %v240_v52  ;;  %v241_v58 = vmax.f32 %v225_v54, 0.0  ;;  %v306_v60 = vpop.f32.mrb[4].mxu1  ;;  %252 = vst.msk [vmem:[%s481_s4 + $0x18] sm:$0xff] %vm248_vm1, %v235_v55  ;;  %v199_v61 = vmul.f32 %v298_v59, %v279_v25  ;;  %v139_v63 = vpop.f32.mrb[5].mxu0 }
  0xf4   :  { %260 = vst.msk [vmem:[%s481_s4 + $0x58] sm:$0xff] %vm248_vm1, %v243_v56  ;;  %v207_v62 = vmul.f32 %v306_v60, %v279_v25  ;;  %v171_v0 = vpop.f32.mrb[5].mxu1  ;;  %250 = vst.msk [vmem:[%s481_s4 + $0x8] sm:$0xff] %vm248_vm1, %v233_v57  ;;  %v197_v1 = vmul.f32 %v279_v25, %v139_v63  ;;  %v299_v3 = vpop.f32.mrb[6].mxu0 }
  0xf5   :  { %258 = vst.msk [vmem:[%s481_s4 + $0x48] sm:$0xff] %vm248_vm1, %v241_v58  ;;  %v205_v2 = vmul.f32 %v279_v25, %v171_v0  ;;  %v307_v4 = vpop.f32.mrb[6].mxu1  ;;  %v222_v5 = vadd.f32 %v395_v27, %v199_v61  ;;  %v200_v7 = vmul.f32 %v299_v3, %v279_v25  ;;  %v142_v9 = vpop.f32.mrb[7].mxu0 }
  0xf6   :  { %v230_v6 = vadd.f32 %v395_v27, %v207_v62  ;;  %v208_v8 = vmul.f32 %v307_v4, %v279_v25  ;;  %v174_v10 = vpop.f32.mrb[7].mxu1  ;;  %v220_v11 = vadd.f32 %v395_v27, %v197_v1  ;;  %v198_v13 = vmul.f32 %v279_v25, %v142_v9 }
  0xf7   :  { %v228_v12 = vadd.f32 %v395_v27, %v205_v2  ;;  %v206_v14 = vmul.f32 %v279_v25, %v174_v10  ;;  %v238_v15 = vmax.f32 %v222_v5, 0.0  ;;  %v223_v17 = vadd.f32 %v395_v27, %v200_v7 }
  0xf8   :  { %v246_v16 = vmax.f32 %v230_v6, 0.0  ;;  %v231_v18 = vadd.f32 %v395_v27, %v208_v8  ;;  %v236_v19 = vmax.f32 %v220_v11, 0.0  ;;  %v221_v21 = vadd.f32 %v395_v27, %v198_v13 }
  0xf9   :  { %v244_v20 = vmax.f32 %v228_v12, 0.0  ;;  %v229_v22 = vadd.f32 %v395_v27, %v206_v14  ;;  %255 = vst.msk [vmem:[%s481_s4 + $0x30] sm:$0xff] %vm248_vm1, %v238_v15  ;;  %v239_v23 = vmax.f32 %v223_v17, 0.0 }
  0xfa   :  { %263 = vst.msk [vmem:[%s481_s4 + $0x70] sm:$0xff] %vm248_vm1, %v246_v16  ;;  %v247_v24 = vmax.f32 %v231_v18, 0.0  ;;  %253 = vst.msk [vmem:[%s481_s4 + $0x20] sm:$0xff] %vm248_vm1, %v236_v19  ;;  %v237_v25 = vmax.f32 %v221_v21, 0.0 }
  0xfb   :  { %261 = vst.msk [vmem:[%s481_s4 + $0x60] sm:$0xff] %vm248_vm1, %v244_v20  ;;  %v245_v26 = vmax.f32 %v229_v22, 0.0  ;;  %256 = vst.msk [vmem:[%s481_s4 + $0x38] sm:$0xff] %vm248_vm1, %v239_v23 }
  0xfc   :  { %264 = vst.msk [vmem:[%s481_s4 + $0x78] sm:$0xff] %vm248_vm1, %v247_v24  ;;  %254 = vst.msk [vmem:[%s481_s4 + $0x28] sm:$0xff] %vm248_vm1, %v237_v25 }
  0xfd   :  { %262 = vst.msk [vmem:[%s481_s4 + $0x68] sm:$0xff] %vm248_vm1, %v245_v26 }
  0xfe   :  { %269 = vsyncpa [#allocation3], 1 }

// kernel: _lambda_.6
= control target key start
LH: loop header
LB: loop body
LE: loop exit
PB: predicated region body
PF: predicated region fallthrough
CT: control target
= control target key end

     0   :  { %s1548_s15 = smov 0   ;;  %s1747_s0 = inlined_call_operand.vmem [shape: f32[2,8,8,4], index: 0, kind: input, shape index: {}]   ;;  %s1748_s1 = inlined_call_operand.vmem [shape: bf16[9,4,8], index: 1, kind: input, shape index: {}]   ;;  %s1749_s2 = inlined_call_operand.vmem [shape: f32[1,8], index: 2, kind: input, shape index: {}]   ;;  %s1750_s3 = inlined_call_operand.vmem [shape: f32[1,8], index: 3, kind: input, shape index: {}]   ;;  %s1751_s4 = inlined_call_operand.vmem [shape: f32[2,8,8,8], index: 4, kind: output, shape index: {}]  }
   0x1 LB: > { %s1235_s16 = sadd.s32 4294967295, %s1520_s15   ;;  %p1239_p0 = scmp.ge.s32.totalorder %s1520_s15, 1  ;;  %s1520_s15 = sphi %s1548_s15, %s14_s15  }
   0x2   : > { %p162_p1 = scmp.lt.s32.totalorder %s1520_s15, 3 }
   0x4   : > { %p163_p2 = pnand %p1239_p0, %p162_p1 }
   0x5   : > { %v1244_v0 = vld [vmem:[%s1748_s1 + $0x2] sm:$0x3] (!%p163_p2)  ;;  %vm277_vm0 = vcmask (!%p163_p2), 1041408   ;;  %v1562_v1 = vld [vmem:[%s1748_s1 + $0x8] sm:$0x3] (!%p163_p2)  ;;  %p188_p3 = scmp.lt.s32.totalorder (!%p163_p2), %s1235_s16, 1 }
   0x6   : > { %166 = sbr.rel (%p163_p2) target bundleno = 319 (0x13f), region = 36  ;;  %1495 = vmatprep.subr.msk.bf16.mxu1 (!%p163_p2), %vm277_vm0, %v1244_v0  ;;  %1499 = vmatprep.subr.msk.bf16.mxu0 (!%p163_p2), %vm277_vm0, %v1562_v1  ;;  %v279_v2 = vsel (!%p163_p2), %vm277_vm0, %v1244_v0, 0  ;;  %v1570_v3 = vsel (!%p163_p2), %vm277_vm0, %v1562_v1, 0  ;;  %vm199_vm1 = vcmask (!%p163_p2), 31744   ;;  %v250_v4 = vld [vmem:[%s1748_s1] sm:$0x3] (!%p163_p2) }
   0x7   : > { %1340 = vmatpush3.bf16.msra.mxu1 (!%p163_p2), %v279_v2  ;;  %1380 = vmatpush3.bf16.msra.mxu0 (!%p163_p2), %v1570_v3  ;;  %v1522_v5 = vmov (!%p163_p2), 0.0   ;;  %vm201_vm2 = vcmask (!%p163_p2), 25600   ;;  %v1268_v6 = vld [vmem:[%s1748_s1 + $0xa] sm:$0x3] (!%p163_p2)  ;;  %v359_v24 = vsel (!%p163_p2), %vm277_vm0, %v250_v4, 0  ;;  %vm1171_vm3 = vcmask (!%p163_p2), 64512  }
   0x8   : > { %200 = vst.msk [vmem:[#allocation2] sm:$0xff] (!%p163_p2), %vm199_vm1, %v1522_v5  ;;  %203 = vst.msk [vmem:[#allocation2 + $0x10] sm:$0xff] (!%p163_p2), %vm199_vm1, %v1522_v5  ;;  %1496 = vmatprep.subr.msk.bf16.mxu1 (!%p163_p2), %vm277_vm0, %v250_v4  ;;  %1501 = vmatprep.subr.msk.bf16.mxu0 (!%p163_p2), %vm277_vm0, %v1268_v6  ;;  %v759_v26 = vsel (!%p163_p2), %vm277_vm0, %v1268_v6, 0  ;;  %v1273_v31 = vld [vmem:[%s1748_s1 + $0xc] sm:$0x3] (!%p163_p2) }
   0x9   : > { %205 = vst.msk [vmem:[#allocation2 + $0x20] sm:$0xff] (!%p163_p2), %vm199_vm1, %v1522_v5  ;;  %207 = vst.msk [vmem:[#allocation2 + $0x30] sm:$0xff] (!%p163_p2), %vm199_vm1, %v1522_v5  ;;  %v1253_v32 = vld [vmem:[%s1748_s1 + $0x4] sm:$0x3] (!%p163_p2)  ;;  %v862_v47 = vsel (!%p163_p2), %vm277_vm0, %v1273_v31, 0 }
   0xa   : > { %209 = vst.msk [vmem:[#allocation2 + $0x40] sm:$0xff] (!%p163_p2), %vm199_vm1, %v1522_v5  ;;  %211 = vst.msk [vmem:[#allocation2 + $0x50] sm:$0xff] (!%p163_p2), %vm199_vm1, %v1522_v5  ;;  %v1278_v50 = vld [vmem:[%s1748_s1 + $0xe] sm:$0x3] (!%p163_p2)  ;;  %v453_v55 = vsel (!%p163_p2), %vm277_vm0, %v1253_v32, 0 }
   0xb   : > { %213 = vst.msk [vmem:[#allocation2 + $0x60] sm:$0xff] (!%p163_p2), %vm199_vm1, %v1522_v5  ;;  %215 = vst.msk [vmem:[#allocation2 + $0x70] sm:$0xff] (!%p163_p2), %vm199_vm1, %v1522_v5  ;;  %v1258_v56 = vld [vmem:[%s1748_s1 + $0x6] sm:$0x3] (!%p163_p2)  ;;  %v964_v63 = vsel (!%p163_p2), %vm277_vm0, %v1278_v50, 0 }
   0xc   : > { %217 = vst.msk [vmem:[#allocation2 + $0x80] sm:$0xff] (!%p163_p2), %vm199_vm1, %v1522_v5  ;;  %219 = vst.msk [vmem:[#allocation2 + $0x90] sm:$0xff] (!%p163_p2), %vm199_vm1, %v1522_v5  ;;  %v1283_v0 = vld [vmem:[%s1748_s1 + $0x10] sm:$0x3] (!%p163_p2) }
   0xd   : > { %s1753_s16 = smov (!%p188_p3, %s1235_s16), 1  ;;  %202 = vst.msk [vmem:[#allocation2 + $0x8] sm:$0x3] %vm201_vm2, %v1522_v5  ;;  %204 = vst.msk [vmem:[#allocation2 + $0x18] sm:$0x3] %vm201_vm2, %v1522_v5 }
   0xe   : > { %206 = vst.msk [vmem:[#allocation2 + $0x28] sm:$0x3] %vm201_vm2, %v1522_v5  ;;  %208 = vst.msk [vmem:[#allocation2 + $0x38] sm:$0x3] %vm201_vm2, %v1522_v5  ;;  %s1292_s25 = sshll.u32 %s1753_s16, 6 }
   0xf   : > { %210 = vst.msk [vmem:[#allocation2 + $0x48] sm:$0x3] %vm201_vm2, %v1522_v5  ;;  %212 = vst.msk [vmem:[#allocation2 + $0x58] sm:$0x3] %vm201_vm2, %v1522_v5  ;;  %s192_s28 = scalar_lea.vmem %s1747_s0, %s1292_s25  ;;  %v238_v35 = vld [vmem:[#allocation2] sm:$0xff]  ;;  %s1726_s21 = scalar_lea.vmem %s1751_s4, %s1292_s25 }
  0x10   : > { %214 = vst.msk [vmem:[#allocation2 + $0x68] sm:$0x3] %vm201_vm2, %v1522_v5  ;;  %216 = vst.msk [vmem:[#allocation2 + $0x78] sm:$0x3] %vm201_vm2, %v1522_v5  ;;  %v221_v7 = vld [vmem:[%s192_s28] sm:$0xff]  ;;  %v222_v8 = vld [vmem:[%s192_s28 + $0x8] sm:$0xff] }
  0x11   : > { %218 = vst.msk [vmem:[#allocation2 + $0x88] sm:$0x3] %vm201_vm2, %v1522_v5  ;;  %220 = vst.msk [vmem:[#allocation2 + $0x98] sm:$0x3] %vm201_vm2, %v1522_v5  ;;  %v223_v9 = vld [vmem:[%s192_s28 + $0x10] sm:$0xff]  ;;  %v224_v10 = vld [vmem:[%s192_s28 + $0x18] sm:$0xff] }
  0x12   : > { %230 = vst.msk [vmem:[#allocation2 + $0x11] sm:$0xff] %vm199_vm1, %v221_v7  ;;  %231 = vst.msk [vmem:[#allocation2 + $0x21] sm:$0xff] %vm199_vm1, %v222_v8  ;;  %v225_v11 = vld [vmem:[%s192_s28 + $0x20] sm:$0xff]  ;;  %v226_v12 = vld [vmem:[%s192_s28 + $0x28] sm:$0xff]  ;;  %v555_v7 = vsel %vm277_vm0, %v1258_v56, 0 }
  0x13   : > { %232 = vst.msk [vmem:[#allocation2 + $0x31] sm:$0xff] %vm199_vm1, %v223_v9  ;;  %233 = vst.msk [vmem:[#allocation2 + $0x41] sm:$0xff] %vm199_vm1, %v224_v10  ;;  %v227_v13 = vld [vmem:[%s192_s28 + $0x30] sm:$0xff]  ;;  %v228_v14 = vld [vmem:[%s192_s28 + $0x38] sm:$0xff] }
  0x14   : > { %234 = vst.msk [vmem:[#allocation2 + $0x51] sm:$0xff] %vm199_vm1, %v225_v11  ;;  %235 = vst.msk [vmem:[#allocation2 + $0x61] sm:$0xff] %vm199_vm1, %v226_v12  ;;  %v251_v15 = vld [vmem:[#allocation2 + $0x1] sm:$0xff]  ;;  %v842_v5 = vld [vmem:[#allocation2 + $0x90] sm:$0xff]  ;;  %v1066_v11 = vsel %vm277_vm0, %v1283_v0, 0 }
  0x15   : > { %236 = vst.msk [vmem:[#allocation2 + $0x71] sm:$0xff] %vm199_vm1, %v227_v13  ;;  %237 = vst.msk [vmem:[#allocation2 + $0x81] sm:$0xff] %vm199_vm1, %v228_v14  ;;  %v426_v60 = vld [vmem:[#allocation2 + $0x2] sm:$0xff] }
  0x18   : > { %v944_v13 = vld [vmem:[#allocation2 + $0x91] sm:$0xff] }
  0x19   : > { %v252_v16 = vld [vmem:[#allocation2 + $0x11] sm:$0xff]  ;;  %v631_v17 = vld [vmem:[#allocation2 + $0x21] sm:$0xff] }
  0x1a   : > { %v254_v18 = vld [vmem:[#allocation2 + $0x31] sm:$0xff]  ;;  %v259_v19 = vpack.c.bf16 %v252_v16, %v251_v15  ;;  %v638_v20 = vpack.c.bf16 %v631_v17, %v252_v16  ;;  %v633_v22 = vld [vmem:[#allocation2 + $0x41] sm:$0xff] }
  0x1b   : > { %v1617_v21 = vpack.c.bf16 %v254_v18, %v631_v17  ;;  %v1619_v23 = vld [vmem:[#allocation2 + $0x51] sm:$0xff]  ;;  %v639_v25 = vpack.c.bf16 %v633_v22, %v254_v18  ;;  %v733_v29 = vld [vmem:[#allocation2 + $0x22] sm:$0xff] }
  0x1c   : > { %v1624_v27 = vpack.c.bf16 %v1619_v23, %v633_v22  ;;  %v732_v28 = vld [vmem:[#allocation2 + $0x12] sm:$0xff]  ;;  %1341 = vmatprep.mubr.msk.bf16.mxu1 %vm199_vm1, %v259_v19  ;;  %1381 = vmatprep.mubr.msk.bf16.mxu0 %vm199_vm1, %v638_v20  ;;  %v1637_v33 = vld [vmem:[#allocation2 + $0x61] sm:$0xff] }
  0x1d   : > { %v740_v30 = vpack.c.bf16 %v733_v29, %v732_v28  ;;  %1342 = vmatmul.mubr.msk.bf16.vlgmr.msra.gmra.mrb[0].mxu1 %vm199_vm1, %v1617_v21  ;;  %1382 = vmatmul.mubr.msk.bf16.vlgmr.msra.gmra.mrb[0].mxu0 %vm199_vm1, %v639_v25  ;;  %v1639_v34 = vld [vmem:[#allocation2 + $0x71] sm:$0xff]  ;;  %v735_v39 = vld [vmem:[#allocation2 + $0x42] sm:$0xff]  ;;  %v434_v62 = vpack.c.bf16 %v732_v28, %v426_v60  ;;  %v640_v17 = vpack.c.bf16 %v1637_v33, %v1619_v23  ;;  %v1288_v25 = vld [vmem:[%s1749_s2] ss:$0 sm:$0xff] }
  0x1e   : > { %1350 = vmatpush3.bf16.msra.mxu1 %v359_v24  ;;  %1390 = vmatpush3.bf16.msra.mxu0 %v759_v26  ;;  %v1644_v36 = vld [vmem:[#allocation2 + $0x10] sm:$0xff]  ;;  %v1650_v37 = vpack.c.bf16 %v1639_v34, %v1637_v33  ;;  %v737_v42 = vld [vmem:[#allocation2 + $0x62] sm:$0xff]  ;;  %v1289_v28 = vld [vmem:[%s1750_s3] ss:$0 sm:$0xff] }
  0x1f   : > { %1345 = vmatprep.mubr.msk.bf16.mxu1 %vm199_vm1, %v1624_v27  ;;  %1391 = vmatprep.mubr.msk.bf16.mxu0 %vm199_vm1, %v740_v30  ;;  %v734_v38 = vld [vmem:[#allocation2 + $0x32] sm:$0xff]  ;;  %v246_v40 = vpack.c.bf16 %v1644_v36, %v238_v35  ;;  %v240_v44 = vld [vmem:[#allocation2 + $0x20] sm:$0xff] }
  0x20   : > { %1502 = vmatprep.subr.msk.bf16.mxu0 %vm277_vm0, %v1273_v31  ;;  %1497 = vmatprep.subr.msk.bf16.mxu1 %vm277_vm0, %v1253_v32  ;;  %v736_v41 = vld [vmem:[#allocation2 + $0x52] sm:$0xff]  ;;  %v741_v43 = vpack.c.bf16 %v735_v39, %v734_v38  ;;  %v242_v48 = vld [vmem:[#allocation2 + $0x40] sm:$0xff]  ;;  %v435_v2 = vpack.c.bf16 %v734_v38, %v733_v29  ;;  %v536_v10 = vpack.c.bf16 %v240_v44, %v1644_v36 }
  0x21   : > { %v241_v45 = vld [vmem:[#allocation2 + $0x30] sm:$0xff]  ;;  %v742_v46 = vpack.c.bf16 %v737_v42, %v736_v41  ;;  %v1662_v53 = vld [vmem:[#allocation2 + $0x82] sm:$0xff]  ;;  %v436_v6 = vpack.c.bf16 %v736_v41, %v735_v39 }
  0x22   : > { %v243_v49 = vld [vmem:[#allocation2 + $0x50] sm:$0xff]  ;;  %v247_v51 = vpack.c.bf16 %v241_v45, %v240_v44  ;;  %v244_v58 = vld [vmem:[#allocation2 + $0x60] sm:$0xff]  ;;  %v537_v12 = vpack.c.bf16 %v242_v48, %v241_v45 }
  0x23   : > { %v738_v52 = vld [vmem:[#allocation2 + $0x72] sm:$0xff]  ;;  %v248_v54 = vpack.c.bf16 %v243_v49, %v242_v48  ;;  %v841_v4 = vld [vmem:[#allocation2 + $0x80] sm:$0xff]  ;;  %v538_v14 = vpack.c.bf16 %v244_v58, %v243_v49 }
  0x24   : > { %v743_v57 = vpack.c.bf16 %v1662_v53, %v738_v52  ;;  %v245_v59 = vld [vmem:[#allocation2 + $0x70] sm:$0xff]  ;;  %v846_v8 = vpack.c.bf16 %v842_v5, %v841_v4  ;;  %v437_v9 = vpack.c.bf16 %v738_v52, %v737_v42 }
  0x25   : > { %1346 = vmatmul.mubr.msk.bf16.gmra.mrb[4].mxu1 %vm199_vm1, %v1650_v37  ;;  %v249_v61 = vpack.c.bf16 %v245_v59, %v244_v58  ;;  %v539_v16 = vpack.c.bf16 %v841_v4, %v245_v59  ;;  %v1046_v18 = vld [vmem:[#allocation2 + $0x92] sm:$0xff] }
  0x26   : > { %1351 = vmatprep.mubr.msk.bf16.mxu1 %vm199_vm1, %v246_v40  ;;  %v1050_v19 = vpack.c.bf16 %v1046_v18, %v1662_v53 }
  0x29   : > { %1392 = vmatmul.mubr.msk.bf16.vlgmr.msra.gmra.mrb[0].mxu0 %vm199_vm1, %v741_v43 }
  0x2a   : > { %1400 = vmatpush3.bf16.msra.mxu0 %v862_v47  ;;  %1395 = vmatprep.mubr.msk.bf16.mxu0 %vm199_vm1, %v742_v46 }
  0x2b   : > { %1503 = vmatprep.subr.msk.bf16.mxu0 %vm277_vm0, %v1278_v50 }
  0x2d   : > { %1352 = vmatmul.mubr.msk.bf16.vlgmr.msra.gmra.mrb[0].mxu1 %vm199_vm1, %v247_v51 }
  0x2e   : > { %1360 = vmatpush3.bf16.msra.mxu1 %v453_v55  ;;  %1355 = vmatprep.mubr.msk.bf16.mxu1 %vm199_vm1, %v248_v54 }
  0x2f   : > { %1498 = vmatprep.subr.msk.bf16.mxu1 %vm277_vm0, %v1258_v56 }
  0x31   : > { %1396 = vmatmul.mubr.msk.bf16.gmra.mrb[4].mxu0 %vm199_vm1, %v743_v57 }
  0x32   : > { %1401 = vmatprep.mubr.msk.bf16.mxu0 %vm199_vm1, %v247_v51 }
  0x35   : > { %1356 = vmatmul.mubr.msk.bf16.gmra.mrb[4].mxu1 %vm199_vm1, %v249_v61 }
  0x36   : > { %1361 = vmatprep.mubr.msk.bf16.mxu1 %vm199_vm1, %v434_v62 }
  0x39   : > { %1402 = vmatmul.mubr.msk.bf16.vlgmr.msra.gmra.mrb[0].mxu0 %vm199_vm1, %v248_v54 }
  0x3a   : > { %1410 = vmatpush3.bf16.msra.mxu0 %v964_v63  ;;  %1405 = vmatprep.mubr.msk.bf16.mxu0 %vm199_vm1, %v249_v61 }
  0x3b   : > { %1504 = vmatprep.subr.msk.bf16.mxu0 %vm277_vm0, %v1283_v0 }
  0x3d   : > { %1362 = vmatmul.mubr.msk.bf16.vlgmr.msra.gmra.mrb[0].mxu1 %vm199_vm1, %v435_v2 }
  0x3e   : > { %1370 = vmatpush3.bf16.msra.mxu1 %v555_v7  ;;  %1365 = vmatprep.mubr.msk.bf16.mxu1 %vm199_vm1, %v436_v6 }
  0x3f   : > { %1500 = vmatprep.subr.msk.bf16.mxu1 %vm277_vm0, %v1562_v1  ;;  %v943_v1 = vld [vmem:[#allocation2 + $0x81] sm:$0xff] }
  0x40   : > { %v948_v15 = vpack.c.bf16 %v944_v13, %v943_v1 }
  0x41   : > { %1406 = vmatmul.mubr.msk.bf16.gmra.mrb[4].mxu0 %vm199_vm1, %v846_v8 }
  0x42   : > { %1411 = vmatprep.mubr.msk.bf16.mxu0 %vm199_vm1, %v1617_v21 }
  0x45   : > { %1366 = vmatmul.mubr.msk.bf16.gmra.mrb[4].mxu1 %vm199_vm1, %v437_v9 }
  0x46   : > { %1371 = vmatprep.mubr.msk.bf16.mxu1 %vm199_vm1, %v536_v10 }
  0x49   : > { %1412 = vmatmul.mubr.msk.bf16.vlgmr.msra.gmra.mrb[0].mxu0 %vm199_vm1, %v1624_v27 }
  0x4a   : > { %1420 = vmatpush3.bf16.msra.mxu0 %v1066_v11  ;;  %1415 = vmatprep.mubr.msk.bf16.mxu0 %vm199_vm1, %v1650_v37 }
  0x4d   : > { %1372 = vmatmul.mubr.msk.bf16.vlgmr.msra.gmra.mrb[0].mxu1 %vm199_vm1, %v537_v12 }
  0x4e   : > { %1430 = vmatpush3.bf16.msra.mxu1 %v1570_v3  ;;  %1375 = vmatprep.mubr.msk.bf16.mxu1 %vm199_vm1, %v538_v14  ;;  %v641_v3 = vpack.c.bf16 %v943_v1, %v1639_v34 }
  0x51   : > { %1416 = vmatmul.mubr.msk.bf16.gmra.mrb[4].mxu0 %vm199_vm1, %v948_v15 }
  0x52   : > { %1421 = vmatprep.mubr.msk.bf16.mxu0 %vm199_vm1, %v435_v2 }
  0x55   : > { %1376 = vmatmul.mubr.msk.bf16.gmra.mrb[4].mxu1 %vm199_vm1, %v539_v16 }
  0x56   : > { %1385 = vmatprep.mubr.msk.bf16.mxu1 %vm199_vm1, %v640_v17 }
  0x59   : > { %1422 = vmatmul.mubr.msk.bf16.vlgmr.msra.gmra.mrb[0].mxu0 %vm199_vm1, %v436_v6 }
  0x5a   : > { %1425 = vmatprep.mubr.msk.bf16.mxu0 %vm199_vm1, %v437_v9 }
  0x61   : > { %1386 = vmatmul.mubr.msk.bf16.vlgmr.msra.gmra.mrb[4].mxu1 %vm199_vm1, %v641_v3  ;;  %1426 = vmatmul.mubr.msk.bf16.gmra.mrb[4].mxu0 %vm199_vm1, %v1050_v19 }
 0x120   : > { %v1373_v20 = vpop.f32.mrb[0].mxu1 }
 0x121   : > { %v591_v21 = vpop.f32.mrb[1].mxu1 }
 0x122   : > { %v1374_v22 = vpop.f32.mrb[2].mxu1 }
 0x123   : > { %v594_v23 = vpop.f32.mrb[3].mxu1 }
 0x12c   : > { %v1423_v24 = vpop.f32.mrb[0].mxu0 }
 0x12d   : > { %v1431_v26 = vadd.f32 %v1423_v24, %v1373_v20  ;;  %v1102_v27 = vpop.f32.mrb[1].mxu0 }
 0x12e   : > { %v1432_v29 = vadd.f32 %v1102_v27, %v591_v21  ;;  %v1424_v30 = vpop.f32.mrb[2].mxu0 }
 0x12f   : > { %v1150_v31 = vmul.f32 %v1431_v26, %v1288_v25  ;;  %v1433_v32 = vadd.f32 %v1424_v30, %v1374_v22  ;;  %v1105_v33 = vpop.f32.mrb[3].mxu0 }
 0x130   : > { %v1148_v34 = vmul.f32 %v1432_v29, %v1288_v25  ;;  %v1434_v35 = vadd.f32 %v1105_v33, %v594_v23 }
 0x131   : > { %v1165_v36 = vadd.f32 %v1289_v28, %v1150_v31  ;;  %v1151_v37 = vmul.f32 %v1433_v32, %v1288_v25 }
 0x132   : > { %v1163_v38 = vadd.f32 %v1289_v28, %v1148_v34  ;;  %v1149_v39 = vmul.f32 %v1434_v35, %v1288_v25 }
 0x133   : > { %1174 = vst.msk [vmem:[%s1726_s21 + $0x10] sm:$0xff] %vm1171_vm3, %v1165_v36  ;;  %v1166_v40 = vadd.f32 %v1289_v28, %v1151_v37 }
 0x134   : > { %1172 = vst.msk [vmem:[%s1726_s21] sm:$0xff] %vm1171_vm3, %v1163_v38  ;;  %v1164_v41 = vadd.f32 %v1289_v28, %v1149_v39  ;;  %v1387_v42 = vpop.f32.mrb[4].mxu1  ;;  %v1427_v43 = vpop.f32.mrb[4].mxu0 }
 0x135   : > { %1175 = vst.msk [vmem:[%s1726_s21 + $0x18] sm:$0xff] %vm1171_vm3, %v1166_v40  ;;  %v1435_v44 = vadd.f32 %v1427_v43, %v1387_v42  ;;  %v709_v45 = vpop.f32.mrb[5].mxu1  ;;  %v1118_v46 = vpop.f32.mrb[5].mxu0 }
 0x136   : > { %1173 = vst.msk [vmem:[%s1726_s21 + $0x8] sm:$0xff] %vm1171_vm3, %v1164_v41  ;;  %v1436_v47 = vadd.f32 %v1118_v46, %v709_v45  ;;  %v1388_v48 = vpop.f32.mrb[6].mxu1  ;;  %v1428_v49 = vpop.f32.mrb[6].mxu0 }
 0x137   : > { %v1154_v50 = vmul.f32 %v1435_v44, %v1288_v25  ;;  %v1437_v51 = vadd.f32 %v1428_v49, %v1388_v48  ;;  %v712_v52 = vpop.f32.mrb[7].mxu1  ;;  %v1121_v53 = vpop.f32.mrb[7].mxu0 }
 0x138   : > { %v1152_v54 = vmul.f32 %v1436_v47, %v1288_v25  ;;  %v1438_v55 = vadd.f32 %v1121_v53, %v712_v52 }
 0x139   : > { %v1169_v56 = vadd.f32 %v1289_v28, %v1154_v50  ;;  %v1155_v57 = vmul.f32 %v1437_v51, %v1288_v25 }
 0x13a   : > { %v1167_v58 = vadd.f32 %v1289_v28, %v1152_v54  ;;  %v1153_v59 = vmul.f32 %v1438_v55, %v1288_v25 }
 0x13b   : > { %1178 = vst.msk [vmem:[%s1726_s21 + $0x30] sm:$0xff] %vm1171_vm3, %v1169_v56  ;;  %v1170_v60 = vadd.f32 %v1289_v28, %v1155_v57 }
 0x13c   : > { %1176 = vst.msk [vmem:[%s1726_s21 + $0x20] sm:$0xff] %vm1171_vm3, %v1167_v58  ;;  %v1168_v61 = vadd.f32 %v1289_v28, %v1153_v59 }
 0x13d   : > { %1179 = vst.msk [vmem:[%s1726_s21 + $0x38] sm:$0xff] %vm1171_vm3, %v1170_v60 }
 0x13e   : > { %1177 = vst.msk [vmem:[%s1726_s21 + $0x28] sm:$0xff] %vm1171_vm3, %v1168_v61 }
 0x13f PF: > { %s14_s15 = sadd.s32 1, %s1520_s15  }
 0x140   : > { %p11_p4 = scmp.ge.s32.totalorder %s14_s15, 4  }
 0x142   :  { %13 = sbr.rel (!%p11_p4) target bundleno = 1 (0x1), region = 76 }

// kernel: _lambda_.7
= control target key start
LH: loop header
LB: loop body
LE: loop exit
PB: predicated region body
PF: predicated region fallthrough
CT: control target
= control target key end

     0   :  { %v150_v0 = vlaneseq  ;;  %v1617_v3 = vmov 0.0   ;;  %vm1618_vm0 = vmmov 0   ;;  %vm600_vm7 = vcmask 64512   ;;  %s1911_s0 = inlined_call_operand.vmem [shape: f32[8,8,8], index: 0, kind: input, shape index: {}]   ;;  %s1912_s1 = inlined_call_operand.vmem [shape: f32[8,1,64], index: 1, kind: input, shape index: {}]   ;;  %s1913_s2 = inlined_call_operand.vmem [shape: f32[8,1,64], index: 2, kind: input, shape index: {}]   ;;  %s1914_s3 = inlined_call_operand.vmem [shape: f32[8,1,64], index: 3, kind: output, shape index: {}]  }
   0x1   :  { %v14_v1 = vld [vmem:[%s1911_s0] sm:$0xff]  ;;  %v16_v2 = vld [vmem:[%s1911_s0 + $0x10] sm:$0xff]  ;;  %1511 = vmatprep.subr.mxu0 %v1617_v3  ;;  %1513 = vmatprep.mubr.msk.f32.mxu0 %vm1618_vm0, %v1617_v3  ;;  %v15_v4 = vld [vmem:[%s1911_s0 + $0x8] sm:$0xff] }
   0x2   :  { %568 = vxpose.xlu0.b32.start.end [1/1] (short) (narrow) %v14_v1, 8  ;;  %779 = vxpose.xlu1.b32.start.end [1/1] (short) (narrow) %v16_v2, 8  ;;  %v17_v5 = vld [vmem:[%s1911_s0 + $0x18] sm:$0xff]  ;;  %v22_v6 = vld [vmem:[%s1912_s1] sm:$0x1]  ;;  %v1660_v8 = vshrl.u32 %v150_v0, 7 }
   0x3   :  { %1516 = vmatprep.subr.mxu1 %v1617_v3  ;;  %1518 = vmatprep.mubr.msk.f32.mxu1 %vm1618_vm0, %v1617_v3  ;;  %v30_v7 = vmax.f32 %v22_v6, 0.0  ;;  %v23_v9 = vld [vmem:[%s1912_s1 + $0x1] sm:$0x1]  ;;  %v19_v13 = vld [vmem:[%s1911_s0 + $0x28] sm:$0xff]  ;;  %v20_v23 = vld [vmem:[%s1911_s0 + $0x30] sm:$0xff] }
   0x4   :  { %v31_v10 = vmax.f32 %v23_v9, 0.0  ;;  %v18_v12 = vld [vmem:[%s1911_s0 + $0x20] sm:$0xff]  ;;  %v1672_v17 = vsub.s32 0, %v1660_v8  ;;  %v21_v24 = vld [vmem:[%s1911_s0 + $0x38] sm:$0xff] }
   0x5   :  { %v38_v11 = vmin.f32 %v30_v7, 7.0  ;;  %v24_v48 = vld [vmem:[%s1912_s1 + $0x2] sm:$0x1]  ;;  %v25_v51 = vld [vmem:[%s1912_s1 + $0x3] sm:$0x1] }
   0x6   :  { %674 = vxpose.xlu0.b32.start.end [1/1] (short) (narrow) %v15_v4, 8  ;;  %884 = vxpose.xlu1.b32.start.end [1/1] (short) (narrow) %v17_v5, 8  ;;  %v39_v14 = vmin.f32 %v31_v10, 7.0  ;;  %v32_v49 = vmax.f32 %v24_v48, 0.0  ;;  %v26_v52 = vld [vmem:[%s1912_s1 + $0x4] sm:$0x1] }
   0x7   :  { %v70_v15 = vfloor.f32 %v38_v11  ;;  %v78_v16 = vceil.f32 %v38_v11  ;;  %v33_v55 = vmax.f32 %v25_v51, 0.0  ;;  %v34_v56 = vmax.f32 %v26_v52, 0.0  ;;  %v27_v57 = vld [vmem:[%s1912_s1 + $0x5] sm:$0x1]  ;;  %v28_v62 = vld [vmem:[%s1912_s1 + $0x6] sm:$0x1] }
   0x8   :  { %v71_v18 = vfloor.f32 %v39_v14  ;;  %v79_v19 = vceil.f32 %v39_v14  ;;  %v40_v50 = vmin.f32 %v32_v49, 7.0  ;;  %v35_v0 = vmax.f32 %v27_v57, 0.0  ;;  %v29_v5 = vld [vmem:[%s1912_s1 + $0x7] sm:$0x1] }
   0x9   :  { %v102_v20 = vsub.f32 %v38_v11, %v70_v15  ;;  %v1551_v21 = vtrunc.f32 %v70_v15  ;;  %v1567_v22 = vtrunc.f32 %v78_v16  ;;  %v41_v60 = vmin.f32 %v33_v55, 7.0 }
   0xa   :  { %989 = vxpose.xlu0.b32.start.end [1/1] (short) (narrow) %v18_v12, 8  ;;  %1094 = vxpose.xlu1.b32.start.end [1/1] (short) (narrow) %v19_v13, 8  ;;  %v103_v25 = vsub.f32 %v39_v14, %v71_v18  ;;  %v1553_v26 = vtrunc.f32 %v71_v18  ;;  %v1569_v27 = vtrunc.f32 %v79_v19  ;;  %v72_v53 = vfloor.f32 %v40_v50 }
   0xb   :  { %v1552_v28 = vcvt.f32.s32 %v1551_v21  ;;  %v1568_v29 = vcvt.f32.s32 %v1567_v22  ;;  %v192_v30 = vsub.f32 1.0, %v102_v20  ;;  %v307_v31 = vrot.slane %v102_v20, %v1672_v17 }
   0xc   :  { %v1554_v32 = vcvt.f32.s32 %v1553_v26  ;;  %v1570_v33 = vcvt.f32.s32 %v1569_v27  ;;  %v193_v34 = vsub.f32 1.0, %v103_v25  ;;  %v311_v35 = vrot.slane %v103_v25, %v1672_v17 }
   0xd   :  { %v155_v36 = vrot.slane %v1552_v28, %v1672_v17  ;;  %v211_v37 = vrot.slane %v192_v30, %v1672_v17  ;;  %v259_v38 = vrot.slane %v1568_v29, %v1672_v17  ;;  %v80_v54 = vceil.f32 %v40_v50 }
   0xe   :  { %1199 = vxpose.xlu0.b32.start.end [1/1] (short) (narrow) %v20_v23, 8  ;;  %1304 = vxpose.xlu1.b32.start.end [1/1] (short) (narrow) %v21_v24, 8  ;;  %v159_v39 = vrot.slane %v1554_v32, %v1672_v17  ;;  %v215_v40 = vrot.slane %v193_v34, %v1672_v17  ;;  %v263_v41 = vrot.slane %v1570_v33, %v1672_v17  ;;  %v1555_v58 = vtrunc.f32 %v72_v53 }
   0xf   :  { %vm184_vm1 = vcmp.eq.s32.totalorder %v1660_v8, %v155_v36  ;;  %vm288_vm2 = vcmp.eq.s32.totalorder %v1660_v8, %v259_v38  ;;  %v1571_v59 = vtrunc.f32 %v80_v54  ;;  %v42_v61 = vmin.f32 %v34_v56, 7.0 }
  0x10   :  { %v248_v42 = vsel %vm184_vm1, %v211_v37, 0.0  ;;  %v344_v43 = vsel %vm288_vm2, %v307_v31, 0.0  ;;  %vm185_vm3 = vcmp.eq.s32.totalorder %v1660_v8, %v159_v39  ;;  %vm289_vm4 = vcmp.eq.s32.totalorder %v1660_v8, %v263_v41 }
  0x11   :  { %v352_v44 = vadd.f32 %v344_v43, %v248_v42  ;;  %v249_v45 = vsel %vm185_vm3, %v215_v40, 0.0  ;;  %v345_v46 = vsel %vm289_vm4, %v311_v35, 0.0  ;;  %v104_v63 = vsub.f32 %v40_v50, %v72_v53 }
  0x12   :  { %v353_v47 = vadd.f32 %v345_v46, %v249_v45  ;;  %v1556_v1 = vcvt.f32.s32 %v1555_v58  ;;  %v1572_v2 = vcvt.f32.s32 %v1571_v59  ;;  %v36_v4 = vmax.f32 %v28_v62, 0.0 }
  0x13   :  { %1512 = vmatpush3.msra.mxu0 %v352_v44  ;;  %v73_v6 = vfloor.f32 %v41_v60  ;;  %v81_v7 = vceil.f32 %v41_v60  ;;  %v74_v9 = vfloor.f32 %v42_v61  ;;  %v194_v10 = vsub.f32 1.0, %v104_v63 }
  0x14   :  { %1517 = vmatpush3.msra.mxu1 %v353_v47  ;;  %1521 = vmatprep.subr.mxu0 %v1617_v3  ;;  %v82_v11 = vceil.f32 %v42_v61  ;;  %v43_v12 = vmin.f32 %v35_v0, 7.0  ;;  %v37_v13 = vmax.f32 %v29_v5, 0.0  ;;  %v163_v14 = vrot.slane %v1556_v1, %v1672_v17 }
  0x15   :  { %1526 = vmatprep.subr.mxu1 %v1617_v3  ;;  %v267_v15 = vrot.slane %v1572_v2, %v1672_v17  ;;  %v44_v16 = vmin.f32 %v36_v4, 7.0  ;;  %v1557_v18 = vtrunc.f32 %v73_v6  ;;  %v1573_v19 = vtrunc.f32 %v81_v7 }
  0x16   :  { %v1559_v20 = vtrunc.f32 %v74_v9  ;;  %v219_v21 = vrot.slane %v194_v10, %v1672_v17  ;;  %v1575_v22 = vtrunc.f32 %v82_v11  ;;  %v75_v23 = vfloor.f32 %v43_v12 }
  0x17   :  { %v315_v24 = vrot.slane %v104_v63, %v1672_v17  ;;  %v105_v25 = vsub.f32 %v41_v60, %v73_v6  ;;  %v83_v26 = vceil.f32 %v43_v12  ;;  %v45_v27 = vmin.f32 %v37_v13, 7.0 }
  0x18   :  { %vm186_vm5 = vcmp.eq.s32.totalorder %v1660_v8, %v163_v14  ;;  %vm290_vm6 = vcmp.eq.s32.totalorder %v1660_v8, %v267_v15  ;;  %v76_v28 = vfloor.f32 %v44_v16  ;;  %v84_v29 = vceil.f32 %v44_v16 }
  0x19   :  { %v1558_v30 = vcvt.f32.s32 %v1557_v18  ;;  %v1574_v31 = vcvt.f32.s32 %v1573_v19  ;;  %v106_v32 = vsub.f32 %v42_v61, %v74_v9  ;;  %v1560_v33 = vcvt.f32.s32 %v1559_v20 }
  0x1a   :  { %v1576_v34 = vcvt.f32.s32 %v1575_v22  ;;  %v1561_v35 = vtrunc.f32 %v75_v23  ;;  %v250_v36 = vsel %vm186_vm5, %v219_v21, 0.0  ;;  %v1577_v37 = vtrunc.f32 %v83_v26 }
  0x1b   :  { %v77_v38 = vfloor.f32 %v45_v27  ;;  %v85_v39 = vceil.f32 %v45_v27  ;;  %v346_v40 = vsel %vm290_vm6, %v315_v24, 0.0  ;;  %v195_v41 = vsub.f32 1.0, %v105_v25 }
  0x1c   :  { %v1563_v42 = vtrunc.f32 %v76_v28  ;;  %v1579_v43 = vtrunc.f32 %v84_v29  ;;  %v167_v44 = vrot.slane %v1558_v30, %v1672_v17  ;;  %v271_v45 = vrot.slane %v1574_v31, %v1672_v17 }
  0x1d   :  { %v171_v46 = vrot.slane %v1560_v33, %v1672_v17  ;;  %v196_v47 = vsub.f32 1.0, %v106_v32  ;;  %v319_v48 = vrot.slane %v105_v25, %v1672_v17  ;;  %v275_v49 = vrot.slane %v1576_v34, %v1672_v17 }
  0x1e   :  { %v107_v50 = vsub.f32 %v43_v12, %v75_v23  ;;  %v1562_v51 = vcvt.f32.s32 %v1561_v35  ;;  %v1578_v52 = vcvt.f32.s32 %v1577_v37  ;;  %v108_v53 = vsub.f32 %v44_v16, %v76_v28 }
  0x1f   :  { %v1565_v54 = vtrunc.f32 %v77_v38  ;;  %v1581_v55 = vtrunc.f32 %v85_v39  ;;  %v223_v56 = vrot.slane %v195_v41, %v1672_v17  ;;  %v323_v57 = vrot.slane %v106_v32, %v1672_v17 }
  0x20   :  { %v1564_v58 = vcvt.f32.s32 %v1563_v42  ;;  %v1580_v59 = vcvt.f32.s32 %v1579_v43  ;;  %vm187_vm8 = vcmp.eq.s32.totalorder %v1660_v8, %v167_v44  ;;  %vm291_vm9 = vcmp.eq.s32.totalorder %v1660_v8, %v271_v45  ;;  %v46_v42 = vld [vmem:[%s1913_s2] sm:$0x1]  ;;  %v47_v43 = vld [vmem:[%s1913_s2 + $0x1] sm:$0x1] }
  0x21   :  { %vm188_vm10 = vcmp.eq.s32.totalorder %v1660_v8, %v171_v46  ;;  %v227_v60 = vrot.slane %v196_v47, %v1672_v17  ;;  %vm292_vm11 = vcmp.eq.s32.totalorder %v1660_v8, %v275_v49  ;;  %v175_v61 = vrot.slane %v1562_v51, %v1672_v17  ;;  %v48_v46 = vld [vmem:[%s1913_s2 + $0x2] sm:$0x1] }
  0x22   :  { %v197_v62 = vsub.f32 1.0, %v107_v50  ;;  %v109_v63 = vsub.f32 %v45_v27, %v77_v38  ;;  %v279_v0 = vrot.slane %v1578_v52, %v1672_v17  ;;  %v198_v1 = vsub.f32 1.0, %v108_v53 }
  0x23   :  { %v1566_v2 = vcvt.f32.s32 %v1565_v54  ;;  %v1582_v4 = vcvt.f32.s32 %v1581_v55  ;;  %v354_v5 = vadd.f32 %v346_v40, %v250_v36  ;;  %v251_v6 = vsel %vm187_vm8, %v223_v56, 0.0  ;;  %v49_v56 = vld [vmem:[%s1913_s2 + $0x3] sm:$0x1] }
  0x24   :  { %v179_v7 = vrot.slane %v1564_v58, %v1672_v17  ;;  %v283_v9 = vrot.slane %v1580_v59, %v1672_v17  ;;  %v347_v10 = vsel %vm291_vm9, %v319_v48, 0.0  ;;  %v252_v11 = vsel %vm188_vm10, %v227_v60, 0.0  ;;  %v50_v59 = vld [vmem:[%s1913_s2 + $0x4] sm:$0x1] }
  0x25   :  { %v348_v12 = vsel %vm292_vm11, %v323_v57, 0.0  ;;  %v327_v13 = vrot.slane %v107_v50, %v1672_v17  ;;  %vm189_vm12 = vcmp.eq.s32.totalorder %v1660_v8, %v175_v61  ;;  %v231_v14 = vrot.slane %v197_v62, %v1672_v17 }
  0x26   :  { %v331_v15 = vrot.slane %v108_v53, %v1672_v17  ;;  %v199_v16 = vsub.f32 1.0, %v109_v63  ;;  %vm293_vm13 = vcmp.eq.s32.totalorder %v1660_v8, %v279_v0  ;;  %v235_v20 = vrot.slane %v198_v1, %v1672_v17 }
  0x27   :  { %v183_v21 = vrot.slane %v1566_v2, %v1672_v17  ;;  %v287_v22 = vrot.slane %v1582_v4, %v1672_v17  ;;  %vm190_vm14 = vcmp.eq.s32.totalorder %v1660_v8, %v179_v7  ;;  %vm294_vm15 = vcmp.eq.s32.totalorder %v1660_v8, %v283_v9  ;;  %v51_v7 = vld [vmem:[%s1913_s2 + $0x5] sm:$0x1] }
  0x28   :  { %v355_v23 = vadd.f32 %v347_v10, %v251_v6  ;;  %v356_v24 = vadd.f32 %v348_v12, %v252_v11  ;;  %v253_v25 = vsel %vm189_vm12, %v231_v14, 0.0  ;;  %v349_v26 = vsel %vm293_vm13, %v327_v13, 0.0 }
  0x29   :  { %v239_v27 = vrot.slane %v199_v16, %v1672_v17  ;;  %v335_v28 = vrot.slane %v109_v63, %v1672_v17  ;;  %v254_v31 = vsel %vm190_vm14, %v235_v20, 0.0  ;;  %v350_v32 = vsel %vm294_vm15, %v331_v15, 0.0  ;;  %v52_v16 = vld [vmem:[%s1913_s2 + $0x6] sm:$0x1] }
  0x2a   :  { %vm191_vm1 = vcmp.eq.s32.totalorder %v1660_v8, %v183_v21  ;;  %vm295_vm2 = vcmp.eq.s32.totalorder %v1660_v8, %v287_v22  ;;  %v357_v33 = vadd.f32 %v349_v26, %v253_v25  ;;  %v358_v34 = vadd.f32 %v350_v32, %v254_v31 }
  0x2b   :  { %v255_v35 = vsel %vm191_vm1, %v239_v27, 0.0  ;;  %v351_v36 = vsel %vm295_vm2, %v335_v28, 0.0  ;;  %v54_v44 = vmax.f32 %v46_v42, 0.0  ;;  %v55_v45 = vmax.f32 %v47_v43, 0.0 }
  0x2c   :  { %v359_v39 = vadd.f32 %v351_v36, %v255_v35  ;;  %v56_v48 = vmax.f32 %v48_v46, 0.0  ;;  %v57_v62 = vmax.f32 %v49_v56, 0.0  ;;  %v58_v4 = vmax.f32 %v50_v59, 0.0 }
  0x2d   :  { %v62_v47 = vmin.f32 %v54_v44, 7.0  ;;  %v63_v49 = vmin.f32 %v55_v45, 7.0  ;;  %v59_v20 = vmax.f32 %v51_v7, 0.0  ;;  %v60_v27 = vmax.f32 %v52_v16, 0.0 }
  0x2e   :  { %v64_v51 = vmin.f32 %v56_v48, 7.0  ;;  %v65_v11 = vmin.f32 %v57_v62, 7.0  ;;  %vm1417_vm8 = vcmask 523264  }
  0x2f   :  { %v94_v50 = vceil.f32 %v62_v47  ;;  %v87_v52 = vfloor.f32 %v63_v49  ;;  %v95_v53 = vceil.f32 %v63_v49 }
  0x30   :  { %v88_v57 = vfloor.f32 %v64_v51  ;;  %v96_v1 = vceil.f32 %v64_v51  ;;  %v89_v26 = vfloor.f32 %v65_v11  ;;  %v97_v32 = vceil.f32 %v65_v11 }
  0x31   :  { %v1599_v55 = vtrunc.f32 %v94_v50  ;;  %v1585_v58 = vtrunc.f32 %v87_v52  ;;  %v1601_v61 = vtrunc.f32 %v95_v53 }
  0x32   :  { %v1587_v2 = vtrunc.f32 %v88_v57  ;;  %v1794_v14 = vsub.f32 %v64_v51, %v88_v57  ;;  %v1603_v15 = vtrunc.f32 %v96_v1  ;;  %v1605_v45 = vtrunc.f32 %v97_v32 }
  0x33   :  { %v1600_v0 = vcvt.f32.s32 %v1599_v55  ;;  %v1586_v6 = vcvt.f32.s32 %v1585_v58  ;;  %v1602_v10 = vcvt.f32.s32 %v1601_v61  ;;  %v113_v51 = vsub.f32 %v65_v11, %v89_v26 }
  0x34   :  { %v1604_v28 = vcvt.f32.s32 %v1603_v15  ;;  %v523_v56 = vrot.slane %v1794_v14, %v1672_v17  ;;  %v1606_v59 = vcvt.f32.s32 %v1605_v45 }
  0x35   :  { %v467_v13 = vrot.slane %v1600_v0, %v1672_v17  ;;  %v367_v22 = vrot.slane %v1586_v6, %v1672_v17  ;;  %v471_v25 = vrot.slane %v1602_v10, %v1672_v17  ;;  %v527_v16 = vrot.slane %v113_v51, %v1672_v17 }
  0x36   :  { %v475_v44 = vrot.slane %v1604_v28, %v1672_v17 }
  0x37   :  { %vm496_vm3 = vcmp.eq.s32.totalorder %v1660_v8, %v467_v13  ;;  %vm393_vm4 = vcmp.eq.s32.totalorder %v1660_v8, %v367_v22  ;;  %vm497_vm5 = vcmp.eq.s32.totalorder %v1660_v8, %v471_v25 }
  0x82   :  { %v584_v18 = vpop.trf.xlu0  ;;  %v795_v19 = vpop.trf.xlu1 }
  0x83   :  { %1514 = vmatmul.mubr.msk.f32.vlgmr.msra.gmra.mrb[0].mxu0 %vm600_vm7, %v584_v18  ;;  %v1588_v18 = vcvt.f32.s32 %v1587_v2 }
  0x84   :  { %1522 = vmatpush3.msra.mxu0 %v354_v5  ;;  %1523 = vmatprep.mubr.msk.f32.mxu0 %vm1618_vm0, %v1617_v3  ;;  %v111_v5 = vsub.f32 %v63_v49, %v87_v52 }
  0x85   :  { %1531 = vmatprep.subr.mxu0 %v1617_v3  ;;  %v371_v31 = vrot.slane %v1588_v18, %v1672_v17 }
  0x86   :  { %v690_v29 = vpop.trf.xlu0  ;;  %v900_v30 = vpop.trf.xlu1  ;;  %v519_v36 = vrot.slane %v111_v5, %v1672_v17 }
  0x87   :  { %1519 = vmatmul.mubr.msk.f32.vlgmr.msra.gmra.mrb[0].mxu1 %vm600_vm7, %v690_v29  ;;  %1524 = vmatmul.mubr.msk.f32.vlgmr.msra.gmra.mrb[2].mxu0 %vm600_vm7, %v795_v19  ;;  %v66_v19 = vmin.f32 %v58_v4, 7.0  ;;  %v402_v29 = vsub.f32 1.0, %v1794_v14  ;;  %vm394_vm6 = vcmp.eq.s32.totalorder %v1660_v8, %v371_v31  ;;  %v403_v4 = vsub.f32 1.0, %v113_v51 }
  0x88   :  { %1527 = vmatpush3.msra.mxu1 %v355_v23  ;;  %1528 = vmatprep.mubr.msk.f32.mxu1 %vm1618_vm0, %v1617_v3  ;;  %v401_v23 = vsub.f32 1.0, %v111_v5  ;;  %v553_v49 = vsel %vm497_vm5, %v519_v36, 0.0 }
  0x89   :  { %1532 = vmatpush3.msra.mxu0 %v356_v24  ;;  %1533 = vmatprep.mubr.msk.f32.mxu0 %vm1618_vm0, %v1617_v3  ;;  %v427_v43 = vrot.slane %v402_v29, %v1672_v17 }
  0x8a   :  { %1536 = vmatprep.subr.mxu1 %v1617_v3  ;;  %v1005_v37 = vpop.trf.xlu0  ;;  %1541 = vmatprep.subr.mxu0 %v1617_v3  ;;  %v1110_v38 = vpop.trf.xlu1  ;;  %v423_v35 = vrot.slane %v401_v23, %v1672_v17 }
  0x8b   :  { %1529 = vmatmul.mubr.msk.f32.vlgmr.msra.gmra.mrb[2].mxu1 %vm600_vm7, %v900_v30  ;;  %1534 = vmatmul.mubr.msk.f32.vlgmr.msra.gmra.mrb[4].mxu0 %vm600_vm7, %v1005_v37  ;;  %v53_v30 = vld [vmem:[%s1913_s2 + $0x7] sm:$0x1]  ;;  %v98_v37 = vceil.f32 %v66_v19 }
  0x8c   :  { %1537 = vmatpush3.msra.mxu1 %v357_v33  ;;  %1538 = vmatprep.mubr.msk.f32.mxu1 %vm1618_vm0, %v1617_v3  ;;  %v90_v33 = vfloor.f32 %v66_v19  ;;  %v457_v48 = vsel %vm393_vm4, %v423_v35, 0.0 }
  0x8d   :  { %1542 = vmatpush3.msra.mxu0 %v358_v34  ;;  %1543 = vmatprep.mubr.msk.f32.mxu0 %vm1618_vm0, %v1617_v3  ;;  %v67_v34 = vmin.f32 %v59_v20, 7.0  ;;  %v1826_v62 = vadd.f32 %v553_v49, %v457_v48 }
  0x8e   :  { %1546 = vmatprep.subr.mxu1 %v1617_v3  ;;  %v1215_v40 = vpop.trf.xlu0  ;;  %v1320_v41 = vpop.trf.xlu1  ;;  %v1591_v46 = vtrunc.f32 %v90_v33  ;;  %v114_v57 = vsub.f32 %v66_v19, %v90_v33 }
  0x8f   :  { %1539 = vmatmul.mubr.msk.f32.vlgmr.msra.gmra.mrb[4].mxu1 %vm600_vm7, %v1110_v38  ;;  %1544 = vmatmul.mubr.msk.f32.vlgmr.msra.gmra.mrb[6].mxu0 %vm600_vm7, %v1215_v40  ;;  %v1589_v38 = vtrunc.f32 %v89_v26  ;;  %v61_v40 = vmax.f32 %v53_v30, 0.0  ;;  %v99_v50 = vceil.f32 %v67_v34 }
  0x90   :  { %1547 = vmatpush3.msra.mxu1 %v359_v39  ;;  %1548 = vmatprep.mubr.msk.f32.mxu1 %vm1618_vm0, %v1617_v3  ;;  %v86_v3 = vfloor.f32 %v62_v47  ;;  %v68_v39 = vmin.f32 %v60_v27, 7.0  ;;  %v531_v25 = vrot.slane %v114_v57, %v1672_v17 }
  0x91   :  { %v1590_v52 = vcvt.f32.s32 %v1589_v38  ;;  %v1609_v1 = vtrunc.f32 %v99_v50 }
  0x92   :  { %v1583_v54 = vtrunc.f32 %v86_v3  ;;  %v110_v60 = vsub.f32 %v62_v47, %v86_v3  ;;  %v91_v47 = vfloor.f32 %v67_v34  ;;  %v1607_v3 = vtrunc.f32 %v98_v37 }
  0x93   :  { %1549 = vmatmul.mubr.msk.f32.vlgmr.msra.gmra.mrb[6].mxu1 %vm600_vm7, %v1320_v41  ;;  %v92_v53 = vfloor.f32 %v68_v39  ;;  %v100_v58 = vceil.f32 %v68_v39  ;;  %vm498_vm7 = vcmp.eq.s32.totalorder %v1660_v8, %v475_v44  ;;  %v375_v2 = vrot.slane %v1590_v52, %v1672_v17 }
  0x94   :  { %v1584_v63 = vcvt.f32.s32 %v1583_v54  ;;  %v400_v9 = vsub.f32 1.0, %v110_v60  ;;  %v515_v21 = vrot.slane %v110_v60, %v1672_v17  ;;  %v69_v54 = vmin.f32 %v61_v40, 7.0 }
  0x95   :  { %v1592_v60 = vcvt.f32.s32 %v1591_v46  ;;  %v1593_v61 = vtrunc.f32 %v91_v47  ;;  %v1608_v0 = vcvt.f32.s32 %v1607_v3  ;;  %v1595_v5 = vtrunc.f32 %v92_v53 }
  0x96   :  { %v363_v12 = vrot.slane %v1584_v63, %v1672_v17  ;;  %v419_v24 = vrot.slane %v400_v9, %v1672_v17  ;;  %v552_v42 = vsel %vm496_vm3, %v515_v21, 0.0  ;;  %v458_v63 = vsel %vm394_vm6, %v427_v43, 0.0 }
  0x97   :  { %v93_v6 = vfloor.f32 %v69_v54  ;;  %v554_v7 = vsel %vm498_vm7, %v523_v56, 0.0  ;;  %v404_v9 = vsub.f32 1.0, %v114_v57  ;;  %v1611_v10 = vtrunc.f32 %v100_v58 }
  0x98   :  { %vm392_vm0 = vcmp.eq.s32.totalorder %v1660_v8, %v363_v12  ;;  %v101_v11 = vceil.f32 %v69_v54  ;;  %v479_v12 = vrot.slane %v1606_v59, %v1672_v17  ;;  %v379_v13 = vrot.slane %v1592_v60, %v1672_v17 }
  0x99   :  { %v456_v41 = vsel %vm392_vm0, %v419_v24, 0.0  ;;  %v115_v14 = vsub.f32 %v67_v34, %v91_v47  ;;  %v1594_v15 = vcvt.f32.s32 %v1593_v61  ;;  %v483_v18 = vrot.slane %v1608_v0, %v1672_v17 }
  0x9a   :  { %v560_v55 = vadd.f32 %v552_v42, %v456_v41  ;;  %v1610_v19 = vcvt.f32.s32 %v1609_v1  ;;  %v116_v20 = vsub.f32 %v68_v39, %v92_v53  ;;  %vm395_vm9 = vcmp.eq.s32.totalorder %v1660_v8, %v375_v2 }
  0x9b   :  { %v431_v21 = vrot.slane %v403_v4, %v1672_v17  ;;  %v1596_v22 = vcvt.f32.s32 %v1595_v5  ;;  %v1597_v23 = vtrunc.f32 %v93_v6  ;;  %v435_v24 = vrot.slane %v404_v9, %v1672_v17 }
  0x9c   :  { %v1612_v26 = vcvt.f32.s32 %v1611_v10  ;;  %v1613_v27 = vtrunc.f32 %v101_v11  ;;  %vm499_vm10 = vcmp.eq.s32.totalorder %v1660_v8, %v479_v12  ;;  %vm396_vm11 = vcmp.eq.s32.totalorder %v1660_v8, %v379_v13 }
  0x9d   :  { %v383_v28 = vrot.slane %v1594_v15, %v1672_v17  ;;  %v405_v29 = vsub.f32 1.0, %v115_v14  ;;  %vm500_vm12 = vcmp.eq.s32.totalorder %v1660_v8, %v483_v18  ;;  %v487_v30 = vrot.slane %v1610_v19, %v1672_v17 }
  0x9e   :  { %v406_v31 = vsub.f32 1.0, %v116_v20  ;;  %v117_v32 = vsub.f32 %v69_v54, %v93_v6  ;;  %v562_v33 = vadd.f32 %v554_v7, %v458_v63  ;;  %v459_v34 = vsel %vm395_vm9, %v431_v21, 0.0 }
  0x9f   :  { %v387_v35 = vrot.slane %v1596_v22, %v1672_v17  ;;  %v1598_v36 = vcvt.f32.s32 %v1597_v23  ;;  %v555_v37 = vsel %vm499_vm10, %v527_v16, 0.0  ;;  %v460_v38 = vsel %vm396_vm11, %v435_v24, 0.0 }
  0xa0   :  { %v491_v39 = vrot.slane %v1612_v26, %v1672_v17  ;;  %v1614_v40 = vcvt.f32.s32 %v1613_v27  ;;  %v556_v42 = vsel %vm500_vm12, %v531_v25, 0.0  ;;  %vm397_vm13 = vcmp.eq.s32.totalorder %v1660_v8, %v383_v28 }
  0xa1   :  { %v439_v43 = vrot.slane %v405_v29, %v1672_v17  ;;  %v535_v44 = vrot.slane %v115_v14, %v1672_v17  ;;  %vm501_vm14 = vcmp.eq.s32.totalorder %v1660_v8, %v487_v30  ;;  %v443_v47 = vrot.slane %v406_v31, %v1672_v17 }
  0xa2   :  { %v407_v48 = vsub.f32 1.0, %v117_v32  ;;  %vm398_vm15 = vcmp.eq.s32.totalorder %v1660_v8, %v387_v35  ;;  %v539_v49 = vrot.slane %v116_v20, %v1672_v17  ;;  %v391_v3 = vrot.slane %v1598_v36, %v1672_v17 }
  0xa3   :  { %v563_v51 = vadd.f32 %v555_v37, %v459_v34  ;;  %vm502_vm1 = vcmp.eq.s32.totalorder %v1660_v8, %v491_v39  ;;  %v495_v52 = vrot.slane %v1614_v40, %v1672_v17  ;;  %v564_v56 = vadd.f32 %v556_v42, %v460_v38 }
  0xa4   :  { %v461_v57 = vsel %vm397_vm13, %v439_v43, 0.0  ;;  %v557_v58 = vsel %vm501_vm14, %v535_v44, 0.0  ;;  %v462_v0 = vsel %vm398_vm15, %v443_v47, 0.0  ;;  %v447_v1 = vrot.slane %v407_v48, %v1672_v17 }
  0xa5   :  { %v558_v4 = vsel %vm502_vm1, %v539_v49, 0.0  ;;  %vm399_vm2 = vcmp.eq.s32.totalorder %v1660_v8, %v391_v3  ;;  %v543_v5 = vrot.slane %v117_v32, %v1672_v17  ;;  %vm503_vm0 = vcmp.eq.s32.totalorder %v1660_v8, %v495_v52 }
  0xa6   :  { %v565_v13 = vadd.f32 %v557_v58, %v461_v57  ;;  %v566_v19 = vadd.f32 %v558_v4, %v462_v0  ;;  %v463_v17 = vsel %vm399_vm2, %v447_v1, 0.0  ;;  %vm1474_vm3 = vcmask 516096  }
  0xa7   :  { %v559_v23 = vsel %vm503_vm0, %v543_v5, 0.0 }
  0xa8   :  { %v567_v37 = vadd.f32 %v559_v23, %v463_v17 }
 0x156   :  { %v670_v41 = vpop.f32.mrb[0].mxu0 }
 0x157   :  { %v1409_v45 = vmul.f32 %v670_v41, %v560_v55  ;;  %v1515_v46 = vpop.f32.mrb[1].mxu0 }
 0x159   :  { %v1418_v50 = vsel %vm1417_vm8, %v1409_v45, 0.0 }
 0x15a   :  { %v1419_v53 = vrot.slane %v1418_v50, 4  ;;  %v775_v54 = vpop.f32.mrb[0].mxu1  ;;  %v880_v55 = vpop.f32.mrb[2].mxu0 }
 0x15b   :  { %v1410_v59 = vmul.f32 %v775_v54, %v1826_v62  ;;  %v1411_v60 = vmul.f32 %v880_v55, %v562_v33  ;;  %v1520_v61 = vpop.f32.mrb[1].mxu1  ;;  %v1525_v63 = vpop.f32.mrb[3].mxu0 }
 0x15c   :  { %v1420_v2 = vadd.f32 %v1419_v53, %v1418_v50 }
 0x15d   :  { %v1425_v6 = vsel %vm1417_vm8, %v1410_v59, 0.0  ;;  %v1432_v7 = vsel %vm1417_vm8, %v1411_v60, 0.0 }
 0x15e   :  { %v1421_v62 = vrot.slane %v1420_v2, 2  ;;  %v1426_v9 = vrot.slane %v1425_v6, 4  ;;  %v1433_v10 = vrot.slane %v1432_v7, 4  ;;  %v985_v11 = vpop.f32.mrb[2].mxu1  ;;  %v1090_v12 = vpop.f32.mrb[4].mxu0 }
 0x15f   :  { %v1412_v14 = vmul.f32 %v985_v11, %v563_v51  ;;  %v1413_v15 = vmul.f32 %v1090_v12, %v564_v56  ;;  %v1530_v16 = vpop.f32.mrb[3].mxu1  ;;  %v1535_v18 = vpop.f32.mrb[5].mxu0 }
 0x160   :  { %v1422_v20 = vadd.f32 %v1421_v62, %v1420_v2  ;;  %v1427_v21 = vadd.f32 %v1426_v9, %v1425_v6  ;;  %v1434_v22 = vadd.f32 %v1433_v10, %v1432_v7 }
 0x161   :  { %v1439_v24 = vsel %vm1417_vm8, %v1412_v14, 0.0  ;;  %v1446_v25 = vsel %vm1417_vm8, %v1413_v15, 0.0 }
 0x162   :  { %v1423_v26 = vrot.slane %v1422_v20, 1  ;;  %v1428_v27 = vrot.slane %v1427_v21, 2  ;;  %v1435_v28 = vrot.slane %v1434_v22, 2  ;;  %v1440_v29 = vrot.slane %v1439_v24, 4  ;;  %v1195_v30 = vpop.f32.mrb[4].mxu1  ;;  %v1300_v31 = vpop.f32.mrb[6].mxu0 }
 0x163   :  { %v1447_v32 = vrot.slane %v1446_v25, 4  ;;  %v1414_v33 = vmul.f32 %v1195_v30, %v565_v13  ;;  %v1415_v34 = vmul.f32 %v1300_v31, %v566_v19  ;;  %v1540_v35 = vpop.f32.mrb[5].mxu1  ;;  %v1545_v36 = vpop.f32.mrb[7].mxu0 }
 0x164   :  { %v1424_v38 = vadd.f32 %v1423_v26, %v1422_v20  ;;  %v1429_v8 = vadd.f32 %v1428_v27, %v1427_v21  ;;  %v1436_v39 = vadd.f32 %v1435_v28, %v1434_v22  ;;  %v1441_v40 = vadd.f32 %v1440_v29, %v1439_v24 }
 0x165   :  { %v1448_v41 = vadd.f32 %v1447_v32, %v1446_v25  ;;  %v1453_v42 = vsel %vm1417_vm8, %v1414_v33, 0.0  ;;  %v1460_v43 = vsel %vm1417_vm8, %v1415_v34, 0.0 }
 0x166   :  { %1475 = vst.msk [vmem:[%s1914_s3] sm:$0x1] %vm1474_vm3, %v1424_v38  ;;  %v1430_v44 = vrot.slane %v1429_v8, 1  ;;  %v1437_v45 = vrot.slane %v1436_v39, 1  ;;  %v1442_v46 = vrot.slane %v1441_v40, 2  ;;  %v1454_v47 = vrot.slane %v1453_v42, 4 }
 0x167   :  { %v1405_v48 = vpop.f32.mrb[6].mxu1  ;;  %v1449_v49 = vrot.slane %v1448_v41, 2  ;;  %v1461_v3 = vrot.slane %v1460_v43, 4 }
 0x168   :  { %v1416_v50 = vmul.f32 %v1405_v48, %v567_v37  ;;  %v1550_v51 = vpop.f32.mrb[7].mxu1  ;;  %v1431_v52 = vadd.f32 %v1430_v44, %v1429_v8  ;;  %v1438_v53 = vadd.f32 %v1437_v45, %v1436_v39  ;;  %v1443_v54 = vadd.f32 %v1442_v46, %v1441_v40 }
 0x169   :  { %v1455_v55 = vadd.f32 %v1454_v47, %v1453_v42  ;;  %v1450_v56 = vadd.f32 %v1449_v49, %v1448_v41  ;;  %v1462_v57 = vadd.f32 %v1461_v3, %v1460_v43 }
 0x16a   :  { %v1467_v58 = vsel %vm1417_vm8, %v1416_v50, 0.0  ;;  %1476 = vst.msk [vmem:[%s1914_s3 + $0x1] sm:$0x1] %vm1474_vm3, %v1431_v52  ;;  %1477 = vst.msk [vmem:[%s1914_s3 + $0x2] sm:$0x1] %vm1474_vm3, %v1438_v53  ;;  %v1444_v59 = vrot.slane %v1443_v54, 1 }
 0x16b   :  { %v1456_v60 = vrot.slane %v1455_v55, 2  ;;  %v1468_v61 = vrot.slane %v1467_v58, 4  ;;  %v1451_v63 = vrot.slane %v1450_v56, 1  ;;  %v1463_v0 = vrot.slane %v1462_v57, 2 }
 0x16c   :  { %v1445_v1 = vadd.f32 %v1444_v59, %v1443_v54 }
 0x16d   :  { %v1457_v2 = vadd.f32 %v1456_v60, %v1455_v55  ;;  %v1469_v4 = vadd.f32 %v1468_v61, %v1467_v58  ;;  %v1452_v5 = vadd.f32 %v1451_v63, %v1450_v56  ;;  %v1464_v6 = vadd.f32 %v1463_v0, %v1462_v57 }
 0x16e   :  { %1478 = vst.msk [vmem:[%s1914_s3 + $0x3] sm:$0x1] %vm1474_vm3, %v1445_v1 }
 0x16f   :  { %v1458_v7 = vrot.slane %v1457_v2, 1  ;;  %v1470_v62 = vrot.slane %v1469_v4, 2  ;;  %1479 = vst.msk [vmem:[%s1914_s3 + $0x4] sm:$0x1] %vm1474_vm3, %v1452_v5  ;;  %v1465_v9 = vrot.slane %v1464_v6, 1 }
 0x171   :  { %v1459_v10 = vadd.f32 %v1458_v7, %v1457_v2  ;;  %v1471_v11 = vadd.f32 %v1470_v62, %v1469_v4  ;;  %v1466_v12 = vadd.f32 %v1465_v9, %v1464_v6 }
 0x173   :  { %1480 = vst.msk [vmem:[%s1914_s3 + $0x5] sm:$0x1] %vm1474_vm3, %v1459_v10  ;;  %v1472_v13 = vrot.slane %v1471_v11, 1  ;;  %1481 = vst.msk [vmem:[%s1914_s3 + $0x6] sm:$0x1] %vm1474_vm3, %v1466_v12 }
 0x175   :  { %v1473_v14 = vadd.f32 %v1472_v13, %v1471_v11 }
 0x177   :  { %1482 = vst.msk [vmem:[%s1914_s3 + $0x7] sm:$0x1] %vm1474_vm3, %v1473_v14 }

// kernel: _lambda_.9
= control target key start
LH: loop header
LB: loop body
LE: loop exit
PB: predicated region body
PF: predicated region fallthrough
CT: control target
= control target key end

     0   :  { %vm72_vm0 = vcmask 1041408   ;;  %vm47_vm1 = vcmask 31744   ;;  %s578_s0 = inlined_call_operand.vmem [shape: f32[128,4], index: 0, kind: input, shape index: {}]   ;;  %s579_s1 = inlined_call_operand.vmem [shape: bf16[4,16], index: 1, kind: input, shape index: {}]   ;;  %s580_s2 = inlined_call_operand.vmem [shape: f32[1,16], index: 2, kind: input, shape index: {}]   ;;  %s581_s3 = inlined_call_operand.vmem [shape: f32[1,16], index: 3, kind: input, shape index: {}]   ;;  %s582_s4 = inlined_call_operand.vmem [shape: f32[128,16], index: 4, kind: input, shape index: {}]   ;;  %s583_s5 = inlined_call_operand.hbm [shape: f32[128,16], index: 5, kind: output, shape index: {}]  }
   0x1   :  { %v46_v0 = vld [vmem:[%s579_s1] sm:$0x3]  ;;  %v23_v2 = vld [vmem:[%s578_s0 + $0x8] sm:$0xff]  ;;  %v24_v7 = vld [vmem:[%s578_s0 + $0x10] sm:$0xff] }
   0x2   :  { %v22_v1 = vld [vmem:[%s578_s0] sm:$0xff]  ;;  %339 = vmatprep.subr.msk.bf16.mxu0 %vm72_vm0, %v46_v0  ;;  %340 = vmatprep.subr.msk.bf16.mxu1 %vm72_vm0, %v46_v0  ;;  %v74_v3 = vsel %vm72_vm0, %v46_v0, 0  ;;  %v31_v6 = vld [vmem:[%s578_s0 + $0x48] sm:$0xff]  ;;  %v25_v9 = vld [vmem:[%s578_s0 + $0x18] sm:$0xff] }
   0x3   :  { %v38_v4 = vpack.c.bf16 %v23_v2, %v22_v1  ;;  %v30_v5 = vld [vmem:[%s578_s0 + $0x40] sm:$0xff]  ;;  %320 = vmatpush3.bf16.msra.mxu0 %v74_v3  ;;  %338 = vmatpush3.bf16.msra.mxu1 %v74_v3  ;;  %v32_v10 = vld [vmem:[%s578_s0 + $0x50] sm:$0xff]  ;;  %v33_v11 = vld [vmem:[%s578_s0 + $0x58] sm:$0xff]  ;;  %v39_v12 = vpack.c.bf16 %v25_v9, %v24_v7 }
   0x4   :  { %v42_v8 = vpack.c.bf16 %v31_v6, %v30_v5  ;;  %v43_v13 = vpack.c.bf16 %v33_v11, %v32_v10  ;;  %v26_v14 = vld [vmem:[%s578_s0 + $0x20] sm:$0xff]  ;;  %v27_v15 = vld [vmem:[%s578_s0 + $0x28] sm:$0xff]  ;;  %v28_v20 = vld [vmem:[%s578_s0 + $0x30] sm:$0xff] }
   0x5   :  { %321 = vmatprep.mubr.msk.bf16.mxu0 %vm47_vm1, %v38_v4  ;;  %v34_v16 = vld [vmem:[%s578_s0 + $0x60] sm:$0xff]  ;;  %v40_v17 = vpack.c.bf16 %v27_v15, %v26_v14  ;;  %v35_v18 = vld [vmem:[%s578_s0 + $0x68] sm:$0xff] }
   0x6   :  { %329 = vmatprep.mubr.msk.bf16.mxu1 %vm47_vm1, %v42_v8  ;;  %322 = vmatmul.mubr.msk.bf16.vlgmr.msra.gmra.mrb[0].mxu0 %vm47_vm1, %v39_v12  ;;  %v44_v19 = vpack.c.bf16 %v35_v18, %v34_v16 }
   0x7   :  { %330 = vmatmul.mubr.msk.bf16.vlgmr.msra.gmra.mrb[0].mxu1 %vm47_vm1, %v43_v13 }
   0x8   :  { %10 = vsyncpa [#allocation3], 0  ;;  %325 = vmatprep.mubr.msk.bf16.mxu0 %vm47_vm1, %v40_v17  ;;  %v29_v21 = vld [vmem:[%s578_s0 + $0x38] sm:$0xff]  ;;  %v36_v22 = vld [vmem:[%s578_s0 + $0x70] sm:$0xff]  ;;  %333 = vmatprep.mubr.msk.bf16.mxu1 %vm47_vm1, %v44_v19  ;;  %vm267_vm2 = vcmask 130048   ;;  %s368_s30 = smov [#allocation2]  }
   0x9   :  { %v37_v23 = vld [vmem:[%s578_s0 + $0x78] sm:$0xff]  ;;  %v41_v24 = vpack.c.bf16 %v29_v21, %v28_v20  ;;  %v463_v26 = vld [vmem:[%s580_s2] ss:$0 sm:$0xff]  ;;  %v221_v34 = vld [vmem:[%s582_s4 + $0x10] sm:$0xff] }
   0xa   :  { %v45_v25 = vpack.c.bf16 %v37_v23, %v36_v22  ;;  %v468_v28 = vld [vmem:[%s581_s3] ss:$0 sm:$0xff]  ;;  %v229_v35 = vld [vmem:[%s582_s4 + $0x50] sm:$0xff]  ;;  %v222_v50 = vld [vmem:[%s582_s4 + $0x18] sm:$0xff]  ;;  %s289_s3 = sshll.u32 %s368_s30, 4  ;;  %s290_s3 = int_to_ptr.vmem [resolvable:$true] %s289_s3 }
   0xb   :  { %v219_v42 = vld [vmem:[%s582_s4] sm:$0xff]  ;;  %v230_v51 = vld [vmem:[%s582_s4 + $0x58] sm:$0xff]  ;;  %v220_v58 = vld [vmem:[%s582_s4 + $0x8] sm:$0xff]  ;;  %p349_p1 = scmp.lt.s32.totalorder %s290_s3, %s290_s3 }
   0xc   :  { %v227_v43 = vld [vmem:[%s582_s4 + $0x40] sm:$0xff]  ;;  %v228_v59 = vld [vmem:[%s582_s4 + $0x48] sm:$0xff]  ;;  %v225_v18 = vld [vmem:[%s582_s4 + $0x30] sm:$0xff] }
   0xd   :  { %v233_v19 = vld [vmem:[%s582_s4 + $0x70] sm:$0xff] }
   0xe   :  { %326 = vmatmul.mubr.msk.bf16.gmra.mrb[4].mxu0 %vm47_vm1, %v41_v24 }
   0xf   :  { %334 = vmatmul.mubr.msk.bf16.gmra.mrb[4].mxu1 %vm47_vm1, %v45_v25 }
  0xd9   :  { %v323_v27 = vpop.f32.mrb[0].mxu0 }
  0xda   :  { %v331_v29 = vpop.f32.mrb[0].mxu1  ;;  %v182_v30 = vmul.f32 %v323_v27, %v463_v26  ;;  %v110_v32 = vpop.f32.mrb[1].mxu0  ;;  %v223_v27 = vld [vmem:[%s582_s4 + $0x20] sm:$0xff] }
  0xdb   :  { %v190_v31 = vmul.f32 %v331_v29, %v463_v26  ;;  %v142_v33 = vpop.f32.mrb[1].mxu1  ;;  %v180_v36 = vmul.f32 %v463_v26, %v110_v32  ;;  %v324_v38 = vpop.f32.mrb[2].mxu0  ;;  %v231_v29 = vld [vmem:[%s582_s4 + $0x60] sm:$0xff] }
  0xdc   :  { %v188_v37 = vmul.f32 %v463_v26, %v142_v33  ;;  %v332_v39 = vpop.f32.mrb[2].mxu1  ;;  %v205_v40 = vadd.f32 %v468_v28, %v182_v30  ;;  %v183_v44 = vmul.f32 %v324_v38, %v463_v26  ;;  %v113_v46 = vpop.f32.mrb[3].mxu0 }
  0xdd   :  { %v213_v41 = vadd.f32 %v468_v28, %v190_v31  ;;  %v191_v45 = vmul.f32 %v332_v39, %v463_v26  ;;  %v145_v47 = vpop.f32.mrb[3].mxu1  ;;  %v203_v48 = vadd.f32 %v468_v28, %v180_v36  ;;  %v181_v52 = vmul.f32 %v463_v26, %v113_v46  ;;  %v226_v36 = vld [vmem:[%s582_s4 + $0x38] sm:$0xff] }
  0xde   :  { %v211_v49 = vadd.f32 %v468_v28, %v188_v37  ;;  %v189_v53 = vmul.f32 %v463_v26, %v145_v47  ;;  %v237_v54 = vadd.f32 %v221_v34, %v205_v40  ;;  %v206_v56 = vadd.f32 %v468_v28, %v183_v44  ;;  %v234_v37 = vld [vmem:[%s582_s4 + $0x78] sm:$0xff]  ;;  %v224_v44 = vld [vmem:[%s582_s4 + $0x28] sm:$0xff] }
  0xdf   :  { %v245_v55 = vadd.f32 %v229_v35, %v213_v41  ;;  %v214_v57 = vadd.f32 %v468_v28, %v191_v45  ;;  %v235_v60 = vadd.f32 %v219_v42, %v203_v48  ;;  %v204_v62 = vadd.f32 %v468_v28, %v181_v52  ;;  %v232_v45 = vld [vmem:[%s582_s4 + $0x68] sm:$0xff]  ;;  %s344_s4 = scalar_lea.vmem %s290_s3, 2048 }
  0xe0   :  { %v243_v61 = vadd.f32 %v227_v43, %v211_v49  ;;  %v212_v63 = vadd.f32 %v468_v28, %v189_v53  ;;  %v253_v0 = vmax.f32 %v237_v54, 0.0  ;;  %v238_v2 = vadd.f32 %v222_v50, %v206_v56  ;;  %p345_p0 = scmp.ne.s32.totalorder %s290_s3, %s344_s4  ;;  %p350_p2 = scmp.lt.s32.totalorder %s344_s4, %s344_s4 }
  0xe1   :  { %v261_v1 = vmax.f32 %v245_v55, 0.0  ;;  %v246_v3 = vadd.f32 %v230_v51, %v214_v57  ;;  %v251_v4 = vmax.f32 %v235_v60, 0.0  ;;  %v236_v6 = vadd.f32 %v220_v58, %v204_v62  ;;  %v327_v8 = vpop.f32.mrb[4].mxu0 }
  0xe2   :  { %v259_v5 = vmax.f32 %v243_v61, 0.0  ;;  %v244_v7 = vadd.f32 %v228_v59, %v212_v63  ;;  %v335_v9 = vpop.f32.mrb[4].mxu1  ;;  %270 = vst.msk [vmem:[#allocation2 + $0x10] sm:$0xff] %vm267_vm2, %v253_v0  ;;  %v254_v10 = vmax.f32 %v238_v2, 0.0  ;;  %v186_v12 = vmul.f32 %v327_v8, %v463_v26  ;;  %v126_v14 = vpop.f32.mrb[5].mxu0  ;;  %p351_p3 = por %p350_p2, %p349_p1 }
  0xe3   :  { %278 = vst.msk [vmem:[#allocation2 + $0x50] sm:$0xff] %vm267_vm2, %v261_v1  ;;  %v262_v11 = vmax.f32 %v246_v3, 0.0  ;;  %v194_v13 = vmul.f32 %v335_v9, %v463_v26  ;;  %v158_v15 = vpop.f32.mrb[5].mxu1  ;;  %268 = vst.msk [vmem:[#allocation2] sm:$0xff] %vm267_vm2, %v251_v4  ;;  %v252_v16 = vmax.f32 %v236_v6, 0.0  ;;  %v184_v20 = vmul.f32 %v463_v26, %v126_v14  ;;  %v328_v22 = vpop.f32.mrb[6].mxu0 }
  0xe4   :  { %276 = vst.msk [vmem:[#allocation2 + $0x40] sm:$0xff] %vm267_vm2, %v259_v5  ;;  %v260_v17 = vmax.f32 %v244_v7, 0.0  ;;  %v192_v21 = vmul.f32 %v463_v26, %v158_v15  ;;  %v336_v23 = vpop.f32.mrb[6].mxu1  ;;  %271 = vst.msk [vmem:[#allocation2 + $0x18] sm:$0xff] %vm267_vm2, %v254_v10  ;;  %v209_v24 = vadd.f32 %v468_v28, %v186_v12  ;;  %v187_v30 = vmul.f32 %v328_v22, %v463_v26  ;;  %v129_v32 = vpop.f32.mrb[7].mxu0  ;;  %p352_p4 = pnand %p351_p3, %p345_p0 }
  0xe5   :  { %279 = vst.msk [vmem:[#allocation2 + $0x58] sm:$0xff] %vm267_vm2, %v262_v11  ;;  %v217_v25 = vadd.f32 %v468_v28, %v194_v13  ;;  %v195_v31 = vmul.f32 %v336_v23, %v463_v26  ;;  %v161_v33 = vpop.f32.mrb[7].mxu1  ;;  %269 = vst.msk [vmem:[#allocation2 + $0x8] sm:$0xff] %vm267_vm2, %v252_v16  ;;  %v207_v34 = vadd.f32 %v468_v28, %v184_v20 }
  0xe6   :  { %277 = vst.msk [vmem:[#allocation2 + $0x48] sm:$0xff] %vm267_vm2, %v260_v17  ;;  %v215_v35 = vadd.f32 %v468_v28, %v192_v21  ;;  %v185_v38 = vmul.f32 %v463_v26, %v129_v32  ;;  %v193_v39 = vmul.f32 %v463_v26, %v161_v33  ;;  %v241_v40 = vadd.f32 %v225_v18, %v209_v24 }
  0xe7   :  { %v249_v41 = vadd.f32 %v233_v19, %v217_v25  ;;  %v210_v42 = vadd.f32 %v468_v28, %v187_v30  ;;  %v218_v43 = vadd.f32 %v468_v28, %v195_v31  ;;  %v239_v46 = vadd.f32 %v223_v27, %v207_v34 }
  0xe8   :  { %v247_v47 = vadd.f32 %v231_v29, %v215_v35  ;;  %v208_v48 = vadd.f32 %v468_v28, %v185_v38  ;;  %v216_v26 = vadd.f32 %v468_v28, %v193_v39  ;;  %v257_v49 = vmax.f32 %v241_v40, 0.0 }
  0xe9   :  { %v265_v50 = vmax.f32 %v249_v41, 0.0  ;;  %v242_v51 = vadd.f32 %v226_v36, %v210_v42  ;;  %v250_v52 = vadd.f32 %v234_v37, %v218_v43  ;;  %v255_v53 = vmax.f32 %v239_v46, 0.0 }
  0xea   :  { %v263_v54 = vmax.f32 %v247_v47, 0.0  ;;  %v240_v55 = vadd.f32 %v224_v44, %v208_v48  ;;  %v248_v56 = vadd.f32 %v232_v45, %v216_v26  ;;  %274 = vst.msk [vmem:[#allocation2 + $0x30] sm:$0xff] %vm267_vm2, %v257_v49 }
  0xeb   :  { %282 = vst.msk [vmem:[#allocation2 + $0x70] sm:$0xff] %vm267_vm2, %v265_v50  ;;  %v258_v57 = vmax.f32 %v242_v51, 0.0  ;;  %v266_v58 = vmax.f32 %v250_v52, 0.0  ;;  %272 = vst.msk [vmem:[#allocation2 + $0x20] sm:$0xff] %vm267_vm2, %v255_v53 }
  0xec   :  { %280 = vst.msk [vmem:[#allocation2 + $0x60] sm:$0xff] %vm267_vm2, %v263_v54  ;;  %v256_v28 = vmax.f32 %v240_v55, 0.0  ;;  %v264_v59 = vmax.f32 %v248_v56, 0.0 }
  0xed   :  { %275 = vst.msk [vmem:[#allocation2 + $0x38] sm:$0xff] %vm267_vm2, %v258_v57  ;;  %283 = vst.msk [vmem:[#allocation2 + $0x78] sm:$0xff] %vm267_vm2, %v266_v58 }
  0xee   :  { %273 = vst.msk [vmem:[#allocation2 + $0x28] sm:$0xff] %vm267_vm2, %v256_v28  ;;  %281 = vst.msk [vmem:[#allocation2 + $0x68] sm:$0xff] %vm267_vm2, %v264_v59 }
  0xef   :  { %355 = shalt.err (!%p352_p4)
}
  0xf0   :  { %s356_s8 = scalar_lea.hbm %s583_s5, 2048 }
  0xf1   :  { %p357_p5 = scmp.ne.s32.totalorder %s583_s5, %s356_s8  ;;  %p360_p6 = scmp.lt.u32.totalorder %s356_s8, %s583_s5 }
  0xf3   :  { %p362_p7 = pnand %p360_p6, %p357_p5 }
  0xf5   :  { %365 = shalt.err (!%p362_p7)
}
  0xf6   :  { %s369_s13 = smov 128   ;;  %s370_s14 = smov 8  }
  0xf7   :  { %295 = dma.vmem_to_hbm [thread:$0]  %s290_s3, 2048, %s583_s5, [#allocation3], %s369_s13, %s369_s13, %s370_s14  }
  0xf8   :  { %366 = dma.done.wait [#allocation3], 2048  }
  0xf9   :  { %367 = vsyncadd [#allocation3], 4294965248 }
  0xfa   :  { %299 = vsyncpa [#allocation3], 1 }

// kernel: _lambda_.8
= control target key start
LH: loop header
LB: loop body
LE: loop exit
PB: predicated region body
PF: predicated region fallthrough
CT: control target
= control target key end

     0   :  { %s1555_s15 = smov 0   ;;  %s1754_s0 = inlined_call_operand.vmem [shape: f32[2,8,8,4], index: 0, kind: input, shape index: {}]   ;;  %s1755_s1 = inlined_call_operand.vmem [shape: bf16[9,4,4], index: 1, kind: input, shape index: {}]   ;;  %s1756_s2 = inlined_call_operand.vmem [shape: f32[1,4], index: 2, kind: input, shape index: {}]   ;;  %s1757_s3 = inlined_call_operand.vmem [shape: f32[1,4], index: 3, kind: input, shape index: {}]   ;;  %s1758_s4 = inlined_call_operand.vmem [shape: f32[2,8,8,4], index: 4, kind: output, shape index: {}]  }
   0x1 LB: > { %s1242_s16 = sadd.s32 4294967295, %s1527_s15   ;;  %p1246_p0 = scmp.ge.s32.totalorder %s1527_s15, 1  ;;  %s1527_s15 = sphi %s1555_s15, %s14_s15  }
   0x2   : > { %p162_p1 = scmp.lt.s32.totalorder %s1527_s15, 3 }
   0x4   : > { %p163_p2 = pnand %p1246_p0, %p162_p1 }
   0x5   : > { %v1251_v0 = vld [vmem:[%s1755_s1 + $0x2] sm:$0x3] (!%p163_p2)  ;;  %vm277_vm0 = vcmask (!%p163_p2), 1041408   ;;  %v1569_v1 = vld [vmem:[%s1755_s1 + $0x8] sm:$0x3] (!%p163_p2)  ;;  %p188_p3 = scmp.lt.s32.totalorder (!%p163_p2), %s1242_s16, 1 }
   0x6   : > { %166 = sbr.rel (%p163_p2) target bundleno = 321 (0x141), region = 36  ;;  %1502 = vmatprep.subr.msk.bf16.mxu1 (!%p163_p2), %vm277_vm0, %v1251_v0  ;;  %1506 = vmatprep.subr.msk.bf16.mxu0 (!%p163_p2), %vm277_vm0, %v1569_v1  ;;  %v279_v2 = vsel (!%p163_p2), %vm277_vm0, %v1251_v0, 0  ;;  %v1577_v3 = vsel (!%p163_p2), %vm277_vm0, %v1569_v1, 0  ;;  %vm199_vm1 = vcmask (!%p163_p2), 31744   ;;  %v250_v4 = vld [vmem:[%s1755_s1] sm:$0x3] (!%p163_p2) }
   0x7   : > { %1347 = vmatpush3.bf16.msra.mxu1 (!%p163_p2), %v279_v2  ;;  %1387 = vmatpush3.bf16.msra.mxu0 (!%p163_p2), %v1577_v3  ;;  %v1529_v5 = vmov (!%p163_p2), 0.0   ;;  %vm201_vm2 = vcmask (!%p163_p2), 25600   ;;  %v1275_v6 = vld [vmem:[%s1755_s1 + $0xa] sm:$0x3] (!%p163_p2)  ;;  %v359_v24 = vsel (!%p163_p2), %vm277_vm0, %v250_v4, 0 }
   0x8   : > { %200 = vst.msk [vmem:[#allocation2] sm:$0xff] (!%p163_p2), %vm199_vm1, %v1529_v5  ;;  %203 = vst.msk [vmem:[#allocation2 + $0x10] sm:$0xff] (!%p163_p2), %vm199_vm1, %v1529_v5  ;;  %1503 = vmatprep.subr.msk.bf16.mxu1 (!%p163_p2), %vm277_vm0, %v250_v4  ;;  %1508 = vmatprep.subr.msk.bf16.mxu0 (!%p163_p2), %vm277_vm0, %v1275_v6  ;;  %v759_v26 = vsel (!%p163_p2), %vm277_vm0, %v1275_v6, 0  ;;  %v1280_v31 = vld [vmem:[%s1755_s1 + $0xc] sm:$0x3] (!%p163_p2) }
   0x9   : > { %205 = vst.msk [vmem:[#allocation2 + $0x20] sm:$0xff] (!%p163_p2), %vm199_vm1, %v1529_v5  ;;  %207 = vst.msk [vmem:[#allocation2 + $0x30] sm:$0xff] (!%p163_p2), %vm199_vm1, %v1529_v5  ;;  %v1260_v32 = vld [vmem:[%s1755_s1 + $0x4] sm:$0x3] (!%p163_p2)  ;;  %v862_v47 = vsel (!%p163_p2), %vm277_vm0, %v1280_v31, 0 }
   0xa   : > { %209 = vst.msk [vmem:[#allocation2 + $0x40] sm:$0xff] (!%p163_p2), %vm199_vm1, %v1529_v5  ;;  %211 = vst.msk [vmem:[#allocation2 + $0x50] sm:$0xff] (!%p163_p2), %vm199_vm1, %v1529_v5  ;;  %v1285_v50 = vld [vmem:[%s1755_s1 + $0xe] sm:$0x3] (!%p163_p2)  ;;  %v453_v55 = vsel (!%p163_p2), %vm277_vm0, %v1260_v32, 0 }
   0xb   : > { %213 = vst.msk [vmem:[#allocation2 + $0x60] sm:$0xff] (!%p163_p2), %vm199_vm1, %v1529_v5  ;;  %215 = vst.msk [vmem:[#allocation2 + $0x70] sm:$0xff] (!%p163_p2), %vm199_vm1, %v1529_v5  ;;  %v1265_v56 = vld [vmem:[%s1755_s1 + $0x6] sm:$0x3] (!%p163_p2)  ;;  %v964_v63 = vsel (!%p163_p2), %vm277_vm0, %v1285_v50, 0 }
   0xc   : > { %217 = vst.msk [vmem:[#allocation2 + $0x80] sm:$0xff] (!%p163_p2), %vm199_vm1, %v1529_v5  ;;  %219 = vst.msk [vmem:[#allocation2 + $0x90] sm:$0xff] (!%p163_p2), %vm199_vm1, %v1529_v5  ;;  %v1290_v0 = vld [vmem:[%s1755_s1 + $0x10] sm:$0x3] (!%p163_p2) }
   0xd   : > { %s1760_s16 = smov (!%p188_p3, %s1242_s16), 1  ;;  %202 = vst.msk [vmem:[#allocation2 + $0x8] sm:$0x3] %vm201_vm2, %v1529_v5  ;;  %204 = vst.msk [vmem:[#allocation2 + $0x18] sm:$0x3] %vm201_vm2, %v1529_v5 }
   0xe   : > { %206 = vst.msk [vmem:[#allocation2 + $0x28] sm:$0x3] %vm201_vm2, %v1529_v5  ;;  %208 = vst.msk [vmem:[#allocation2 + $0x38] sm:$0x3] %vm201_vm2, %v1529_v5  ;;  %s1299_s25 = sshll.u32 %s1760_s16, 6 }
   0xf   : > { %210 = vst.msk [vmem:[#allocation2 + $0x48] sm:$0x3] %vm201_vm2, %v1529_v5  ;;  %212 = vst.msk [vmem:[#allocation2 + $0x58] sm:$0x3] %vm201_vm2, %v1529_v5  ;;  %s192_s28 = scalar_lea.vmem %s1754_s0, %s1299_s25  ;;  %v238_v35 = vld [vmem:[#allocation2] sm:$0xff]  ;;  %s1733_s21 = scalar_lea.vmem %s1758_s4, %s1299_s25 }
  0x10   : > { %214 = vst.msk [vmem:[#allocation2 + $0x68] sm:$0x3] %vm201_vm2, %v1529_v5  ;;  %216 = vst.msk [vmem:[#allocation2 + $0x78] sm:$0x3] %vm201_vm2, %v1529_v5  ;;  %v221_v7 = vld [vmem:[%s192_s28] sm:$0xff]  ;;  %v222_v8 = vld [vmem:[%s192_s28 + $0x8] sm:$0xff] }
  0x11   : > { %218 = vst.msk [vmem:[#allocation2 + $0x88] sm:$0x3] %vm201_vm2, %v1529_v5  ;;  %220 = vst.msk [vmem:[#allocation2 + $0x98] sm:$0x3] %vm201_vm2, %v1529_v5  ;;  %v223_v9 = vld [vmem:[%s192_s28 + $0x10] sm:$0xff]  ;;  %v224_v10 = vld [vmem:[%s192_s28 + $0x18] sm:$0xff] }
  0x12   : > { %230 = vst.msk [vmem:[#allocation2 + $0x11] sm:$0xff] %vm199_vm1, %v221_v7  ;;  %231 = vst.msk [vmem:[#allocation2 + $0x21] sm:$0xff] %vm199_vm1, %v222_v8  ;;  %v225_v11 = vld [vmem:[%s192_s28 + $0x20] sm:$0xff]  ;;  %v226_v12 = vld [vmem:[%s192_s28 + $0x28] sm:$0xff]  ;;  %v555_v7 = vsel %vm277_vm0, %v1265_v56, 0 }
  0x13   : > { %232 = vst.msk [vmem:[#allocation2 + $0x31] sm:$0xff] %vm199_vm1, %v223_v9  ;;  %233 = vst.msk [vmem:[#allocation2 + $0x41] sm:$0xff] %vm199_vm1, %v224_v10  ;;  %v227_v13 = vld [vmem:[%s192_s28 + $0x30] sm:$0xff]  ;;  %v228_v14 = vld [vmem:[%s192_s28 + $0x38] sm:$0xff] }
  0x14   : > { %234 = vst.msk [vmem:[#allocation2 + $0x51] sm:$0xff] %vm199_vm1, %v225_v11  ;;  %235 = vst.msk [vmem:[#allocation2 + $0x61] sm:$0xff] %vm199_vm1, %v226_v12  ;;  %v251_v15 = vld [vmem:[#allocation2 + $0x1] sm:$0xff]  ;;  %v842_v5 = vld [vmem:[#allocation2 + $0x90] sm:$0xff]  ;;  %v1066_v11 = vsel %vm277_vm0, %v1290_v0, 0 }
  0x15   : > { %236 = vst.msk [vmem:[#allocation2 + $0x71] sm:$0xff] %vm199_vm1, %v227_v13  ;;  %237 = vst.msk [vmem:[#allocation2 + $0x81] sm:$0xff] %vm199_vm1, %v228_v14  ;;  %v426_v60 = vld [vmem:[#allocation2 + $0x2] sm:$0xff] }
  0x18   : > { %v944_v13 = vld [vmem:[#allocation2 + $0x91] sm:$0xff] }
  0x19   : > { %v252_v16 = vld [vmem:[#allocation2 + $0x11] sm:$0xff]  ;;  %v631_v17 = vld [vmem:[#allocation2 + $0x21] sm:$0xff] }
  0x1a   : > { %v254_v18 = vld [vmem:[#allocation2 + $0x31] sm:$0xff]  ;;  %v259_v19 = vpack.c.bf16 %v252_v16, %v251_v15  ;;  %v638_v20 = vpack.c.bf16 %v631_v17, %v252_v16  ;;  %v633_v22 = vld [vmem:[#allocation2 + $0x41] sm:$0xff] }
  0x1b   : > { %v1624_v21 = vpack.c.bf16 %v254_v18, %v631_v17  ;;  %v1626_v23 = vld [vmem:[#allocation2 + $0x51] sm:$0xff]  ;;  %v639_v25 = vpack.c.bf16 %v633_v22, %v254_v18  ;;  %v733_v29 = vld [vmem:[#allocation2 + $0x22] sm:$0xff] }
  0x1c   : > { %v1631_v27 = vpack.c.bf16 %v1626_v23, %v633_v22  ;;  %v732_v28 = vld [vmem:[#allocation2 + $0x12] sm:$0xff]  ;;  %1348 = vmatprep.mubr.msk.bf16.mxu1 %vm199_vm1, %v259_v19  ;;  %1388 = vmatprep.mubr.msk.bf16.mxu0 %vm199_vm1, %v638_v20  ;;  %v1644_v33 = vld [vmem:[#allocation2 + $0x61] sm:$0xff] }
  0x1d   : > { %v740_v30 = vpack.c.bf16 %v733_v29, %v732_v28  ;;  %1349 = vmatmul.mubr.msk.bf16.vlgmr.msra.gmra.mrb[0].mxu1 %vm199_vm1, %v1624_v21  ;;  %1389 = vmatmul.mubr.msk.bf16.vlgmr.msra.gmra.mrb[0].mxu0 %vm199_vm1, %v639_v25  ;;  %v1646_v34 = vld [vmem:[#allocation2 + $0x71] sm:$0xff]  ;;  %v735_v39 = vld [vmem:[#allocation2 + $0x42] sm:$0xff]  ;;  %v434_v62 = vpack.c.bf16 %v732_v28, %v426_v60  ;;  %v640_v17 = vpack.c.bf16 %v1644_v33, %v1626_v23  ;;  %v1295_v25 = vld [vmem:[%s1756_s2] ss:$0 sm:$0xff] }
  0x1e   : > { %1357 = vmatpush3.bf16.msra.mxu1 %v359_v24  ;;  %1397 = vmatpush3.bf16.msra.mxu0 %v759_v26  ;;  %v1651_v36 = vld [vmem:[#allocation2 + $0x10] sm:$0xff]  ;;  %v1657_v37 = vpack.c.bf16 %v1646_v34, %v1644_v33  ;;  %v737_v42 = vld [vmem:[#allocation2 + $0x62] sm:$0xff]  ;;  %v1296_v28 = vld [vmem:[%s1757_s3] ss:$0 sm:$0xff] }
  0x1f   : > { %1352 = vmatprep.mubr.msk.bf16.mxu1 %vm199_vm1, %v1631_v27  ;;  %1398 = vmatprep.mubr.msk.bf16.mxu0 %vm199_vm1, %v740_v30  ;;  %v734_v38 = vld [vmem:[#allocation2 + $0x32] sm:$0xff]  ;;  %v246_v40 = vpack.c.bf16 %v1651_v36, %v238_v35  ;;  %v240_v44 = vld [vmem:[#allocation2 + $0x20] sm:$0xff] }
  0x20   : > { %1509 = vmatprep.subr.msk.bf16.mxu0 %vm277_vm0, %v1280_v31  ;;  %1504 = vmatprep.subr.msk.bf16.mxu1 %vm277_vm0, %v1260_v32  ;;  %v736_v41 = vld [vmem:[#allocation2 + $0x52] sm:$0xff]  ;;  %v741_v43 = vpack.c.bf16 %v735_v39, %v734_v38  ;;  %v242_v48 = vld [vmem:[#allocation2 + $0x40] sm:$0xff]  ;;  %v435_v2 = vpack.c.bf16 %v734_v38, %v733_v29  ;;  %v536_v10 = vpack.c.bf16 %v240_v44, %v1651_v36 }
  0x21   : > { %v241_v45 = vld [vmem:[#allocation2 + $0x30] sm:$0xff]  ;;  %v742_v46 = vpack.c.bf16 %v737_v42, %v736_v41  ;;  %v1669_v53 = vld [vmem:[#allocation2 + $0x82] sm:$0xff]  ;;  %v436_v6 = vpack.c.bf16 %v736_v41, %v735_v39 }
  0x22   : > { %v243_v49 = vld [vmem:[#allocation2 + $0x50] sm:$0xff]  ;;  %v247_v51 = vpack.c.bf16 %v241_v45, %v240_v44  ;;  %v244_v58 = vld [vmem:[#allocation2 + $0x60] sm:$0xff]  ;;  %v537_v12 = vpack.c.bf16 %v242_v48, %v241_v45 }
  0x23   : > { %v738_v52 = vld [vmem:[#allocation2 + $0x72] sm:$0xff]  ;;  %v248_v54 = vpack.c.bf16 %v243_v49, %v242_v48  ;;  %v841_v4 = vld [vmem:[#allocation2 + $0x80] sm:$0xff]  ;;  %v538_v14 = vpack.c.bf16 %v244_v58, %v243_v49 }
  0x24   : > { %v743_v57 = vpack.c.bf16 %v1669_v53, %v738_v52  ;;  %v245_v59 = vld [vmem:[#allocation2 + $0x70] sm:$0xff]  ;;  %v846_v8 = vpack.c.bf16 %v842_v5, %v841_v4  ;;  %v437_v9 = vpack.c.bf16 %v738_v52, %v737_v42 }
  0x25   : > { %1353 = vmatmul.mubr.msk.bf16.gmra.mrb[4].mxu1 %vm199_vm1, %v1657_v37  ;;  %v249_v61 = vpack.c.bf16 %v245_v59, %v244_v58  ;;  %v539_v16 = vpack.c.bf16 %v841_v4, %v245_v59  ;;  %v1046_v18 = vld [vmem:[#allocation2 + $0x92] sm:$0xff] }
  0x26   : > { %1358 = vmatprep.mubr.msk.bf16.mxu1 %vm199_vm1, %v246_v40  ;;  %v1050_v19 = vpack.c.bf16 %v1046_v18, %v1669_v53 }
  0x29   : > { %1399 = vmatmul.mubr.msk.bf16.vlgmr.msra.gmra.mrb[0].mxu0 %vm199_vm1, %v741_v43 }
  0x2a   : > { %1407 = vmatpush3.bf16.msra.mxu0 %v862_v47  ;;  %1402 = vmatprep.mubr.msk.bf16.mxu0 %vm199_vm1, %v742_v46 }
  0x2b   : > { %1510 = vmatprep.subr.msk.bf16.mxu0 %vm277_vm0, %v1285_v50 }
  0x2d   : > { %1359 = vmatmul.mubr.msk.bf16.vlgmr.msra.gmra.mrb[0].mxu1 %vm199_vm1, %v247_v51 }
  0x2e   : > { %1367 = vmatpush3.bf16.msra.mxu1 %v453_v55  ;;  %1362 = vmatprep.mubr.msk.bf16.mxu1 %vm199_vm1, %v248_v54 }
  0x2f   : > { %1505 = vmatprep.subr.msk.bf16.mxu1 %vm277_vm0, %v1265_v56 }
  0x31   : > { %1403 = vmatmul.mubr.msk.bf16.gmra.mrb[4].mxu0 %vm199_vm1, %v743_v57 }
  0x32   : > { %1408 = vmatprep.mubr.msk.bf16.mxu0 %vm199_vm1, %v247_v51 }
  0x35   : > { %1363 = vmatmul.mubr.msk.bf16.gmra.mrb[4].mxu1 %vm199_vm1, %v249_v61 }
  0x36   : > { %1368 = vmatprep.mubr.msk.bf16.mxu1 %vm199_vm1, %v434_v62 }
  0x39   : > { %1409 = vmatmul.mubr.msk.bf16.vlgmr.msra.gmra.mrb[0].mxu0 %vm199_vm1, %v248_v54 }
  0x3a   : > { %1417 = vmatpush3.bf16.msra.mxu0 %v964_v63  ;;  %1412 = vmatprep.mubr.msk.bf16.mxu0 %vm199_vm1, %v249_v61 }
  0x3b   : > { %1511 = vmatprep.subr.msk.bf16.mxu0 %vm277_vm0, %v1290_v0 }
  0x3d   : > { %1369 = vmatmul.mubr.msk.bf16.vlgmr.msra.gmra.mrb[0].mxu1 %vm199_vm1, %v435_v2 }
  0x3e   : > { %1377 = vmatpush3.bf16.msra.mxu1 %v555_v7  ;;  %1372 = vmatprep.mubr.msk.bf16.mxu1 %vm199_vm1, %v436_v6 }
  0x3f   : > { %1507 = vmatprep.subr.msk.bf16.mxu1 %vm277_vm0, %v1569_v1  ;;  %v943_v1 = vld [vmem:[#allocation2 + $0x81] sm:$0xff] }
  0x40   : > { %v948_v15 = vpack.c.bf16 %v944_v13, %v943_v1 }
  0x41   : > { %1413 = vmatmul.mubr.msk.bf16.gmra.mrb[4].mxu0 %vm199_vm1, %v846_v8 }
  0x42   : > { %1418 = vmatprep.mubr.msk.bf16.mxu0 %vm199_vm1, %v1624_v21 }
  0x45   : > { %1373 = vmatmul.mubr.msk.bf16.gmra.mrb[4].mxu1 %vm199_vm1, %v437_v9 }
  0x46   : > { %1378 = vmatprep.mubr.msk.bf16.mxu1 %vm199_vm1, %v536_v10 }
  0x49   : > { %1419 = vmatmul.mubr.msk.bf16.vlgmr.msra.gmra.mrb[0].mxu0 %vm199_vm1, %v1631_v27 }
  0x4a   : > { %1427 = vmatpush3.bf16.msra.mxu0 %v1066_v11  ;;  %1422 = vmatprep.mubr.msk.bf16.mxu0 %vm199_vm1, %v1657_v37 }
  0x4d   : > { %1379 = vmatmul.mubr.msk.bf16.vlgmr.msra.gmra.mrb[0].mxu1 %vm199_vm1, %v537_v12 }
  0x4e   : > { %1437 = vmatpush3.bf16.msra.mxu1 %v1577_v3  ;;  %1382 = vmatprep.mubr.msk.bf16.mxu1 %vm199_vm1, %v538_v14  ;;  %v641_v3 = vpack.c.bf16 %v943_v1, %v1646_v34 }
  0x51   : > { %1423 = vmatmul.mubr.msk.bf16.gmra.mrb[4].mxu0 %vm199_vm1, %v948_v15 }
  0x52   : > { %1428 = vmatprep.mubr.msk.bf16.mxu0 %vm199_vm1, %v435_v2 }
  0x55   : > { %1383 = vmatmul.mubr.msk.bf16.gmra.mrb[4].mxu1 %vm199_vm1, %v539_v16 }
  0x56   : > { %1392 = vmatprep.mubr.msk.bf16.mxu1 %vm199_vm1, %v640_v17 }
  0x59   : > { %1429 = vmatmul.mubr.msk.bf16.vlgmr.msra.gmra.mrb[0].mxu0 %vm199_vm1, %v436_v6 }
  0x5a   : > { %1432 = vmatprep.mubr.msk.bf16.mxu0 %vm199_vm1, %v437_v9 }
  0x61   : > { %1393 = vmatmul.mubr.msk.bf16.vlgmr.msra.gmra.mrb[4].mxu1 %vm199_vm1, %v641_v3  ;;  %1433 = vmatmul.mubr.msk.bf16.gmra.mrb[4].mxu0 %vm199_vm1, %v1050_v19 }
 0x120   : > { %v1380_v20 = vpop.f32.mrb[0].mxu1 }
 0x121   : > { %v591_v21 = vpop.f32.mrb[1].mxu1 }
 0x122   : > { %v1381_v22 = vpop.f32.mrb[2].mxu1 }
 0x123   : > { %v594_v23 = vpop.f32.mrb[3].mxu1 }
 0x12c   : > { %v1430_v24 = vpop.f32.mrb[0].mxu0 }
 0x12d   : > { %v1438_v26 = vadd.f32 %v1430_v24, %v1380_v20  ;;  %v1102_v27 = vpop.f32.mrb[1].mxu0 }
 0x12e   : > { %v1439_v29 = vadd.f32 %v1102_v27, %v591_v21  ;;  %v1431_v30 = vpop.f32.mrb[2].mxu0 }
 0x12f   : > { %v1150_v31 = vmul.f32 %v1438_v26, %v1295_v25  ;;  %v1440_v32 = vadd.f32 %v1431_v30, %v1381_v22  ;;  %v1105_v33 = vpop.f32.mrb[3].mxu0 }
 0x130   : > { %v1148_v34 = vmul.f32 %v1439_v29, %v1295_v25  ;;  %v1441_v35 = vadd.f32 %v1105_v33, %v594_v23 }
 0x131   : > { %v1165_v36 = vadd.f32 %v1296_v28, %v1150_v31  ;;  %v1151_v37 = vmul.f32 %v1440_v32, %v1295_v25 }
 0x132   : > { %v1163_v38 = vadd.f32 %v1296_v28, %v1148_v34  ;;  %v1149_v39 = vmul.f32 %v1441_v35, %v1295_v25 }
 0x133   : > { %v1173_v40 = vmax.f32 %v1165_v36, 0.0  ;;  %v1166_v41 = vadd.f32 %v1296_v28, %v1151_v37 }
 0x134   : > { %v1171_v42 = vmax.f32 %v1163_v38, 0.0  ;;  %v1164_v43 = vadd.f32 %v1296_v28, %v1149_v39  ;;  %v1394_v44 = vpop.f32.mrb[4].mxu1  ;;  %v1434_v45 = vpop.f32.mrb[4].mxu0 }
 0x135   : > { %1181 = vst.msk [vmem:[%s1733_s21 + $0x10] sm:$0xff] %vm199_vm1, %v1173_v40  ;;  %v1174_v46 = vmax.f32 %v1166_v41, 0.0  ;;  %v1442_v47 = vadd.f32 %v1434_v45, %v1394_v44  ;;  %v709_v48 = vpop.f32.mrb[5].mxu1  ;;  %v1118_v49 = vpop.f32.mrb[5].mxu0 }
 0x136   : > { %1179 = vst.msk [vmem:[%s1733_s21] sm:$0xff] %vm199_vm1, %v1171_v42  ;;  %v1172_v50 = vmax.f32 %v1164_v43, 0.0  ;;  %v1443_v51 = vadd.f32 %v1118_v49, %v709_v48  ;;  %v1395_v52 = vpop.f32.mrb[6].mxu1  ;;  %v1435_v53 = vpop.f32.mrb[6].mxu0 }
 0x137   : > { %1182 = vst.msk [vmem:[%s1733_s21 + $0x18] sm:$0xff] %vm199_vm1, %v1174_v46  ;;  %v1154_v54 = vmul.f32 %v1442_v47, %v1295_v25  ;;  %v1444_v55 = vadd.f32 %v1435_v53, %v1395_v52  ;;  %v712_v56 = vpop.f32.mrb[7].mxu1  ;;  %v1121_v57 = vpop.f32.mrb[7].mxu0 }
 0x138   : > { %1180 = vst.msk [vmem:[%s1733_s21 + $0x8] sm:$0xff] %vm199_vm1, %v1172_v50  ;;  %v1152_v58 = vmul.f32 %v1443_v51, %v1295_v25  ;;  %v1445_v59 = vadd.f32 %v1121_v57, %v712_v56 }
 0x139   : > { %v1169_v60 = vadd.f32 %v1296_v28, %v1154_v54  ;;  %v1155_v61 = vmul.f32 %v1444_v55, %v1295_v25 }
 0x13a   : > { %v1167_v62 = vadd.f32 %v1296_v28, %v1152_v58  ;;  %v1153_v63 = vmul.f32 %v1445_v59, %v1295_v25 }
 0x13b   : > { %v1177_v0 = vmax.f32 %v1169_v60, 0.0  ;;  %v1170_v2 = vadd.f32 %v1296_v28, %v1155_v61 }
 0x13c   : > { %v1175_v4 = vmax.f32 %v1167_v62, 0.0  ;;  %v1168_v5 = vadd.f32 %v1296_v28, %v1153_v63 }
 0x13d   : > { %1185 = vst.msk [vmem:[%s1733_s21 + $0x30] sm:$0xff] %vm199_vm1, %v1177_v0  ;;  %v1178_v6 = vmax.f32 %v1170_v2, 0.0 }
 0x13e   : > { %1183 = vst.msk [vmem:[%s1733_s21 + $0x20] sm:$0xff] %vm199_vm1, %v1175_v4  ;;  %v1176_v7 = vmax.f32 %v1168_v5, 0.0 }
 0x13f   : > { %1186 = vst.msk [vmem:[%s1733_s21 + $0x38] sm:$0xff] %vm199_vm1, %v1178_v6 }
 0x140   : > { %1184 = vst.msk [vmem:[%s1733_s21 + $0x28] sm:$0xff] %vm199_vm1, %v1176_v7 }
 0x141 PF: > { %s14_s15 = sadd.s32 1, %s1527_s15  }
 0x142   : > { %p11_p4 = scmp.ge.s32.totalorder %s14_s15, 4  }
 0x144   :  { %13 = sbr.rel (!%p11_p4) target bundleno = 1 (0x1), region = 76 }

</bundles_post_ra>
